<compile_context>
chip_gen: v7x
topology: tpu7x:2x2x1
jax: 0.10.0
libtpu: 0.0.40
codegen_flags: <defaults>
</compile_context>

<pallas_src>
import functools
import math

import jax
import jax.numpy as jnp
from jax.experimental import pallas as pl
from jax.experimental.pallas import tpu as pltpu


# ----------------------------------------------------------------------------
# Fused kernel: the entire StackTransformer forward for one batch tile
# ----------------------------------------------------------------------------
def _stack_decoder_kernel(
    # batch-tile activations / masks
    x0_ref, mem_ref, ms_ref, mc_ref,
    # self-attention params (Q rows pre-scaled by 1/sqrt(dh) in the wrapper)
    sa_w_in_ref, sa_b_in_ref, sa_w_out_ref, sa_b_out_ref,
    # cross-attention params
    ca_w_q_ref, ca_b_q_ref, ca_w_kv_ref, ca_b_kv_ref, ca_w_out_ref, ca_b_out_ref,
    # feed-forward params
    w1_ref, b1_ref, w2_ref, b2_ref,
    # layer norms + optional final norm
    n1w_ref, n1b_ref, n2w_ref, n2b_ref, n3w_ref, n3b_ref, fnw_ref, fnb_ref,
    # output
    o_ref,
    # VMEM scratch: f32 activation carry + hoisted bf16 cross-attn K/V
    x_scr, kv_scr,
    *, nhead, eps, apply_final_norm):
  layer = pl.program_id(1)
  T, D = o_ref.shape
  dh = D // nhead

  def dense(a_b16, w_ref, b_ref):
    # a: (N, Din) bf16; w: (Din, Dout) bf16 (pre-transposed); b: (1, Dout) f32
    return (jnp.dot(a_b16, w_ref[...], preferred_element_type=jnp.float32)
            + b_ref[...])

  def layer_norm(a, g_ref, b_ref):
    mu = jnp.mean(a, axis=-1, keepdims=True)
    c = a - mu
    var = jnp.mean(c * c, axis=-1, keepdims=True)
    return c * jax.lax.rsqrt(var + eps) * g_ref[...] + b_ref[...]

  def attention(q2, k2, v2, mask):
    # Head-batched attention: one logits einsum + one PV einsum over all
    # heads (no per-head lane-axis slicing, no lane-axis concat).
    # q2: (T', D), k2/v2: (S', D), mask: (T', S') additive f32.
    t_len, s_len = q2.shape[0], k2.shape[0]
    qh = jnp.transpose(q2.astype(jnp.bfloat16).reshape(t_len, nhead, dh),
                       (1, 0, 2))                              # (H, T', dh)
    kh = jnp.transpose(k2.astype(jnp.bfloat16).reshape(s_len, nhead, dh),
                       (1, 0, 2))                              # (H, S', dh)
    vh = jnp.transpose(v2.astype(jnp.bfloat16).reshape(s_len, nhead, dh),
                       (1, 0, 2))                              # (H, S', dh)
    logits = jnp.einsum('htd,hsd->hts', qh, kh,
                        preferred_element_type=jnp.float32)
    logits = logits + mask[None, :, :]     # softmax scale folded into W_q
    logits = logits - jnp.max(logits, axis=-1, keepdims=True)
    p = jnp.exp(logits)
    p = p * pl.reciprocal(jnp.sum(p, axis=-1, keepdims=True), approx=True)
    o = jnp.einsum('hts,hsd->htd', p.astype(jnp.bfloat16), vh,
                   preferred_element_type=jnp.float32)
    return jnp.transpose(o, (1, 0, 2)).reshape(t_len, D)

  # ---- layer-invariant work: once per batch tile (first layer only) --------
  @pl.when(layer == 0)
  def _():
    x_scr[...] = x0_ref[...].astype(jnp.float32)
    # Cross-attn K/V projection is identical in every (weight-tied) layer:
    # hoisted out of the layer loop, kept resident in VMEM as bf16.
    kv = dense(mem_ref[...].astype(jnp.bfloat16), ca_w_kv_ref, ca_b_kv_ref)
    kv_scr[...] = kv.astype(jnp.bfloat16)

  x = x_scr[...]                                 # (T, D) f32 carry

  # ---- self-attention block (fused QKV projection) -------------------------
  x_b16 = x.astype(jnp.bfloat16)                 # cast once per block
  qkv = dense(x_b16, sa_w_in_ref, sa_b_in_ref)   # (T, 3D) f32
  sa = attention(qkv[:, :D], qkv[:, D:2 * D], qkv[:, 2 * D:], ms_ref[...])
  sa = dense(sa.astype(jnp.bfloat16), sa_w_out_ref, sa_b_out_ref)
  x = layer_norm(x + sa, n1w_ref, n1b_ref)

  # ---- cross-attention block (K/V reused from the hoisted scratch) ---------
  q = dense(x.astype(jnp.bfloat16), ca_w_q_ref, ca_b_q_ref)
  kv = kv_scr[...]                               # (S, 2D) bf16
  ca = attention(q, kv[:, :D], kv[:, D:], mc_ref[...])
  ca = dense(ca.astype(jnp.bfloat16), ca_w_out_ref, ca_b_out_ref)
  x = layer_norm(x + ca, n2w_ref, n2b_ref)

  # ---- feed-forward block ---------------------------------------------------
  h1 = jnp.maximum(dense(x.astype(jnp.bfloat16), w1_ref, b1_ref), 0.0)   # ReLU
  h2 = dense(h1.astype(jnp.bfloat16), w2_ref, b2_ref)
  x = layer_norm(x + h2, n3w_ref, n3b_ref)

  x_scr[...] = x                                 # carry to next layer

  @pl.when(layer == pl.num_programs(1) - 1)
  def _():
    if apply_final_norm:
      o_ref[...] = layer_norm(x, fnw_ref, fnb_ref).astype(o_ref.dtype)
    else:
      o_ref[...] = x.astype(o_ref.dtype)


# ----------------------------------------------------------------------------
# Wrapper: parameter / mask plumbing only (all compute is in the kernel)
# ----------------------------------------------------------------------------
def _combined_mask(attn_mask, key_padding_mask, b, t, s):
  """Layer-invariant additive mask (B, t, s), built once on the host."""
  m = jnp.zeros((t, s), jnp.float32)
  if attn_mask is not None:
    am = jnp.asarray(attn_mask)
    am = jnp.where(am, -1e9, 0.0) if am.dtype == jnp.bool_ else am
    m = m + am.astype(jnp.float32)
  m = jnp.broadcast_to(m[None, :, :], (b, t, s))
  if key_padding_mask is not None:
    kpm = jnp.where(jnp.asarray(key_padding_mask), -1e9, 0.0).astype(jnp.float32)
    m = m + kpm[:, None, :]
  # One consistent finite-negative convention (robust to fully-masked rows).
  return jnp.maximum(m, -1e9)


def stack_transformer_forward(tgt, memory, layer_params, num_layers, nhead,
                              final_norm=None, tgt_mask=None, memory_mask=None,
                              tgt_key_padding_mask=None,
                              memory_key_padding_mask=None, eps=1e-5):
  """StackTransformer.forward: num_layers weight-tied decoder layers + norm."""
  t, b, d = tgt.shape
  s = memory.shape[0]
  dh = d // nhead
  scale = 1.0 / math.sqrt(dh)

  # (T, B, D)/(S, B, D) -> batch-major (B, T, D)/(B, S, D)
  x0 = jnp.transpose(tgt, (1, 0, 2)).astype(jnp.float32)
  mem = jnp.transpose(memory, (1, 0, 2)).astype(jnp.float32)

  # Layer-invariant additive masks, combined once (hoisted out of the kernel).
  m_self = _combined_mask(tgt_mask, tgt_key_padding_mask, b, t, t)
  m_cross = _combined_mask(memory_mask, memory_key_padding_mask, b, t, s)

  p = layer_params
  sa, ca = p["self_attn"], p["cross_attn"]

  def to_in_out(w):   # torch (out, in) layout -> (in, out), bf16 at MXU input
    return jnp.asarray(w, jnp.float32).T.astype(jnp.bfloat16)

  def row(v):
    return jnp.asarray(v, jnp.float32).reshape(1, -1)

  # Fold the 1/sqrt(dh) softmax scale into the Q rows of the input projections.
  sa_in_w = jnp.asarray(sa["in_proj_weight"], jnp.float32)      # (3D, D)
  sa_in_b = jnp.asarray(sa["in_proj_bias"], jnp.float32)        # (3D,)
  q_row_scale = jnp.concatenate([jnp.full((d,), scale, jnp.float32),
                                 jnp.ones((2 * d,), jnp.float32)])
  sa_w_in = (sa_in_w * q_row_scale[:, None]).T.astype(jnp.bfloat16)   # (D, 3D)
  sa_b_in = (sa_in_b * q_row_scale).reshape(1, -1)

  ca_in_w = jnp.asarray(ca["in_proj_weight"], jnp.float32)      # (3D, D)
  ca_in_b = jnp.asarray(ca["in_proj_bias"], jnp.float32)
  ca_w_q = (ca_in_w[:d] * scale).T.astype(jnp.bfloat16)          # (D, D)
  ca_b_q = (ca_in_b[:d] * scale).reshape(1, -1)
  ca_w_kv = ca_in_w[d:].T.astype(jnp.bfloat16)                   # (D, 2D)
  ca_b_kv = ca_in_b[d:].reshape(1, -1)

  sa_w_out, sa_b_out = to_in_out(sa["out_proj_weight"]), row(sa["out_proj_bias"])
  ca_w_out, ca_b_out = to_in_out(ca["out_proj_weight"]), row(ca["out_proj_bias"])
  w1, b1 = to_in_out(p["linear1_w"]), row(p["linear1_b"])
  w2, b2 = to_in_out(p["linear2_w"]), row(p["linear2_b"])
  n1w, n1b = row(p["norm1_w"]), row(p["norm1_b"])
  n2w, n2b = row(p["norm2_w"]), row(p["norm2_b"])
  n3w, n3b = row(p["norm3_w"]), row(p["norm3_b"])
  if final_norm is not None:
    fnw, fnb = row(final_norm["w"]), row(final_norm["b"])
  else:
    fnw, fnb = jnp.ones((1, d), jnp.float32), jnp.zeros((1, d), jnp.float32)

  batch_inputs = [x0, mem, m_self, m_cross]
  weight_inputs = [sa_w_in, sa_b_in, sa_w_out, sa_b_out,
                   ca_w_q, ca_b_q, ca_w_kv, ca_b_kv, ca_w_out, ca_b_out,
                   w1, b1, w2, b2,
                   n1w, n1b, n2w, n2b, n3w, n3b, fnw, fnb]

  def batch_spec(a):       # one batch element per step along the parallel axis
    return pl.BlockSpec((None,) + a.shape[1:], lambda bi, l: (bi, 0, 0))

  def run(single_buffer_weights):
    def weight_spec(a):
      # Constant index across the whole grid -> DMA'd once, VMEM-resident.
      # Buffered(1): no second buffer for blocks that never change.
      kwargs = ({"pipeline_mode": pl.Buffered(1)}
                if single_buffer_weights else {})
      return pl.BlockSpec(a.shape, lambda bi, l: (0, 0), **kwargs)

    in_specs = ([batch_spec(a) for a in batch_inputs]
                + [weight_spec(a) for a in weight_inputs])

    out = pl.pallas_call(
        functools.partial(_stack_decoder_kernel, nhead=nhead, eps=eps,
                          apply_final_norm=final_norm is not None),
        grid=(b, num_layers),   # batch tiles ("parallel") x layers ("arbitrary")
        out_shape=jax.ShapeDtypeStruct((b, t, d), tgt.dtype),
        in_specs=in_specs,
        out_specs=pl.BlockSpec((None, t, d), lambda bi, l: (bi, 0, 0)),
        scratch_shapes=[pltpu.VMEM((t, d), jnp.float32),        # activation carry
                        pltpu.VMEM((s, 2 * d), jnp.bfloat16)],  # hoisted cross K/V
        compiler_params=pltpu.CompilerParams(
            dimension_semantics=("parallel", "arbitrary"),
            # explicit VMEM budget (raises v5e's 16 MiB default, safe on v7x)
            vmem_limit_bytes=32 * 1024 * 1024),
    )(*batch_inputs, *weight_inputs)
    return jax.block_until_ready(out)

  try:
    out = run(single_buffer_weights=True)
  except Exception:
    # Fall back to default double-buffering if this JAX build does not accept
    # a per-BlockSpec pipeline_mode.
    out = run(single_buffer_weights=False)

  return jnp.transpose(out, (1, 0, 2))           # back to (T, B, D)


# ----------------------------------------------------------------------------
# Deterministic parameter construction (synthetic init, no checkpoint load)
# ----------------------------------------------------------------------------
def _xavier(key, shape):
  fan_out, fan_in = shape
  a = math.sqrt(6.0 / (fan_in + fan_out))
  return jax.random.uniform(key, shape, jnp.float32, -a, a)


def init_mha_params(key, d_model):
  k1, k2 = jax.random.split(key)
  return {
      "in_proj_weight": _xavier(k1, (3 * d_model, d_model)),
      "in_proj_bias": jnp.zeros((3 * d_model,), jnp.float32),
      "out_proj_weight": _xavier(k2, (d_model, d_model)),
      "out_proj_bias": jnp.zeros((d_model,), jnp.float32),
  }


def init_layer_params(key, d_model, dim_feedforward):
  ks = jax.random.split(key, 4)
  return {
      "self_attn": init_mha_params(ks[0], d_model),
      "cross_attn": init_mha_params(ks[1], d_model),
      "linear1_w": _xavier(ks[2], (dim_feedforward, d_model)),
      "linear1_b": jnp.zeros((dim_feedforward,), jnp.float32),
      "linear2_w": _xavier(ks[3], (d_model, dim_feedforward)),
      "linear2_b": jnp.zeros((d_model,), jnp.float32),
      "norm1_w": jnp.ones((d_model,), jnp.float32),
      "norm1_b": jnp.zeros((d_model,), jnp.float32),
      "norm2_w": jnp.ones((d_model,), jnp.float32),
      "norm2_b": jnp.zeros((d_model,), jnp.float32),
      "norm3_w": jnp.ones((d_model,), jnp.float32),
      "norm3_b": jnp.zeros((d_model,), jnp.float32),
  }


def causal_mask(size):
  # torch.nn.Transformer.generate_square_subsequent_mask semantics
  i = jnp.arange(size)[:, None]
  j = jnp.arange(size)[None, :]
  return jnp.where(j <= i, 0.0, -jnp.inf).astype(jnp.float32)


# ----------------------------------------------------------------------------
if __name__ == "__main__":
  # Shapes implied by the decoder: tgt (T, B, D), memory (S, B, D)
  T, S, B, D, NHEAD, FF, NUM_LAYERS = 8, 16, 2, 32, 4, 64, 2

  root = jax.random.PRNGKey(0)
  k_params, k_tgt, k_mem = jax.random.split(root, 3)

  layer_params = init_layer_params(k_params, D, FF)   # shared by all clones
  final_norm = {"w": jnp.ones((D,), jnp.float32),
                "b": jnp.zeros((D,), jnp.float32)}

  tgt = jax.random.normal(k_tgt, (T, B, D), jnp.float32)
  memory = jax.random.normal(k_mem, (S, B, D), jnp.float32)
  tgt_mask = causal_mask(T)

  out = stack_transformer_forward(
      tgt, memory, layer_params, NUM_LAYERS, NHEAD,
      final_norm=final_norm, tgt_mask=tgt_mask, memory_mask=None,
      tgt_key_padding_mask=None, memory_key_padding_mask=None)

  out = jax.block_until_ready(out)
  assert out.shape == (T, B, D) and bool(jnp.all(jnp.isfinite(out)))
  print("KERNEL_OK")
</pallas_src>

<mosaic_0001>
module attributes {stable_mosaic.version = 11 : i64} {
  func.func @_stack_decoder_kernel(%arg0: i32, %arg1: i32, %arg2: memref<1x8x32xf32, #tpu.memory_space<vmem>>, %arg3: memref<1x16x32xf32, #tpu.memory_space<vmem>>, %arg4: memref<1x8x8xf32, #tpu.memory_space<vmem>>, %arg5: memref<1x8x16xf32, #tpu.memory_space<vmem>>, %arg6: memref<32x96xbf16, #tpu.memory_space<vmem>>, %arg7: memref<1x96xf32, #tpu.memory_space<vmem>>, %arg8: memref<32x32xbf16, #tpu.memory_space<vmem>>, %arg9: memref<1x32xf32, #tpu.memory_space<vmem>>, %arg10: memref<32x32xbf16, #tpu.memory_space<vmem>>, %arg11: memref<1x32xf32, #tpu.memory_space<vmem>>, %arg12: memref<32x64xbf16, #tpu.memory_space<vmem>>, %arg13: memref<1x64xf32, #tpu.memory_space<vmem>>, %arg14: memref<32x32xbf16, #tpu.memory_space<vmem>>, %arg15: memref<1x32xf32, #tpu.memory_space<vmem>>, %arg16: memref<32x64xbf16, #tpu.memory_space<vmem>>, %arg17: memref<1x64xf32, #tpu.memory_space<vmem>>, %arg18: memref<64x32xbf16, #tpu.memory_space<vmem>>, %arg19: memref<1x32xf32, #tpu.memory_space<vmem>>, %arg20: memref<1x32xf32, #tpu.memory_space<vmem>>, %arg21: memref<1x32xf32, #tpu.memory_space<vmem>>, %arg22: memref<1x32xf32, #tpu.memory_space<vmem>>, %arg23: memref<1x32xf32, #tpu.memory_space<vmem>>, %arg24: memref<1x32xf32, #tpu.memory_space<vmem>>, %arg25: memref<1x32xf32, #tpu.memory_space<vmem>>, %arg26: memref<1x32xf32, #tpu.memory_space<vmem>>, %arg27: memref<1x32xf32, #tpu.memory_space<vmem>>, %arg28: memref<1x8x32xf32, #tpu.memory_space<vmem>>, %arg29: memref<8x32xf32, #tpu.memory_space<vmem>>, %arg30: memref<16x64xbf16, #tpu.memory_space<vmem>>) attributes {dimension_semantics = [#tpu.dimension_semantics<parallel>, #tpu.dimension_semantics<arbitrary>], iteration_bounds = array<i64: 2, 2>, scalar_prefetch = 0 : i64, scratch_operands = 2 : i64, tpu.core_type = #tpu.core_type<tc>, window_params = [{transform_indices = @transform_0, window_bounds = array<i64: 1, 8, 32>}, {transform_indices = @transform_1, window_bounds = array<i64: 1, 16, 32>}, {transform_indices = @transform_2, window_bounds = array<i64: 1, 8, 8>}, {transform_indices = @transform_3, window_bounds = array<i64: 1, 8, 16>}, {pipeline_mode = #tpu.pipeline_mode<synchronous>, transform_indices = @transform_4, window_bounds = array<i64: 32, 96>}, {pipeline_mode = #tpu.pipeline_mode<synchronous>, transform_indices = @transform_5, window_bounds = array<i64: 1, 96>}, {pipeline_mode = #tpu.pipeline_mode<synchronous>, transform_indices = @transform_6, window_bounds = array<i64: 32, 32>}, {pipeline_mode = #tpu.pipeline_mode<synchronous>, transform_indices = @transform_7, window_bounds = array<i64: 1, 32>}, {pipeline_mode = #tpu.pipeline_mode<synchronous>, transform_indices = @transform_8, window_bounds = array<i64: 32, 32>}, {pipeline_mode = #tpu.pipeline_mode<synchronous>, transform_indices = @transform_9, window_bounds = array<i64: 1, 32>}, {pipeline_mode = #tpu.pipeline_mode<synchronous>, transform_indices = @transform_10, window_bounds = array<i64: 32, 64>}, {pipeline_mode = #tpu.pipeline_mode<synchronous>, transform_indices = @transform_11, window_bounds = array<i64: 1, 64>}, {pipeline_mode = #tpu.pipeline_mode<synchronous>, transform_indices = @transform_12, window_bounds = array<i64: 32, 32>}, {pipeline_mode = #tpu.pipeline_mode<synchronous>, transform_indices = @transform_13, window_bounds = array<i64: 1, 32>}, {pipeline_mode = #tpu.pipeline_mode<synchronous>, transform_indices = @transform_14, window_bounds = array<i64: 32, 64>}, {pipeline_mode = #tpu.pipeline_mode<synchronous>, transform_indices = @transform_15, window_bounds = array<i64: 1, 64>}, {pipeline_mode = #tpu.pipeline_mode<synchronous>, transform_indices = @transform_16, window_bounds = array<i64: 64, 32>}, {pipeline_mode = #tpu.pipeline_mode<synchronous>, transform_indices = @transform_17, window_bounds = array<i64: 1, 32>}, {pipeline_mode = #tpu.pipeline_mode<synchronous>, transform_indices = @transform_18, window_bounds = array<i64: 1, 32>}, {pipeline_mode = #tpu.pipeline_mode<synchronous>, transform_indices = @transform_19, window_bounds = array<i64: 1, 32>}, {pipeline_mode = #tpu.pipeline_mode<synchronous>, transform_indices = @transform_20, window_bounds = array<i64: 1, 32>}, {pipeline_mode = #tpu.pipeline_mode<synchronous>, transform_indices = @transform_21, window_bounds = array<i64: 1, 32>}, {pipeline_mode = #tpu.pipeline_mode<synchronous>, transform_indices = @transform_22, window_bounds = array<i64: 1, 32>}, {pipeline_mode = #tpu.pipeline_mode<synchronous>, transform_indices = @transform_23, window_bounds = array<i64: 1, 32>}, {pipeline_mode = #tpu.pipeline_mode<synchronous>, transform_indices = @transform_24, window_bounds = array<i64: 1, 32>}, {pipeline_mode = #tpu.pipeline_mode<synchronous>, transform_indices = @transform_25, window_bounds = array<i64: 1, 32>}, {transform_indices = @transform_26, window_bounds = array<i64: 1, 8, 32>}]} {
    %c0_i32 = arith.constant 0 : i32
    %0 = arith.cmpi eq, %arg1, %c0_i32 : i32
    %1 = arith.extui %0 : i1 to i32
    %c0_i32_0 = arith.constant 0 : i32
    %2 = arith.cmpi ne, %1, %c0_i32_0 : i32
    scf.if %2 {
      %c0_78 = arith.constant 0 : index
      %c0_79 = arith.constant 0 : index
      %c0_80 = arith.constant 0 : index
      %177 = vector.load %arg2[%c0_78, %c0_79, %c0_80] : memref<1x8x32xf32, #tpu.memory_space<vmem>>, vector<1x8x32xf32>
      %178 = vector.shape_cast %177 : vector<1x8x32xf32> to vector<8x32xf32>
      %c0_81 = arith.constant 0 : index
      %c0_82 = arith.constant 0 : index
      %179 = vector.load %arg29[%c0_81, %c0_82] : memref<8x32xf32, #tpu.memory_space<vmem>>, vector<8x32xf32>
      tpu.vector_store %arg29[%c0_81, %c0_82], %178 {strides = array<i32>} : memref<8x32xf32, #tpu.memory_space<vmem>>, vector<8x32xf32>,
      %c0_83 = arith.constant 0 : index
      %c0_84 = arith.constant 0 : index
      %c0_85 = arith.constant 0 : index
      %180 = vector.load %arg3[%c0_83, %c0_84, %c0_85] : memref<1x16x32xf32, #tpu.memory_space<vmem>>, vector<1x16x32xf32>
      %181 = vector.shape_cast %180 : vector<1x16x32xf32> to vector<16x32xf32>
      %182 = arith.truncf %181 : vector<16x32xf32> to vector<16x32xbf16>
      %c0_86 = arith.constant 0 : index
      %c0_87 = arith.constant 0 : index
      %183 = vector.load %arg12[%c0_86, %c0_87] : memref<32x64xbf16, #tpu.memory_space<vmem>>, vector<32x64xbf16>
      %cst_88 = arith.constant dense<0.000000e+00> : vector<16x64xf32>
      %184 = tpu.matmul %182, %183, %cst_88 {dimension_numbers = #tpu.dot_dimension_numbers<[1], [0], [0], [1], [0, 0, 1, 1], [], []>} : vector<16x32xbf16>, vector<32x64xbf16>, vector<16x64xf32> -> vector<16x64xf32>
      %c0_89 = arith.constant 0 : index
      %c0_90 = arith.constant 0 : index
      %185 = vector.load %arg13[%c0_89, %c0_90] : memref<1x64xf32, #tpu.memory_space<vmem>>, vector<1x64xf32>
      %186 = vector.broadcast %185 : vector<1x64xf32> to vector<16x64xf32>
      %187 = arith.addf %184, %186 : vector<16x64xf32>
      %188 = arith.truncf %187 : vector<16x64xf32> to vector<16x64xbf16>
      %c0_91 = arith.constant 0 : index
      %c0_92 = arith.constant 0 : index
      %189 = vector.load %arg30[%c0_91, %c0_92] : memref<16x64xbf16, #tpu.memory_space<vmem>>, vector<16x64xbf16>
      tpu.vector_store %arg30[%c0_91, %c0_92], %188 {strides = array<i32>} : memref<16x64xbf16, #tpu.memory_space<vmem>>, vector<16x64xbf16>,
    } else {
    }
    %c0 = arith.constant 0 : index
    %c0_1 = arith.constant 0 : index
    %3 = vector.load %arg29[%c0, %c0_1] : memref<8x32xf32, #tpu.memory_space<vmem>>, vector<8x32xf32>
    %4 = arith.truncf %3 : vector<8x32xf32> to vector<8x32xbf16>
    %c0_2 = arith.constant 0 : index
    %c0_3 = arith.constant 0 : index
    %5 = vector.load %arg6[%c0_2, %c0_3] : memref<32x96xbf16, #tpu.memory_space<vmem>>, vector<32x96xbf16>
    %cst = arith.constant dense<0.000000e+00> : vector<8x96xf32>
    %6 = tpu.matmul %4, %5, %cst {dimension_numbers = #tpu.dot_dimension_numbers<[1], [0], [0], [1], [0, 0, 1, 1], [], []>} : vector<8x32xbf16>, vector<32x96xbf16>, vector<8x96xf32> -> vector<8x96xf32>
    %c0_4 = arith.constant 0 : index
    %c0_5 = arith.constant 0 : index
    %7 = vector.load %arg7[%c0_4, %c0_5] : memref<1x96xf32, #tpu.memory_space<vmem>>, vector<1x96xf32>
    %8 = vector.broadcast %7 : vector<1x96xf32> to vector<8x96xf32>
    %9 = arith.addf %6, %8 : vector<8x96xf32>
    %10 = vector.extract_strided_slice %9 {offsets = [0, 0], sizes = [8, 32], strides = [1, 1]} : vector<8x96xf32> to vector<8x32xf32>
    %11 = vector.extract_strided_slice %9 {offsets = [0, 32], sizes = [8, 32], strides = [1, 1]} : vector<8x96xf32> to vector<8x32xf32>
    %12 = vector.extract_strided_slice %9 {offsets = [0, 64], sizes = [8, 32], strides = [1, 1]} : vector<8x96xf32> to vector<8x32xf32>
    %c0_6 = arith.constant 0 : index
    %c0_7 = arith.constant 0 : index
    %c0_8 = arith.constant 0 : index
    %13 = vector.load %arg4[%c0_6, %c0_7, %c0_8] : memref<1x8x8xf32, #tpu.memory_space<vmem>>, vector<1x8x8xf32>
    %14 = vector.shape_cast %13 : vector<1x8x8xf32> to vector<8x8xf32>
    %15 = arith.truncf %10 : vector<8x32xf32> to vector<8x32xbf16>
    %16 = vector.shape_cast %15 : vector<8x32xbf16> to vector<8x4x8xbf16>
    %17 = tpu.transpose %16, [1, 0, 2] : vector<8x4x8xbf16> -> vector<4x8x8xbf16>
    %18 = arith.truncf %11 : vector<8x32xf32> to vector<8x32xbf16>
    %19 = vector.shape_cast %18 : vector<8x32xbf16> to vector<8x4x8xbf16>
    %20 = tpu.transpose %19, [1, 0, 2] : vector<8x4x8xbf16> -> vector<4x8x8xbf16>
    %21 = arith.truncf %12 : vector<8x32xf32> to vector<8x32xbf16>
    %22 = vector.shape_cast %21 : vector<8x32xbf16> to vector<8x4x8xbf16>
    %23 = tpu.transpose %22, [1, 0, 2] : vector<8x4x8xbf16> -> vector<4x8x8xbf16>
    "tpu.trace_start"() <{level = 10 : i32, message = "htd,hsd->hts"}> : () -> ()
    %cst_9 = arith.constant dense<0.000000e+00> : vector<4x8x8xf32>
    %24 = tpu.matmul %17, %20, %cst_9 {dimension_numbers = #tpu.dot_dimension_numbers<[2], [2], [1], [1], [0, 0, 0, 1, 1, 1], [0], [0]>} : vector<4x8x8xbf16>, vector<4x8x8xbf16>, vector<4x8x8xf32> -> vector<4x8x8xf32>
    "tpu.trace_stop"() : () -> ()
    %25 = vector.shape_cast %14 : vector<8x8xf32> to vector<1x8x8xf32>
    %26 = vector.broadcast %25 : vector<1x8x8xf32> to vector<4x8x8xf32>
    %27 = arith.addf %24, %26 : vector<4x8x8xf32>
    %cst_10 = arith.constant dense<0xFF800000> : vector<4x8xf32>
    %28 = vector.multi_reduction <maximumf>, %27, %cst_10 [2] : vector<4x8x8xf32> to vector<4x8xf32>
    %29 = vector.shape_cast %28 : vector<4x8xf32> to vector<4x8x1xf32>
    %30 = vector.broadcast %29 : vector<4x8x1xf32> to vector<4x8x8xf32>
    %31 = arith.subf %27, %30 : vector<4x8x8xf32>
    %32 = math.exp %31 : vector<4x8x8xf32>
    %cst_11 = arith.constant dense<0.000000e+00> : vector<4x8xf32>
    %33 = vector.multi_reduction <add>, %32, %cst_11 [2] : vector<4x8x8xf32> to vector<4x8xf32>
    %34 = vector.shape_cast %33 : vector<4x8xf32> to vector<4x8x1xf32>
    %35 = tpu.reciprocal %34 {approx = true} : vector<4x8x1xf32> -> vector<4x8x1xf32>
    %36 = vector.broadcast %35 : vector<4x8x1xf32> to vector<4x8x8xf32>
    %37 = arith.mulf %32, %36 : vector<4x8x8xf32>
    %38 = arith.truncf %37 : vector<4x8x8xf32> to vector<4x8x8xbf16>
    "tpu.trace_start"() <{level = 10 : i32, message = "hts,hsd->htd"}> : () -> ()
    %cst_12 = arith.constant dense<0.000000e+00> : vector<4x8x8xf32>
    %39 = tpu.matmul %38, %23, %cst_12 {dimension_numbers = #tpu.dot_dimension_numbers<[2], [1], [1], [2], [0, 0, 0, 1, 1, 2], [0], [0]>} : vector<4x8x8xbf16>, vector<4x8x8xbf16>, vector<4x8x8xf32> -> vector<4x8x8xf32>
    "tpu.trace_stop"() : () -> ()
    %40 = tpu.transpose %39, [1, 0, 2] : vector<4x8x8xf32> -> vector<8x4x8xf32>
    %41 = vector.shape_cast %40 : vector<8x4x8xf32> to vector<8x32xf32>
    %42 = arith.truncf %41 : vector<8x32xf32> to vector<8x32xbf16>
    %c0_13 = arith.constant 0 : index
    %c0_14 = arith.constant 0 : index
    %43 = vector.load %arg8[%c0_13, %c0_14] : memref<32x32xbf16, #tpu.memory_space<vmem>>, vector<32x32xbf16>
    %cst_15 = arith.constant dense<0.000000e+00> : vector<8x32xf32>
    %44 = tpu.matmul %42, %43, %cst_15 {dimension_numbers = #tpu.dot_dimension_numbers<[1], [0], [0], [1], [0, 0, 1, 1], [], []>} : vector<8x32xbf16>, vector<32x32xbf16>, vector<8x32xf32> -> vector<8x32xf32>
    %c0_16 = arith.constant 0 : index
    %c0_17 = arith.constant 0 : index
    %45 = vector.load %arg9[%c0_16, %c0_17] : memref<1x32xf32, #tpu.memory_space<vmem>>, vector<1x32xf32>
    %46 = vector.broadcast %45 : vector<1x32xf32> to vector<8x32xf32>
    %47 = arith.addf %44, %46 : vector<8x32xf32>
    %48 = arith.addf %3, %47 : vector<8x32xf32>
    %cst_18 = arith.constant dense<0.000000e+00> : vector<8xf32>
    %49 = vector.multi_reduction <add>, %48, %cst_18 [1] : vector<8x32xf32> to vector<8xf32>
    %50 = vector.shape_cast %49 : vector<8xf32> to vector<8x1xf32>
    %cst_19 = arith.constant 3.200000e+01 : f32
    %51 = vector.broadcast %cst_19 : f32 to vector<8x1xf32>
    %52 = arith.divf %50, %51 : vector<8x1xf32>
    %53 = vector.broadcast %52 : vector<8x1xf32> to vector<8x32xf32>
    %54 = arith.subf %48, %53 : vector<8x32xf32>
    %55 = arith.mulf %54, %54 : vector<8x32xf32>
    %cst_20 = arith.constant dense<0.000000e+00> : vector<8xf32>
    %56 = vector.multi_reduction <add>, %55, %cst_20 [1] : vector<8x32xf32> to vector<8xf32>
    %57 = vector.shape_cast %56 : vector<8xf32> to vector<8x1xf32>
    %cst_21 = arith.constant 3.200000e+01 : f32
    %58 = vector.broadcast %cst_21 : f32 to vector<8x1xf32>
    %59 = arith.divf %57, %58 : vector<8x1xf32>
    %cst_22 = arith.constant 9.99999974E-6 : f32
    %60 = vector.broadcast %cst_22 : f32 to vector<8x1xf32>
    %61 = arith.addf %59, %60 : vector<8x1xf32>
    %62 = math.rsqrt %61 : vector<8x1xf32>
    %63 = vector.broadcast %62 : vector<8x1xf32> to vector<8x32xf32>
    %64 = arith.mulf %54, %63 : vector<8x32xf32>
    %c0_23 = arith.constant 0 : index
    %c0_24 = arith.constant 0 : index
    %65 = vector.load %arg20[%c0_23, %c0_24] : memref<1x32xf32, #tpu.memory_space<vmem>>, vector<1x32xf32>
    %66 = vector.broadcast %65 : vector<1x32xf32> to vector<8x32xf32>
    %67 = arith.mulf %64, %66 : vector<8x32xf32>
    %c0_25 = arith.constant 0 : index
    %c0_26 = arith.constant 0 : index
    %68 = vector.load %arg21[%c0_25, %c0_26] : memref<1x32xf32, #tpu.memory_space<vmem>>, vector<1x32xf32>
    %69 = vector.broadcast %68 : vector<1x32xf32> to vector<8x32xf32>
    %70 = arith.addf %67, %69 : vector<8x32xf32>
    %71 = arith.truncf %70 : vector<8x32xf32> to vector<8x32xbf16>
    %c0_27 = arith.constant 0 : index
    %c0_28 = arith.constant 0 : index
    %72 = vector.load %arg10[%c0_27, %c0_28] : memref<32x32xbf16, #tpu.memory_space<vmem>>, vector<32x32xbf16>
    %cst_29 = arith.constant dense<0.000000e+00> : vector<8x32xf32>
    %73 = tpu.matmul %71, %72, %cst_29 {dimension_numbers = #tpu.dot_dimension_numbers<[1], [0], [0], [1], [0, 0, 1, 1], [], []>} : vector<8x32xbf16>, vector<32x32xbf16>, vector<8x32xf32> -> vector<8x32xf32>
    %c0_30 = arith.constant 0 : index
    %c0_31 = arith.constant 0 : index
    %74 = vector.load %arg11[%c0_30, %c0_31] : memref<1x32xf32, #tpu.memory_space<vmem>>, vector<1x32xf32>
    %75 = vector.broadcast %74 : vector<1x32xf32> to vector<8x32xf32>
    %76 = arith.addf %73, %75 : vector<8x32xf32>
    %c0_32 = arith.constant 0 : index
    %c0_33 = arith.constant 0 : index
    %77 = vector.load %arg30[%c0_32, %c0_33] : memref<16x64xbf16, #tpu.memory_space<vmem>>, vector<16x64xbf16>
    %78 = vector.extract_strided_slice %77 {offsets = [0, 0], sizes = [16, 32], strides = [1, 1]} : vector<16x64xbf16> to vector<16x32xbf16>
    %79 = vector.extract_strided_slice %77 {offsets = [0, 32], sizes = [16, 32], strides = [1, 1]} : vector<16x64xbf16> to vector<16x32xbf16>
    %c0_34 = arith.constant 0 : index
    %c0_35 = arith.constant 0 : index
    %c0_36 = arith.constant 0 : index
    %80 = vector.load %arg5[%c0_34, %c0_35, %c0_36] : memref<1x8x16xf32, #tpu.memory_space<vmem>>, vector<1x8x16xf32>
    %81 = vector.shape_cast %80 : vector<1x8x16xf32> to vector<8x16xf32>
    %82 = arith.truncf %76 : vector<8x32xf32> to vector<8x32xbf16>
    %83 = vector.shape_cast %82 : vector<8x32xbf16> to vector<8x4x8xbf16>
    %84 = tpu.transpose %83, [1, 0, 2] : vector<8x4x8xbf16> -> vector<4x8x8xbf16>
    %85 = vector.shape_cast %78 : vector<16x32xbf16> to vector<16x4x8xbf16>
    %86 = tpu.transpose %85, [1, 0, 2] : vector<16x4x8xbf16> -> vector<4x16x8xbf16>
    %87 = vector.shape_cast %79 : vector<16x32xbf16> to vector<16x4x8xbf16>
    %88 = tpu.transpose %87, [1, 0, 2] : vector<16x4x8xbf16> -> vector<4x16x8xbf16>
    "tpu.trace_start"() <{level = 10 : i32, message = "htd,hsd->hts"}> : () -> ()
    %cst_37 = arith.constant dense<0.000000e+00> : vector<4x8x16xf32>
    %89 = tpu.matmul %84, %86, %cst_37 {dimension_numbers = #tpu.dot_dimension_numbers<[2], [2], [1], [1], [0, 0, 0, 1, 1, 1], [0], [0]>} : vector<4x8x8xbf16>, vector<4x16x8xbf16>, vector<4x8x16xf32> -> vector<4x8x16xf32>
    "tpu.trace_stop"() : () -> ()
    %90 = vector.shape_cast %81 : vector<8x16xf32> to vector<1x8x16xf32>
    %91 = vector.broadcast %90 : vector<1x8x16xf32> to vector<4x8x16xf32>
    %92 = arith.addf %89, %91 : vector<4x8x16xf32>
    %cst_38 = arith.constant dense<0xFF800000> : vector<4x8xf32>
    %93 = vector.multi_reduction <maximumf>, %92, %cst_38 [2] : vector<4x8x16xf32> to vector<4x8xf32>
    %94 = vector.shape_cast %93 : vector<4x8xf32> to vector<4x8x1xf32>
    %95 = vector.broadcast %94 : vector<4x8x1xf32> to vector<4x8x16xf32>
    %96 = arith.subf %92, %95 : vector<4x8x16xf32>
    %97 = math.exp %96 : vector<4x8x16xf32>
    %cst_39 = arith.constant dense<0.000000e+00> : vector<4x8xf32>
    %98 = vector.multi_reduction <add>, %97, %cst_39 [2] : vector<4x8x16xf32> to vector<4x8xf32>
    %99 = vector.shape_cast %98 : vector<4x8xf32> to vector<4x8x1xf32>
    %100 = tpu.reciprocal %99 {approx = true} : vector<4x8x1xf32> -> vector<4x8x1xf32>
    %101 = vector.broadcast %100 : vector<4x8x1xf32> to vector<4x8x16xf32>
    %102 = arith.mulf %97, %101 : vector<4x8x16xf32>
    %103 = arith.truncf %102 : vector<4x8x16xf32> to vector<4x8x16xbf16>
    "tpu.trace_start"() <{level = 10 : i32, message = "hts,hsd->htd"}> : () -> ()
    %cst_40 = arith.constant dense<0.000000e+00> : vector<4x8x8xf32>
    %104 = tpu.matmul %103, %88, %cst_40 {dimension_numbers = #tpu.dot_dimension_numbers<[2], [1], [1], [2], [0, 0, 0, 1, 1, 2], [0], [0]>} : vector<4x8x16xbf16>, vector<4x16x8xbf16>, vector<4x8x8xf32> -> vector<4x8x8xf32>
    "tpu.trace_stop"() : () -> ()
    %105 = tpu.transpose %104, [1, 0, 2] : vector<4x8x8xf32> -> vector<8x4x8xf32>
    %106 = vector.shape_cast %105 : vector<8x4x8xf32> to vector<8x32xf32>
    %107 = arith.truncf %106 : vector<8x32xf32> to vector<8x32xbf16>
    %c0_41 = arith.constant 0 : index
    %c0_42 = arith.constant 0 : index
    %108 = vector.load %arg14[%c0_41, %c0_42] : memref<32x32xbf16, #tpu.memory_space<vmem>>, vector<32x32xbf16>
    %cst_43 = arith.constant dense<0.000000e+00> : vector<8x32xf32>
    %109 = tpu.matmul %107, %108, %cst_43 {dimension_numbers = #tpu.dot_dimension_numbers<[1], [0], [0], [1], [0, 0, 1, 1], [], []>} : vector<8x32xbf16>, vector<32x32xbf16>, vector<8x32xf32> -> vector<8x32xf32>
    %c0_44 = arith.constant 0 : index
    %c0_45 = arith.constant 0 : index
    %110 = vector.load %arg15[%c0_44, %c0_45] : memref<1x32xf32, #tpu.memory_space<vmem>>, vector<1x32xf32>
    %111 = vector.broadcast %110 : vector<1x32xf32> to vector<8x32xf32>
    %112 = arith.addf %109, %111 : vector<8x32xf32>
    %113 = arith.addf %70, %112 : vector<8x32xf32>
    %cst_46 = arith.constant dense<0.000000e+00> : vector<8xf32>
    %114 = vector.multi_reduction <add>, %113, %cst_46 [1] : vector<8x32xf32> to vector<8xf32>
    %115 = vector.shape_cast %114 : vector<8xf32> to vector<8x1xf32>
    %cst_47 = arith.constant 3.200000e+01 : f32
    %116 = vector.broadcast %cst_47 : f32 to vector<8x1xf32>
    %117 = arith.divf %115, %116 : vector<8x1xf32>
    %118 = vector.broadcast %117 : vector<8x1xf32> to vector<8x32xf32>
    %119 = arith.subf %113, %118 : vector<8x32xf32>
    %120 = arith.mulf %119, %119 : vector<8x32xf32>
    %cst_48 = arith.constant dense<0.000000e+00> : vector<8xf32>
    %121 = vector.multi_reduction <add>, %120, %cst_48 [1] : vector<8x32xf32> to vector<8xf32>
    %122 = vector.shape_cast %121 : vector<8xf32> to vector<8x1xf32>
    %cst_49 = arith.constant 3.200000e+01 : f32
    %123 = vector.broadcast %cst_49 : f32 to vector<8x1xf32>
    %124 = arith.divf %122, %123 : vector<8x1xf32>
    %cst_50 = arith.constant 9.99999974E-6 : f32
    %125 = vector.broadcast %cst_50 : f32 to vector<8x1xf32>
    %126 = arith.addf %124, %125 : vector<8x1xf32>
    %127 = math.rsqrt %126 : vector<8x1xf32>
    %128 = vector.broadcast %127 : vector<8x1xf32> to vector<8x32xf32>
    %129 = arith.mulf %119, %128 : vector<8x32xf32>
    %c0_51 = arith.constant 0 : index
    %c0_52 = arith.constant 0 : index
    %130 = vector.load %arg22[%c0_51, %c0_52] : memref<1x32xf32, #tpu.memory_space<vmem>>, vector<1x32xf32>
    %131 = vector.broadcast %130 : vector<1x32xf32> to vector<8x32xf32>
    %132 = arith.mulf %129, %131 : vector<8x32xf32>
    %c0_53 = arith.constant 0 : index
    %c0_54 = arith.constant 0 : index
    %133 = vector.load %arg23[%c0_53, %c0_54] : memref<1x32xf32, #tpu.memory_space<vmem>>, vector<1x32xf32>
    %134 = vector.broadcast %133 : vector<1x32xf32> to vector<8x32xf32>
    %135 = arith.addf %132, %134 : vector<8x32xf32>
    %136 = arith.truncf %135 : vector<8x32xf32> to vector<8x32xbf16>
    %c0_55 = arith.constant 0 : index
    %c0_56 = arith.constant 0 : index
    %137 = vector.load %arg16[%c0_55, %c0_56] : memref<32x64xbf16, #tpu.memory_space<vmem>>, vector<32x64xbf16>
    %cst_57 = arith.constant dense<0.000000e+00> : vector<8x64xf32>
    %138 = tpu.matmul %136, %137, %cst_57 {dimension_numbers = #tpu.dot_dimension_numbers<[1], [0], [0], [1], [0, 0, 1, 1], [], []>} : vector<8x32xbf16>, vector<32x64xbf16>, vector<8x64xf32> -> vector<8x64xf32>
    %c0_58 = arith.constant 0 : index
    %c0_59 = arith.constant 0 : index
    %139 = vector.load %arg17[%c0_58, %c0_59] : memref<1x64xf32, #tpu.memory_space<vmem>>, vector<1x64xf32>
    %140 = vector.broadcast %139 : vector<1x64xf32> to vector<8x64xf32>
    %141 = arith.addf %138, %140 : vector<8x64xf32>
    %cst_60 = arith.constant 0.000000e+00 : f32
    %142 = vector.broadcast %cst_60 : f32 to vector<8x64xf32>
    %143 = arith.maximumf %141, %142 : vector<8x64xf32>
    %144 = arith.truncf %143 : vector<8x64xf32> to vector<8x64xbf16>
    %c0_61 = arith.constant 0 : index
    %c0_62 = arith.constant 0 : index
    %145 = vector.load %arg18[%c0_61, %c0_62] : memref<64x32xbf16, #tpu.memory_space<vmem>>, vector<64x32xbf16>
    %cst_63 = arith.constant dense<0.000000e+00> : vector<8x32xf32>
    %146 = tpu.matmul %144, %145, %cst_63 {dimension_numbers = #tpu.dot_dimension_numbers<[1], [0], [0], [1], [0, 0, 1, 1], [], []>} : vector<8x64xbf16>, vector<64x32xbf16>, vector<8x32xf32> -> vector<8x32xf32>
    %c0_64 = arith.constant 0 : index
    %c0_65 = arith.constant 0 : index
    %147 = vector.load %arg19[%c0_64, %c0_65] : memref<1x32xf32, #tpu.memory_space<vmem>>, vector<1x32xf32>
    %148 = vector.broadcast %147 : vector<1x32xf32> to vector<8x32xf32>
    %149 = arith.addf %146, %148 : vector<8x32xf32>
    %150 = arith.addf %135, %149 : vector<8x32xf32>
    %cst_66 = arith.constant dense<0.000000e+00> : vector<8xf32>
    %151 = vector.multi_reduction <add>, %150, %cst_66 [1] : vector<8x32xf32> to vector<8xf32>
    %152 = vector.shape_cast %151 : vector<8xf32> to vector<8x1xf32>
    %cst_67 = arith.constant 3.200000e+01 : f32
    %153 = vector.broadcast %cst_67 : f32 to vector<8x1xf32>
    %154 = arith.divf %152, %153 : vector<8x1xf32>
    %155 = vector.broadcast %154 : vector<8x1xf32> to vector<8x32xf32>
    %156 = arith.subf %150, %155 : vector<8x32xf32>
    %157 = arith.mulf %156, %156 : vector<8x32xf32>
    %cst_68 = arith.constant dense<0.000000e+00> : vector<8xf32>
    %158 = vector.multi_reduction <add>, %157, %cst_68 [1] : vector<8x32xf32> to vector<8xf32>
    %159 = vector.shape_cast %158 : vector<8xf32> to vector<8x1xf32>
    %cst_69 = arith.constant 3.200000e+01 : f32
    %160 = vector.broadcast %cst_69 : f32 to vector<8x1xf32>
    %161 = arith.divf %159, %160 : vector<8x1xf32>
    %cst_70 = arith.constant 9.99999974E-6 : f32
    %162 = vector.broadcast %cst_70 : f32 to vector<8x1xf32>
    %163 = arith.addf %161, %162 : vector<8x1xf32>
    %164 = math.rsqrt %163 : vector<8x1xf32>
    %165 = vector.broadcast %164 : vector<8x1xf32> to vector<8x32xf32>
    %166 = arith.mulf %156, %165 : vector<8x32xf32>
    %c0_71 = arith.constant 0 : index
    %c0_72 = arith.constant 0 : index
    %167 = vector.load %arg24[%c0_71, %c0_72] : memref<1x32xf32, #tpu.memory_space<vmem>>, vector<1x32xf32>
    %168 = vector.broadcast %167 : vector<1x32xf32> to vector<8x32xf32>
    %169 = arith.mulf %166, %168 : vector<8x32xf32>
    %c0_73 = arith.constant 0 : index
    %c0_74 = arith.constant 0 : index
    %170 = vector.load %arg25[%c0_73, %c0_74] : memref<1x32xf32, #tpu.memory_space<vmem>>, vector<1x32xf32>
    %171 = vector.broadcast %170 : vector<1x32xf32> to vector<8x32xf32>
    %172 = arith.addf %169, %171 : vector<8x32xf32>
    %c0_75 = arith.constant 0 : index
    %c0_76 = arith.constant 0 : index
    %173 = vector.load %arg29[%c0_75, %c0_76] : memref<8x32xf32, #tpu.memory_space<vmem>>, vector<8x32xf32>
    tpu.vector_store %arg29[%c0_75, %c0_76], %172 {strides = array<i32>} : memref<8x32xf32, #tpu.memory_space<vmem>>, vector<8x32xf32>,
    %c1_i32 = arith.constant 1 : i32
    %174 = arith.cmpi eq, %arg1, %c1_i32 : i32
    %175 = arith.extui %174 : i1 to i32
    %c0_i32_77 = arith.constant 0 : i32
    %176 = arith.cmpi ne, %175, %c0_i32_77 : i32
    scf.if %176 {
      %cst_78 = arith.constant dense<0.000000e+00> : vector<8xf32>
      %177 = vector.multi_reduction <add>, %172, %cst_78 [1] : vector<8x32xf32> to vector<8xf32>
      %178 = vector.shape_cast %177 : vector<8xf32> to vector<8x1xf32>
      %cst_79 = arith.constant 3.200000e+01 : f32
      %179 = vector.broadcast %cst_79 : f32 to vector<8x1xf32>
      %180 = arith.divf %178, %179 : vector<8x1xf32>
      %181 = vector.broadcast %180 : vector<8x1xf32> to vector<8x32xf32>
      %182 = arith.subf %172, %181 : vector<8x32xf32>
      %183 = arith.mulf %182, %182 : vector<8x32xf32>
      %cst_80 = arith.constant dense<0.000000e+00> : vector<8xf32>
      %184 = vector.multi_reduction <add>, %183, %cst_80 [1] : vector<8x32xf32> to vector<8xf32>
      %185 = vector.shape_cast %184 : vector<8xf32> to vector<8x1xf32>
      %cst_81 = arith.constant 3.200000e+01 : f32
      %186 = vector.broadcast %cst_81 : f32 to vector<8x1xf32>
      %187 = arith.divf %185, %186 : vector<8x1xf32>
      %cst_82 = arith.constant 9.99999974E-6 : f32
      %188 = vector.broadcast %cst_82 : f32 to vector<8x1xf32>
      %189 = arith.addf %187, %188 : vector<8x1xf32>
      %190 = math.rsqrt %189 : vector<8x1xf32>
      %191 = vector.broadcast %190 : vector<8x1xf32> to vector<8x32xf32>
      %192 = arith.mulf %182, %191 : vector<8x32xf32>
      %c0_83 = arith.constant 0 : index
      %c0_84 = arith.constant 0 : index
      %193 = vector.load %arg26[%c0_83, %c0_84] : memref<1x32xf32, #tpu.memory_space<vmem>>, vector<1x32xf32>
      %194 = vector.broadcast %193 : vector<1x32xf32> to vector<8x32xf32>
      %195 = arith.mulf %192, %194 : vector<8x32xf32>
      %c0_85 = arith.constant 0 : index
      %c0_86 = arith.constant 0 : index
      %196 = vector.load %arg27[%c0_85, %c0_86] : memref<1x32xf32, #tpu.memory_space<vmem>>, vector<1x32xf32>
      %197 = vector.broadcast %196 : vector<1x32xf32> to vector<8x32xf32>
      %198 = arith.addf %195, %197 : vector<8x32xf32>
      %c0_87 = arith.constant 0 : index
      %c0_88 = arith.constant 0 : index
      %c0_89 = arith.constant 0 : index
      %199 = vector.load %arg28[%c0_87, %c0_88, %c0_89] : memref<1x8x32xf32, #tpu.memory_space<vmem>>, vector<1x8x32xf32>
      %200 = vector.shape_cast %199 : vector<1x8x32xf32> to vector<8x32xf32>
      %201 = vector.shape_cast %198 : vector<8x32xf32> to vector<1x8x32xf32>
      tpu.vector_store %arg28[%c0_87, %c0_88, %c0_89], %201 {strides = array<i32>} : memref<1x8x32xf32, #tpu.memory_space<vmem>>, vector<1x8x32xf32>,
    } else {
    }
    return
  }
  func.func @transform_0(%arg0: i32, %arg1: i32) -> (i32, i32, i32) {
    %c0_i32 = arith.constant 0 : i32
    %c0_i32_0 = arith.constant 0 : i32
    %c0_i32_1 = arith.constant 0 : i32
    return %arg0, %c0_i32, %c0_i32_0 : i32, i32, i32
  }
  func.func @transform_1(%arg0: i32, %arg1: i32) -> (i32, i32, i32) {
    %c0_i32 = arith.constant 0 : i32
    %c0_i32_0 = arith.constant 0 : i32
    %c0_i32_1 = arith.constant 0 : i32
    return %arg0, %c0_i32, %c0_i32_0 : i32, i32, i32
  }
  func.func @transform_2(%arg0: i32, %arg1: i32) -> (i32, i32, i32) {
    %c0_i32 = arith.constant 0 : i32
    %c0_i32_0 = arith.constant 0 : i32
    %c0_i32_1 = arith.constant 0 : i32
    return %arg0, %c0_i32, %c0_i32_0 : i32, i32, i32
  }
  func.func @transform_3(%arg0: i32, %arg1: i32) -> (i32, i32, i32) {
    %c0_i32 = arith.constant 0 : i32
    %c0_i32_0 = arith.constant 0 : i32
    %c0_i32_1 = arith.constant 0 : i32
    return %arg0, %c0_i32, %c0_i32_0 : i32, i32, i32
  }
  func.func @transform_4(%arg0: i32, %arg1: i32) -> (i32, i32) {
    %c0_i32 = arith.constant 0 : i32
    %c0_i32_0 = arith.constant 0 : i32
    %c0_i32_1 = arith.constant 0 : i32
    return %c0_i32, %c0_i32_0 : i32, i32
  }
  func.func @transform_5(%arg0: i32, %arg1: i32) -> (i32, i32) {
    %c0_i32 = arith.constant 0 : i32
    %c0_i32_0 = arith.constant 0 : i32
    %c0_i32_1 = arith.constant 0 : i32
    return %c0_i32, %c0_i32_0 : i32, i32
  }
  func.func @transform_6(%arg0: i32, %arg1: i32) -> (i32, i32) {
    %c0_i32 = arith.constant 0 : i32
    %c0_i32_0 = arith.constant 0 : i32
    %c0_i32_1 = arith.constant 0 : i32
    return %c0_i32, %c0_i32_0 : i32, i32
  }
  func.func @transform_7(%arg0: i32, %arg1: i32) -> (i32, i32) {
    %c0_i32 = arith.constant 0 : i32
    %c0_i32_0 = arith.constant 0 : i32
    %c0_i32_1 = arith.constant 0 : i32
    return %c0_i32, %c0_i32_0 : i32, i32
  }
  func.func @transform_8(%arg0: i32, %arg1: i32) -> (i32, i32) {
    %c0_i32 = arith.constant 0 : i32
    %c0_i32_0 = arith.constant 0 : i32
    %c0_i32_1 = arith.constant 0 : i32
    return %c0_i32, %c0_i32_0 : i32, i32
  }
  func.func @transform_9(%arg0: i32, %arg1: i32) -> (i32, i32) {
    %c0_i32 = arith.constant 0 : i32
    %c0_i32_0 = arith.constant 0 : i32
    %c0_i32_1 = arith.constant 0 : i32
    return %c0_i32, %c0_i32_0 : i32, i32
  }
  func.func @transform_10(%arg0: i32, %arg1: i32) -> (i32, i32) {
    %c0_i32 = arith.constant 0 : i32
    %c0_i32_0 = arith.constant 0 : i32
    %c0_i32_1 = arith.constant 0 : i32
    return %c0_i32, %c0_i32_0 : i32, i32
  }
  func.func @transform_11(%arg0: i32, %arg1: i32) -> (i32, i32) {
    %c0_i32 = arith.constant 0 : i32
    %c0_i32_0 = arith.constant 0 : i32
    %c0_i32_1 = arith.constant 0 : i32
    return %c0_i32, %c0_i32_0 : i32, i32
  }
  func.func @transform_12(%arg0: i32, %arg1: i32) -> (i32, i32) {
    %c0_i32 = arith.constant 0 : i32
    %c0_i32_0 = arith.constant 0 : i32
    %c0_i32_1 = arith.constant 0 : i32
    return %c0_i32, %c0_i32_0 : i32, i32
  }
  func.func @transform_13(%arg0: i32, %arg1: i32) -> (i32, i32) {
    %c0_i32 = arith.constant 0 : i32
    %c0_i32_0 = arith.constant 0 : i32
    %c0_i32_1 = arith.constant 0 : i32
    return %c0_i32, %c0_i32_0 : i32, i32
  }
  func.func @transform_14(%arg0: i32, %arg1: i32) -> (i32, i32) {
    %c0_i32 = arith.constant 0 : i32
    %c0_i32_0 = arith.constant 0 : i32
    %c0_i32_1 = arith.constant 0 : i32
    return %c0_i32, %c0_i32_0 : i32, i32
  }
  func.func @transform_15(%arg0: i32, %arg1: i32) -> (i32, i32) {
    %c0_i32 = arith.constant 0 : i32
    %c0_i32_0 = arith.constant 0 : i32
    %c0_i32_1 = arith.constant 0 : i32
    return %c0_i32, %c0_i32_0 : i32, i32
  }
  func.func @transform_16(%arg0: i32, %arg1: i32) -> (i32, i32) {
    %c0_i32 = arith.constant 0 : i32
    %c0_i32_0 = arith.constant 0 : i32
    %c0_i32_1 = arith.constant 0 : i32
    return %c0_i32, %c0_i32_0 : i32, i32
  }
  func.func @transform_17(%arg0: i32, %arg1: i32) -> (i32, i32) {
    %c0_i32 = arith.constant 0 : i32
    %c0_i32_0 = arith.constant 0 : i32
    %c0_i32_1 = arith.constant 0 : i32
    return %c0_i32, %c0_i32_0 : i32, i32
  }
  func.func @transform_18(%arg0: i32, %arg1: i32) -> (i32, i32) {
    %c0_i32 = arith.constant 0 : i32
    %c0_i32_0 = arith.constant 0 : i32
    %c0_i32_1 = arith.constant 0 : i32
    return %c0_i32, %c0_i32_0 : i32, i32
  }
  func.func @transform_19(%arg0: i32, %arg1: i32) -> (i32, i32) {
    %c0_i32 = arith.constant 0 : i32
    %c0_i32_0 = arith.constant 0 : i32
    %c0_i32_1 = arith.constant 0 : i32
    return %c0_i32, %c0_i32_0 : i32, i32
  }
  func.func @transform_20(%arg0: i32, %arg1: i32) -> (i32, i32) {
    %c0_i32 = arith.constant 0 : i32
    %c0_i32_0 = arith.constant 0 : i32
    %c0_i32_1 = arith.constant 0 : i32
    return %c0_i32, %c0_i32_0 : i32, i32
  }
  func.func @transform_21(%arg0: i32, %arg1: i32) -> (i32, i32) {
    %c0_i32 = arith.constant 0 : i32
    %c0_i32_0 = arith.constant 0 : i32
    %c0_i32_1 = arith.constant 0 : i32
    return %c0_i32, %c0_i32_0 : i32, i32
  }
  func.func @transform_22(%arg0: i32, %arg1: i32) -> (i32, i32) {
    %c0_i32 = arith.constant 0 : i32
    %c0_i32_0 = arith.constant 0 : i32
    %c0_i32_1 = arith.constant 0 : i32
    return %c0_i32, %c0_i32_0 : i32, i32
  }
  func.func @transform_23(%arg0: i32, %arg1: i32) -> (i32, i32) {
    %c0_i32 = arith.constant 0 : i32
    %c0_i32_0 = arith.constant 0 : i32
    %c0_i32_1 = arith.constant 0 : i32
    return %c0_i32, %c0_i32_0 : i32, i32
  }
  func.func @transform_24(%arg0: i32, %arg1: i32) -> (i32, i32) {
    %c0_i32 = arith.constant 0 : i32
    %c0_i32_0 = arith.constant 0 : i32
    %c0_i32_1 = arith.constant 0 : i32
    return %c0_i32, %c0_i32_0 : i32, i32
  }
  func.func @transform_25(%arg0: i32, %arg1: i32) -> (i32, i32) {
    %c0_i32 = arith.constant 0 : i32
    %c0_i32_0 = arith.constant 0 : i32
    %c0_i32_1 = arith.constant 0 : i32
    return %c0_i32, %c0_i32_0 : i32, i32
  }
  func.func @transform_26(%arg0: i32, %arg1: i32) -> (i32, i32, i32) {
    %c0_i32 = arith.constant 0 : i32
    %c0_i32_0 = arith.constant 0 : i32
    %c0_i32_1 = arith.constant 0 : i32
    return %arg0, %c0_i32, %c0_i32_0 : i32, i32, i32
  }
}

module attributes {stable_mosaic.version = 11 : i64} {
  func.func @_stack_decoder_kernel(%arg0: i32, %arg1: i32, %arg2: memref<1x8x32xf32, #tpu.memory_space<vmem>>, %arg3: memref<1x16x32xf32, #tpu.memory_space<vmem>>, %arg4: memref<1x8x8xf32, #tpu.memory_space<vmem>>, %arg5: memref<1x8x16xf32, #tpu.memory_space<vmem>>, %arg6: memref<32x96xbf16, #tpu.memory_space<vmem>>, %arg7: memref<1x96xf32, #tpu.memory_space<vmem>>, %arg8: memref<32x32xbf16, #tpu.memory_space<vmem>>, %arg9: memref<1x32xf32, #tpu.memory_space<vmem>>, %arg10: memref<32x32xbf16, #tpu.memory_space<vmem>>, %arg11: memref<1x32xf32, #tpu.memory_space<vmem>>, %arg12: memref<32x64xbf16, #tpu.memory_space<vmem>>, %arg13: memref<1x64xf32, #tpu.memory_space<vmem>>, %arg14: memref<32x32xbf16, #tpu.memory_space<vmem>>, %arg15: memref<1x32xf32, #tpu.memory_space<vmem>>, %arg16: memref<32x64xbf16, #tpu.memory_space<vmem>>, %arg17: memref<1x64xf32, #tpu.memory_space<vmem>>, %arg18: memref<64x32xbf16, #tpu.memory_space<vmem>>, %arg19: memref<1x32xf32, #tpu.memory_space<vmem>>, %arg20: memref<1x32xf32, #tpu.memory_space<vmem>>, %arg21: memref<1x32xf32, #tpu.memory_space<vmem>>, %arg22: memref<1x32xf32, #tpu.memory_space<vmem>>, %arg23: memref<1x32xf32, #tpu.memory_space<vmem>>, %arg24: memref<1x32xf32, #tpu.memory_space<vmem>>, %arg25: memref<1x32xf32, #tpu.memory_space<vmem>>, %arg26: memref<1x32xf32, #tpu.memory_space<vmem>>, %arg27: memref<1x32xf32, #tpu.memory_space<vmem>>, %arg28: memref<1x8x32xf32, #tpu.memory_space<vmem>>, %arg29: memref<8x32xf32, #tpu.memory_space<vmem>>, %arg30: memref<16x64xbf16, #tpu.memory_space<vmem>>) attributes {dimension_semantics = [#tpu.dimension_semantics<parallel>, #tpu.dimension_semantics<arbitrary>], iteration_bounds = array<i64: 2, 2>, scalar_prefetch = 0 : i64, scratch_operands = 2 : i64, tpu.core_type = #tpu.core_type<tc>, window_params = [{transform_indices = @transform_0, window_bounds = array<i64: 1, 8, 32>}, {transform_indices = @transform_1, window_bounds = array<i64: 1, 16, 32>}, {transform_indices = @transform_2, window_bounds = array<i64: 1, 8, 8>}, {transform_indices = @transform_3, window_bounds = array<i64: 1, 8, 16>}, {pipeline_mode = #tpu.pipeline_mode<synchronous>, transform_indices = @transform_4, window_bounds = array<i64: 32, 96>}, {pipeline_mode = #tpu.pipeline_mode<synchronous>, transform_indices = @transform_5, window_bounds = array<i64: 1, 96>}, {pipeline_mode = #tpu.pipeline_mode<synchronous>, transform_indices = @transform_6, window_bounds = array<i64: 32, 32>}, {pipeline_mode = #tpu.pipeline_mode<synchronous>, transform_indices = @transform_7, window_bounds = array<i64: 1, 32>}, {pipeline_mode = #tpu.pipeline_mode<synchronous>, transform_indices = @transform_8, window_bounds = array<i64: 32, 32>}, {pipeline_mode = #tpu.pipeline_mode<synchronous>, transform_indices = @transform_9, window_bounds = array<i64: 1, 32>}, {pipeline_mode = #tpu.pipeline_mode<synchronous>, transform_indices = @transform_10, window_bounds = array<i64: 32, 64>}, {pipeline_mode = #tpu.pipeline_mode<synchronous>, transform_indices = @transform_11, window_bounds = array<i64: 1, 64>}, {pipeline_mode = #tpu.pipeline_mode<synchronous>, transform_indices = @transform_12, window_bounds = array<i64: 32, 32>}, {pipeline_mode = #tpu.pipeline_mode<synchronous>, transform_indices = @transform_13, window_bounds = array<i64: 1, 32>}, {pipeline_mode = #tpu.pipeline_mode<synchronous>, transform_indices = @transform_14, window_bounds = array<i64: 32, 64>}, {pipeline_mode = #tpu.pipeline_mode<synchronous>, transform_indices = @transform_15, window_bounds = array<i64: 1, 64>}, {pipeline_mode = #tpu.pipeline_mode<synchronous>, transform_indices = @transform_16, window_bounds = array<i64: 64, 32>}, {pipeline_mode = #tpu.pipeline_mode<synchronous>, transform_indices = @transform_17, window_bounds = array<i64: 1, 32>}, {pipeline_mode = #tpu.pipeline_mode<synchronous>, transform_indices = @transform_18, window_bounds = array<i64: 1, 32>}, {pipeline_mode = #tpu.pipeline_mode<synchronous>, transform_indices = @transform_19, window_bounds = array<i64: 1, 32>}, {pipeline_mode = #tpu.pipeline_mode<synchronous>, transform_indices = @transform_20, window_bounds = array<i64: 1, 32>}, {pipeline_mode = #tpu.pipeline_mode<synchronous>, transform_indices = @transform_21, window_bounds = array<i64: 1, 32>}, {pipeline_mode = #tpu.pipeline_mode<synchronous>, transform_indices = @transform_22, window_bounds = array<i64: 1, 32>}, {pipeline_mode = #tpu.pipeline_mode<synchronous>, transform_indices = @transform_23, window_bounds = array<i64: 1, 32>}, {pipeline_mode = #tpu.pipeline_mode<synchronous>, transform_indices = @transform_24, window_bounds = array<i64: 1, 32>}, {pipeline_mode = #tpu.pipeline_mode<synchronous>, transform_indices = @transform_25, window_bounds = array<i64: 1, 32>}, {transform_indices = @transform_26, window_bounds = array<i64: 1, 8, 32>}]} {
    %c0_i32 = arith.constant 0 : i32
    %0 = arith.cmpi eq, %arg1, %c0_i32 : i32
    %1 = arith.extui %0 : i1 to i32
    %c0_i32_0 = arith.constant 0 : i32
    %2 = arith.cmpi ne, %1, %c0_i32_0 : i32
    scf.if %2 {
      %c0_78 = arith.constant 0 : index
      %c0_79 = arith.constant 0 : index
      %c0_80 = arith.constant 0 : index
      %177 = vector.load %arg2[%c0_78, %c0_79, %c0_80] : memref<1x8x32xf32, #tpu.memory_space<vmem>>, vector<1x8x32xf32>
      %178 = vector.shape_cast %177 : vector<1x8x32xf32> to vector<8x32xf32>
      %c0_81 = arith.constant 0 : index
      %c0_82 = arith.constant 0 : index
      %179 = vector.load %arg29[%c0_81, %c0_82] : memref<8x32xf32, #tpu.memory_space<vmem>>, vector<8x32xf32>
      tpu.vector_store %arg29[%c0_81, %c0_82], %178 {strides = array<i32>} : memref<8x32xf32, #tpu.memory_space<vmem>>, vector<8x32xf32>,
      %c0_83 = arith.constant 0 : index
      %c0_84 = arith.constant 0 : index
      %c0_85 = arith.constant 0 : index
      %180 = vector.load %arg3[%c0_83, %c0_84, %c0_85] : memref<1x16x32xf32, #tpu.memory_space<vmem>>, vector<1x16x32xf32>
      %181 = vector.shape_cast %180 : vector<1x16x32xf32> to vector<16x32xf32>
      %182 = arith.truncf %181 : vector<16x32xf32> to vector<16x32xbf16>
      %c0_86 = arith.constant 0 : index
      %c0_87 = arith.constant 0 : index
      %183 = vector.load %arg12[%c0_86, %c0_87] : memref<32x64xbf16, #tpu.memory_space<vmem>>, vector<32x64xbf16>
      %cst_88 = arith.constant dense<0.000000e+00> : vector<16x64xf32>
      %184 = tpu.matmul %182, %183, %cst_88 {dimension_numbers = #tpu.dot_dimension_numbers<[1], [0], [0], [1], [0, 0, 1, 1], [], []>} : vector<16x32xbf16>, vector<32x64xbf16>, vector<16x64xf32> -> vector<16x64xf32>
      %c0_89 = arith.constant 0 : index
      %c0_90 = arith.constant 0 : index
      %185 = vector.load %arg13[%c0_89, %c0_90] : memref<1x64xf32, #tpu.memory_space<vmem>>, vector<1x64xf32>
      %186 = vector.broadcast %185 : vector<1x64xf32> to vector<16x64xf32>
      %187 = arith.addf %184, %186 : vector<16x64xf32>
      %188 = arith.truncf %187 : vector<16x64xf32> to vector<16x64xbf16>
      %c0_91 = arith.constant 0 : index
      %c0_92 = arith.constant 0 : index
      %189 = vector.load %arg30[%c0_91, %c0_92] : memref<16x64xbf16, #tpu.memory_space<vmem>>, vector<16x64xbf16>
      tpu.vector_store %arg30[%c0_91, %c0_92], %188 {strides = array<i32>} : memref<16x64xbf16, #tpu.memory_space<vmem>>, vector<16x64xbf16>,
    } else {
    }
    %c0 = arith.constant 0 : index
    %c0_1 = arith.constant 0 : index
    %3 = vector.load %arg29[%c0, %c0_1] : memref<8x32xf32, #tpu.memory_space<vmem>>, vector<8x32xf32>
    %4 = arith.truncf %3 : vector<8x32xf32> to vector<8x32xbf16>
    %c0_2 = arith.constant 0 : index
    %c0_3 = arith.constant 0 : index
    %5 = vector.load %arg6[%c0_2, %c0_3] : memref<32x96xbf16, #tpu.memory_space<vmem>>, vector<32x96xbf16>
    %cst = arith.constant dense<0.000000e+00> : vector<8x96xf32>
    %6 = tpu.matmul %4, %5, %cst {dimension_numbers = #tpu.dot_dimension_numbers<[1], [0], [0], [1], [0, 0, 1, 1], [], []>} : vector<8x32xbf16>, vector<32x96xbf16>, vector<8x96xf32> -> vector<8x96xf32>
    %c0_4 = arith.constant 0 : index
    %c0_5 = arith.constant 0 : index
    %7 = vector.load %arg7[%c0_4, %c0_5] : memref<1x96xf32, #tpu.memory_space<vmem>>, vector<1x96xf32>
    %8 = vector.broadcast %7 : vector<1x96xf32> to vector<8x96xf32>
    %9 = arith.addf %6, %8 : vector<8x96xf32>
    %10 = vector.extract_strided_slice %9 {offsets = [0, 0], sizes = [8, 32], strides = [1, 1]} : vector<8x96xf32> to vector<8x32xf32>
    %11 = vector.extract_strided_slice %9 {offsets = [0, 32], sizes = [8, 32], strides = [1, 1]} : vector<8x96xf32> to vector<8x32xf32>
    %12 = vector.extract_strided_slice %9 {offsets = [0, 64], sizes = [8, 32], strides = [1, 1]} : vector<8x96xf32> to vector<8x32xf32>
    %c0_6 = arith.constant 0 : index
    %c0_7 = arith.constant 0 : index
    %c0_8 = arith.constant 0 : index
    %13 = vector.load %arg4[%c0_6, %c0_7, %c0_8] : memref<1x8x8xf32, #tpu.memory_space<vmem>>, vector<1x8x8xf32>
    %14 = vector.shape_cast %13 : vector<1x8x8xf32> to vector<8x8xf32>
    %15 = arith.truncf %10 : vector<8x32xf32> to vector<8x32xbf16>
    %16 = vector.shape_cast %15 : vector<8x32xbf16> to vector<8x4x8xbf16>
    %17 = tpu.transpose %16, [1, 0, 2] : vector<8x4x8xbf16> -> vector<4x8x8xbf16>
    %18 = arith.truncf %11 : vector<8x32xf32> to vector<8x32xbf16>
    %19 = vector.shape_cast %18 : vector<8x32xbf16> to vector<8x4x8xbf16>
    %20 = tpu.transpose %19, [1, 0, 2] : vector<8x4x8xbf16> -> vector<4x8x8xbf16>
    %21 = arith.truncf %12 : vector<8x32xf32> to vector<8x32xbf16>
    %22 = vector.shape_cast %21 : vector<8x32xbf16> to vector<8x4x8xbf16>
    %23 = tpu.transpose %22, [1, 0, 2] : vector<8x4x8xbf16> -> vector<4x8x8xbf16>
    "tpu.trace_start"() <{level = 10 : i32, message = "htd,hsd->hts"}> : () -> ()
    %cst_9 = arith.constant dense<0.000000e+00> : vector<4x8x8xf32>
    %24 = tpu.matmul %17, %20, %cst_9 {dimension_numbers = #tpu.dot_dimension_numbers<[2], [2], [1], [1], [0, 0, 0, 1, 1, 1], [0], [0]>} : vector<4x8x8xbf16>, vector<4x8x8xbf16>, vector<4x8x8xf32> -> vector<4x8x8xf32>
    "tpu.trace_stop"() : () -> ()
    %25 = vector.shape_cast %14 : vector<8x8xf32> to vector<1x8x8xf32>
    %26 = vector.broadcast %25 : vector<1x8x8xf32> to vector<4x8x8xf32>
    %27 = arith.addf %24, %26 : vector<4x8x8xf32>
    %cst_10 = arith.constant dense<0xFF800000> : vector<4x8xf32>
    %28 = vector.multi_reduction <maximumf>, %27, %cst_10 [2] : vector<4x8x8xf32> to vector<4x8xf32>
    %29 = vector.shape_cast %28 : vector<4x8xf32> to vector<4x8x1xf32>
    %30 = vector.broadcast %29 : vector<4x8x1xf32> to vector<4x8x8xf32>
    %31 = arith.subf %27, %30 : vector<4x8x8xf32>
    %32 = math.exp %31 : vector<4x8x8xf32>
    %cst_11 = arith.constant dense<0.000000e+00> : vector<4x8xf32>
    %33 = vector.multi_reduction <add>, %32, %cst_11 [2] : vector<4x8x8xf32> to vector<4x8xf32>
    %34 = vector.shape_cast %33 : vector<4x8xf32> to vector<4x8x1xf32>
    %35 = tpu.reciprocal %34 {approx = true} : vector<4x8x1xf32> -> vector<4x8x1xf32>
    %36 = vector.broadcast %35 : vector<4x8x1xf32> to vector<4x8x8xf32>
    %37 = arith.mulf %32, %36 : vector<4x8x8xf32>
    %38 = arith.truncf %37 : vector<4x8x8xf32> to vector<4x8x8xbf16>
    "tpu.trace_start"() <{level = 10 : i32, message = "hts,hsd->htd"}> : () -> ()
    %cst_12 = arith.constant dense<0.000000e+00> : vector<4x8x8xf32>
    %39 = tpu.matmul %38, %23, %cst_12 {dimension_numbers = #tpu.dot_dimension_numbers<[2], [1], [1], [2], [0, 0, 0, 1, 1, 2], [0], [0]>} : vector<4x8x8xbf16>, vector<4x8x8xbf16>, vector<4x8x8xf32> -> vector<4x8x8xf32>
    "tpu.trace_stop"() : () -> ()
    %40 = tpu.transpose %39, [1, 0, 2] : vector<4x8x8xf32> -> vector<8x4x8xf32>
    %41 = vector.shape_cast %40 : vector<8x4x8xf32> to vector<8x32xf32>
    %42 = arith.truncf %41 : vector<8x32xf32> to vector<8x32xbf16>
    %c0_13 = arith.constant 0 : index
    %c0_14 = arith.constant 0 : index
    %43 = vector.load %arg8[%c0_13, %c0_14] : memref<32x32xbf16, #tpu.memory_space<vmem>>, vector<32x32xbf16>
    %cst_15 = arith.constant dense<0.000000e+00> : vector<8x32xf32>
    %44 = tpu.matmul %42, %43, %cst_15 {dimension_numbers = #tpu.dot_dimension_numbers<[1], [0], [0], [1], [0, 0, 1, 1], [], []>} : vector<8x32xbf16>, vector<32x32xbf16>, vector<8x32xf32> -> vector<8x32xf32>
    %c0_16 = arith.constant 0 : index
    %c0_17 = arith.constant 0 : index
    %45 = vector.load %arg9[%c0_16, %c0_17] : memref<1x32xf32, #tpu.memory_space<vmem>>, vector<1x32xf32>
    %46 = vector.broadcast %45 : vector<1x32xf32> to vector<8x32xf32>
    %47 = arith.addf %44, %46 : vector<8x32xf32>
    %48 = arith.addf %3, %47 : vector<8x32xf32>
    %cst_18 = arith.constant dense<0.000000e+00> : vector<8xf32>
    %49 = vector.multi_reduction <add>, %48, %cst_18 [1] : vector<8x32xf32> to vector<8xf32>
    %50 = vector.shape_cast %49 : vector<8xf32> to vector<8x1xf32>
    %cst_19 = arith.constant 3.200000e+01 : f32
    %51 = vector.broadcast %cst_19 : f32 to vector<8x1xf32>
    %52 = arith.divf %50, %51 : vector<8x1xf32>
    %53 = vector.broadcast %52 : vector<8x1xf32> to vector<8x32xf32>
    %54 = arith.subf %48, %53 : vector<8x32xf32>
    %55 = arith.mulf %54, %54 : vector<8x32xf32>
    %cst_20 = arith.constant dense<0.000000e+00> : vector<8xf32>
    %56 = vector.multi_reduction <add>, %55, %cst_20 [1] : vector<8x32xf32> to vector<8xf32>
    %57 = vector.shape_cast %56 : vector<8xf32> to vector<8x1xf32>
    %cst_21 = arith.constant 3.200000e+01 : f32
    %58 = vector.broadcast %cst_21 : f32 to vector<8x1xf32>
    %59 = arith.divf %57, %58 : vector<8x1xf32>
    %cst_22 = arith.constant 9.99999974E-6 : f32
    %60 = vector.broadcast %cst_22 : f32 to vector<8x1xf32>
    %61 = arith.addf %59, %60 : vector<8x1xf32>
    %62 = math.rsqrt %61 : vector<8x1xf32>
    %63 = vector.broadcast %62 : vector<8x1xf32> to vector<8x32xf32>
    %64 = arith.mulf %54, %63 : vector<8x32xf32>
    %c0_23 = arith.constant 0 : index
    %c0_24 = arith.constant 0 : index
    %65 = vector.load %arg20[%c0_23, %c0_24] : memref<1x32xf32, #tpu.memory_space<vmem>>, vector<1x32xf32>
    %66 = vector.broadcast %65 : vector<1x32xf32> to vector<8x32xf32>
    %67 = arith.mulf %64, %66 : vector<8x32xf32>
    %c0_25 = arith.constant 0 : index
    %c0_26 = arith.constant 0 : index
    %68 = vector.load %arg21[%c0_25, %c0_26] : memref<1x32xf32, #tpu.memory_space<vmem>>, vector<1x32xf32>
    %69 = vector.broadcast %68 : vector<1x32xf32> to vector<8x32xf32>
    %70 = arith.addf %67, %69 : vector<8x32xf32>
    %71 = arith.truncf %70 : vector<8x32xf32> to vector<8x32xbf16>
    %c0_27 = arith.constant 0 : index
    %c0_28 = arith.constant 0 : index
    %72 = vector.load %arg10[%c0_27, %c0_28] : memref<32x32xbf16, #tpu.memory_space<vmem>>, vector<32x32xbf16>
    %cst_29 = arith.constant dense<0.000000e+00> : vector<8x32xf32>
    %73 = tpu.matmul %71, %72, %cst_29 {dimension_numbers = #tpu.dot_dimension_numbers<[1], [0], [0], [1], [0, 0, 1, 1], [], []>} : vector<8x32xbf16>, vector<32x32xbf16>, vector<8x32xf32> -> vector<8x32xf32>
    %c0_30 = arith.constant 0 : index
    %c0_31 = arith.constant 0 : index
    %74 = vector.load %arg11[%c0_30, %c0_31] : memref<1x32xf32, #tpu.memory_space<vmem>>, vector<1x32xf32>
    %75 = vector.broadcast %74 : vector<1x32xf32> to vector<8x32xf32>
    %76 = arith.addf %73, %75 : vector<8x32xf32>
    %c0_32 = arith.constant 0 : index
    %c0_33 = arith.constant 0 : index
    %77 = vector.load %arg30[%c0_32, %c0_33] : memref<16x64xbf16, #tpu.memory_space<vmem>>, vector<16x64xbf16>
    %78 = vector.extract_strided_slice %77 {offsets = [0, 0], sizes = [16, 32], strides = [1, 1]} : vector<16x64xbf16> to vector<16x32xbf16>
    %79 = vector.extract_strided_slice %77 {offsets = [0, 32], sizes = [16, 32], strides = [1, 1]} : vector<16x64xbf16> to vector<16x32xbf16>
    %c0_34 = arith.constant 0 : index
    %c0_35 = arith.constant 0 : index
    %c0_36 = arith.constant 0 : index
    %80 = vector.load %arg5[%c0_34, %c0_35, %c0_36] : memref<1x8x16xf32, #tpu.memory_space<vmem>>, vector<1x8x16xf32>
    %81 = vector.shape_cast %80 : vector<1x8x16xf32> to vector<8x16xf32>
    %82 = arith.truncf %76 : vector<8x32xf32> to vector<8x32xbf16>
    %83 = vector.shape_cast %82 : vector<8x32xbf16> to vector<8x4x8xbf16>
    %84 = tpu.transpose %83, [1, 0, 2] : vector<8x4x8xbf16> -> vector<4x8x8xbf16>
    %85 = vector.shape_cast %78 : vector<16x32xbf16> to vector<16x4x8xbf16>
    %86 = tpu.transpose %85, [1, 0, 2] : vector<16x4x8xbf16> -> vector<4x16x8xbf16>
    %87 = vector.shape_cast %79 : vector<16x32xbf16> to vector<16x4x8xbf16>
    %88 = tpu.transpose %87, [1, 0, 2] : vector<16x4x8xbf16> -> vector<4x16x8xbf16>
    "tpu.trace_start"() <{level = 10 : i32, message = "htd,hsd->hts"}> : () -> ()
    %cst_37 = arith.constant dense<0.000000e+00> : vector<4x8x16xf32>
    %89 = tpu.matmul %84, %86, %cst_37 {dimension_numbers = #tpu.dot_dimension_numbers<[2], [2], [1], [1], [0, 0, 0, 1, 1, 1], [0], [0]>} : vector<4x8x8xbf16>, vector<4x16x8xbf16>, vector<4x8x16xf32> -> vector<4x8x16xf32>
    "tpu.trace_stop"() : () -> ()
    %90 = vector.shape_cast %81 : vector<8x16xf32> to vector<1x8x16xf32>
    %91 = vector.broadcast %90 : vector<1x8x16xf32> to vector<4x8x16xf32>
    %92 = arith.addf %89, %91 : vector<4x8x16xf32>
    %cst_38 = arith.constant dense<0xFF800000> : vector<4x8xf32>
    %93 = vector.multi_reduction <maximumf>, %92, %cst_38 [2] : vector<4x8x16xf32> to vector<4x8xf32>
    %94 = vector.shape_cast %93 : vector<4x8xf32> to vector<4x8x1xf32>
    %95 = vector.broadcast %94 : vector<4x8x1xf32> to vector<4x8x16xf32>
    %96 = arith.subf %92, %95 : vector<4x8x16xf32>
    %97 = math.exp %96 : vector<4x8x16xf32>
    %cst_39 = arith.constant dense<0.000000e+00> : vector<4x8xf32>
    %98 = vector.multi_reduction <add>, %97, %cst_39 [2] : vector<4x8x16xf32> to vector<4x8xf32>
    %99 = vector.shape_cast %98 : vector<4x8xf32> to vector<4x8x1xf32>
    %100 = tpu.reciprocal %99 {approx = true} : vector<4x8x1xf32> -> vector<4x8x1xf32>
    %101 = vector.broadcast %100 : vector<4x8x1xf32> to vector<4x8x16xf32>
    %102 = arith.mulf %97, %101 : vector<4x8x16xf32>
    %103 = arith.truncf %102 : vector<4x8x16xf32> to vector<4x8x16xbf16>
    "tpu.trace_start"() <{level = 10 : i32, message = "hts,hsd->htd"}> : () -> ()
    %cst_40 = arith.constant dense<0.000000e+00> : vector<4x8x8xf32>
    %104 = tpu.matmul %103, %88, %cst_40 {dimension_numbers = #tpu.dot_dimension_numbers<[2], [1], [1], [2], [0, 0, 0, 1, 1, 2], [0], [0]>} : vector<4x8x16xbf16>, vector<4x16x8xbf16>, vector<4x8x8xf32> -> vector<4x8x8xf32>
    "tpu.trace_stop"() : () -> ()
    %105 = tpu.transpose %104, [1, 0, 2] : vector<4x8x8xf32> -> vector<8x4x8xf32>
    %106 = vector.shape_cast %105 : vector<8x4x8xf32> to vector<8x32xf32>
    %107 = arith.truncf %106 : vector<8x32xf32> to vector<8x32xbf16>
    %c0_41 = arith.constant 0 : index
    %c0_42 = arith.constant 0 : index
    %108 = vector.load %arg14[%c0_41, %c0_42] : memref<32x32xbf16, #tpu.memory_space<vmem>>, vector<32x32xbf16>
    %cst_43 = arith.constant dense<0.000000e+00> : vector<8x32xf32>
    %109 = tpu.matmul %107, %108, %cst_43 {dimension_numbers = #tpu.dot_dimension_numbers<[1], [0], [0], [1], [0, 0, 1, 1], [], []>} : vector<8x32xbf16>, vector<32x32xbf16>, vector<8x32xf32> -> vector<8x32xf32>
    %c0_44 = arith.constant 0 : index
    %c0_45 = arith.constant 0 : index
    %110 = vector.load %arg15[%c0_44, %c0_45] : memref<1x32xf32, #tpu.memory_space<vmem>>, vector<1x32xf32>
    %111 = vector.broadcast %110 : vector<1x32xf32> to vector<8x32xf32>
    %112 = arith.addf %109, %111 : vector<8x32xf32>
    %113 = arith.addf %70, %112 : vector<8x32xf32>
    %cst_46 = arith.constant dense<0.000000e+00> : vector<8xf32>
    %114 = vector.multi_reduction <add>, %113, %cst_46 [1] : vector<8x32xf32> to vector<8xf32>
    %115 = vector.shape_cast %114 : vector<8xf32> to vector<8x1xf32>
    %cst_47 = arith.constant 3.200000e+01 : f32
    %116 = vector.broadcast %cst_47 : f32 to vector<8x1xf32>
    %117 = arith.divf %115, %116 : vector<8x1xf32>
    %118 = vector.broadcast %117 : vector<8x1xf32> to vector<8x32xf32>
    %119 = arith.subf %113, %118 : vector<8x32xf32>
    %120 = arith.mulf %119, %119 : vector<8x32xf32>
    %cst_48 = arith.constant dense<0.000000e+00> : vector<8xf32>
    %121 = vector.multi_reduction <add>, %120, %cst_48 [1] : vector<8x32xf32> to vector<8xf32>
    %122 = vector.shape_cast %121 : vector<8xf32> to vector<8x1xf32>
    %cst_49 = arith.constant 3.200000e+01 : f32
    %123 = vector.broadcast %cst_49 : f32 to vector<8x1xf32>
    %124 = arith.divf %122, %123 : vector<8x1xf32>
    %cst_50 = arith.constant 9.99999974E-6 : f32
    %125 = vector.broadcast %cst_50 : f32 to vector<8x1xf32>
    %126 = arith.addf %124, %125 : vector<8x1xf32>
    %127 = math.rsqrt %126 : vector<8x1xf32>
    %128 = vector.broadcast %127 : vector<8x1xf32> to vector<8x32xf32>
    %129 = arith.mulf %119, %128 : vector<8x32xf32>
    %c0_51 = arith.constant 0 : index
    %c0_52 = arith.constant 0 : index
    %130 = vector.load %arg22[%c0_51, %c0_52] : memref<1x32xf32, #tpu.memory_space<vmem>>, vector<1x32xf32>
    %131 = vector.broadcast %130 : vector<1x32xf32> to vector<8x32xf32>
    %132 = arith.mulf %129, %131 : vector<8x32xf32>
    %c0_53 = arith.constant 0 : index
    %c0_54 = arith.constant 0 : index
    %133 = vector.load %arg23[%c0_53, %c0_54] : memref<1x32xf32, #tpu.memory_space<vmem>>, vector<1x32xf32>
    %134 = vector.broadcast %133 : vector<1x32xf32> to vector<8x32xf32>
    %135 = arith.addf %132, %134 : vector<8x32xf32>
    %136 = arith.truncf %135 : vector<8x32xf32> to vector<8x32xbf16>
    %c0_55 = arith.constant 0 : index
    %c0_56 = arith.constant 0 : index
    %137 = vector.load %arg16[%c0_55, %c0_56] : memref<32x64xbf16, #tpu.memory_space<vmem>>, vector<32x64xbf16>
    %cst_57 = arith.constant dense<0.000000e+00> : vector<8x64xf32>
    %138 = tpu.matmul %136, %137, %cst_57 {dimension_numbers = #tpu.dot_dimension_numbers<[1], [0], [0], [1], [0, 0, 1, 1], [], []>} : vector<8x32xbf16>, vector<32x64xbf16>, vector<8x64xf32> -> vector<8x64xf32>
    %c0_58 = arith.constant 0 : index
    %c0_59 = arith.constant 0 : index
    %139 = vector.load %arg17[%c0_58, %c0_59] : memref<1x64xf32, #tpu.memory_space<vmem>>, vector<1x64xf32>
    %140 = vector.broadcast %139 : vector<1x64xf32> to vector<8x64xf32>
    %141 = arith.addf %138, %140 : vector<8x64xf32>
    %cst_60 = arith.constant 0.000000e+00 : f32
    %142 = vector.broadcast %cst_60 : f32 to vector<8x64xf32>
    %143 = arith.maximumf %141, %142 : vector<8x64xf32>
    %144 = arith.truncf %143 : vector<8x64xf32> to vector<8x64xbf16>
    %c0_61 = arith.constant 0 : index
    %c0_62 = arith.constant 0 : index
    %145 = vector.load %arg18[%c0_61, %c0_62] : memref<64x32xbf16, #tpu.memory_space<vmem>>, vector<64x32xbf16>
    %cst_63 = arith.constant dense<0.000000e+00> : vector<8x32xf32>
    %146 = tpu.matmul %144, %145, %cst_63 {dimension_numbers = #tpu.dot_dimension_numbers<[1], [0], [0], [1], [0, 0, 1, 1], [], []>} : vector<8x64xbf16>, vector<64x32xbf16>, vector<8x32xf32> -> vector<8x32xf32>
    %c0_64 = arith.constant 0 : index
    %c0_65 = arith.constant 0 : index
    %147 = vector.load %arg19[%c0_64, %c0_65] : memref<1x32xf32, #tpu.memory_space<vmem>>, vector<1x32xf32>
    %148 = vector.broadcast %147 : vector<1x32xf32> to vector<8x32xf32>
    %149 = arith.addf %146, %148 : vector<8x32xf32>
    %150 = arith.addf %135, %149 : vector<8x32xf32>
    %cst_66 = arith.constant dense<0.000000e+00> : vector<8xf32>
    %151 = vector.multi_reduction <add>, %150, %cst_66 [1] : vector<8x32xf32> to vector<8xf32>
    %152 = vector.shape_cast %151 : vector<8xf32> to vector<8x1xf32>
    %cst_67 = arith.constant 3.200000e+01 : f32
    %153 = vector.broadcast %cst_67 : f32 to vector<8x1xf32>
    %154 = arith.divf %152, %153 : vector<8x1xf32>
    %155 = vector.broadcast %154 : vector<8x1xf32> to vector<8x32xf32>
    %156 = arith.subf %150, %155 : vector<8x32xf32>
    %157 = arith.mulf %156, %156 : vector<8x32xf32>
    %cst_68 = arith.constant dense<0.000000e+00> : vector<8xf32>
    %158 = vector.multi_reduction <add>, %157, %cst_68 [1] : vector<8x32xf32> to vector<8xf32>
    %159 = vector.shape_cast %158 : vector<8xf32> to vector<8x1xf32>
    %cst_69 = arith.constant 3.200000e+01 : f32
    %160 = vector.broadcast %cst_69 : f32 to vector<8x1xf32>
    %161 = arith.divf %159, %160 : vector<8x1xf32>
    %cst_70 = arith.constant 9.99999974E-6 : f32
    %162 = vector.broadcast %cst_70 : f32 to vector<8x1xf32>
    %163 = arith.addf %161, %162 : vector<8x1xf32>
    %164 = math.rsqrt %163 : vector<8x1xf32>
    %165 = vector.broadcast %164 : vector<8x1xf32> to vector<8x32xf32>
    %166 = arith.mulf %156, %165 : vector<8x32xf32>
    %c0_71 = arith.constant 0 : index
    %c0_72 = arith.constant 0 : index
    %167 = vector.load %arg24[%c0_71, %c0_72] : memref<1x32xf32, #tpu.memory_space<vmem>>, vector<1x32xf32>
    %168 = vector.broadcast %167 : vector<1x32xf32> to vector<8x32xf32>
    %169 = arith.mulf %166, %168 : vector<8x32xf32>
    %c0_73 = arith.constant 0 : index
    %c0_74 = arith.constant 0 : index
    %170 = vector.load %arg25[%c0_73, %c0_74] : memref<1x32xf32, #tpu.memory_space<vmem>>, vector<1x32xf32>
    %171 = vector.broadcast %170 : vector<1x32xf32> to vector<8x32xf32>
    %172 = arith.addf %169, %171 : vector<8x32xf32>
    %c0_75 = arith.constant 0 : index
    %c0_76 = arith.constant 0 : index
    %173 = vector.load %arg29[%c0_75, %c0_76] : memref<8x32xf32, #tpu.memory_space<vmem>>, vector<8x32xf32>
    tpu.vector_store %arg29[%c0_75, %c0_76], %172 {strides = array<i32>} : memref<8x32xf32, #tpu.memory_space<vmem>>, vector<8x32xf32>,
    %c1_i32 = arith.constant 1 : i32
    %174 = arith.cmpi eq, %arg1, %c1_i32 : i32
    %175 = arith.extui %174 : i1 to i32
    %c0_i32_77 = arith.constant 0 : i32
    %176 = arith.cmpi ne, %175, %c0_i32_77 : i32
    scf.if %176 {
      %cst_78 = arith.constant dense<0.000000e+00> : vector<8xf32>
      %177 = vector.multi_reduction <add>, %172, %cst_78 [1] : vector<8x32xf32> to vector<8xf32>
      %178 = vector.shape_cast %177 : vector<8xf32> to vector<8x1xf32>
      %cst_79 = arith.constant 3.200000e+01 : f32
      %179 = vector.broadcast %cst_79 : f32 to vector<8x1xf32>
      %180 = arith.divf %178, %179 : vector<8x1xf32>
      %181 = vector.broadcast %180 : vector<8x1xf32> to vector<8x32xf32>
      %182 = arith.subf %172, %181 : vector<8x32xf32>
      %183 = arith.mulf %182, %182 : vector<8x32xf32>
      %cst_80 = arith.constant dense<0.000000e+00> : vector<8xf32>
      %184 = vector.multi_reduction <add>, %183, %cst_80 [1] : vector<8x32xf32> to vector<8xf32>
      %185 = vector.shape_cast %184 : vector<8xf32> to vector<8x1xf32>
      %cst_81 = arith.constant 3.200000e+01 : f32
      %186 = vector.broadcast %cst_81 : f32 to vector<8x1xf32>
      %187 = arith.divf %185, %186 : vector<8x1xf32>
      %cst_82 = arith.constant 9.99999974E-6 : f32
      %188 = vector.broadcast %cst_82 : f32 to vector<8x1xf32>
      %189 = arith.addf %187, %188 : vector<8x1xf32>
      %190 = math.rsqrt %189 : vector<8x1xf32>
      %191 = vector.broadcast %190 : vector<8x1xf32> to vector<8x32xf32>
      %192 = arith.mulf %182, %191 : vector<8x32xf32>
      %c0_83 = arith.constant 0 : index
      %c0_84 = arith.constant 0 : index
      %193 = vector.load %arg26[%c0_83, %c0_84] : memref<1x32xf32, #tpu.memory_space<vmem>>, vector<1x32xf32>
      %194 = vector.broadcast %193 : vector<1x32xf32> to vector<8x32xf32>
      %195 = arith.mulf %192, %194 : vector<8x32xf32>
      %c0_85 = arith.constant 0 : index
      %c0_86 = arith.constant 0 : index
      %196 = vector.load %arg27[%c0_85, %c0_86] : memref<1x32xf32, #tpu.memory_space<vmem>>, vector<1x32xf32>
      %197 = vector.broadcast %196 : vector<1x32xf32> to vector<8x32xf32>
      %198 = arith.addf %195, %197 : vector<8x32xf32>
      %c0_87 = arith.constant 0 : index
      %c0_88 = arith.constant 0 : index
      %c0_89 = arith.constant 0 : index
      %199 = vector.load %arg28[%c0_87, %c0_88, %c0_89] : memref<1x8x32xf32, #tpu.memory_space<vmem>>, vector<1x8x32xf32>
      %200 = vector.shape_cast %199 : vector<1x8x32xf32> to vector<8x32xf32>
      %201 = vector.shape_cast %198 : vector<8x32xf32> to vector<1x8x32xf32>
      tpu.vector_store %arg28[%c0_87, %c0_88, %c0_89], %201 {strides = array<i32>} : memref<1x8x32xf32, #tpu.memory_space<vmem>>, vector<1x8x32xf32>,
    } else {
    }
    return
  }
  func.func @transform_0(%arg0: i32, %arg1: i32) -> (i32, i32, i32) {
    %c0_i32 = arith.constant 0 : i32
    %c0_i32_0 = arith.constant 0 : i32
    %c0_i32_1 = arith.constant 0 : i32
    return %arg0, %c0_i32, %c0_i32_0 : i32, i32, i32
  }
  func.func @transform_1(%arg0: i32, %arg1: i32) -> (i32, i32, i32) {
    %c0_i32 = arith.constant 0 : i32
    %c0_i32_0 = arith.constant 0 : i32
    %c0_i32_1 = arith.constant 0 : i32
    return %arg0, %c0_i32, %c0_i32_0 : i32, i32, i32
  }
  func.func @transform_2(%arg0: i32, %arg1: i32) -> (i32, i32, i32) {
    %c0_i32 = arith.constant 0 : i32
    %c0_i32_0 = arith.constant 0 : i32
    %c0_i32_1 = arith.constant 0 : i32
    return %arg0, %c0_i32, %c0_i32_0 : i32, i32, i32
  }
  func.func @transform_3(%arg0: i32, %arg1: i32) -> (i32, i32, i32) {
    %c0_i32 = arith.constant 0 : i32
    %c0_i32_0 = arith.constant 0 : i32
    %c0_i32_1 = arith.constant 0 : i32
    return %arg0, %c0_i32, %c0_i32_0 : i32, i32, i32
  }
  func.func @transform_4(%arg0: i32, %arg1: i32) -> (i32, i32) {
    %c0_i32 = arith.constant 0 : i32
    %c0_i32_0 = arith.constant 0 : i32
    %c0_i32_1 = arith.constant 0 : i32
    return %c0_i32, %c0_i32_0 : i32, i32
  }
  func.func @transform_5(%arg0: i32, %arg1: i32) -> (i32, i32) {
    %c0_i32 = arith.constant 0 : i32
    %c0_i32_0 = arith.constant 0 : i32
    %c0_i32_1 = arith.constant 0 : i32
    return %c0_i32, %c0_i32_0 : i32, i32
  }
  func.func @transform_6(%arg0: i32, %arg1: i32) -> (i32, i32) {
    %c0_i32 = arith.constant 0 : i32
    %c0_i32_0 = arith.constant 0 : i32
    %c0_i32_1 = arith.constant 0 : i32
    return %c0_i32, %c0_i32_0 : i32, i32
  }
  func.func @transform_7(%arg0: i32, %arg1: i32) -> (i32, i32) {
    %c0_i32 = arith.constant 0 : i32
    %c0_i32_0 = arith.constant 0 : i32
    %c0_i32_1 = arith.constant 0 : i32
    return %c0_i32, %c0_i32_0 : i32, i32
  }
  func.func @transform_8(%arg0: i32, %arg1: i32) -> (i32, i32) {
    %c0_i32 = arith.constant 0 : i32
    %c0_i32_0 = arith.constant 0 : i32
    %c0_i32_1 = arith.constant 0 : i32
    return %c0_i32, %c0_i32_0 : i32, i32
  }
  func.func @transform_9(%arg0: i32, %arg1: i32) -> (i32, i32) {
    %c0_i32 = arith.constant 0 : i32
    %c0_i32_0 = arith.constant 0 : i32
    %c0_i32_1 = arith.constant 0 : i32
    return %c0_i32, %c0_i32_0 : i32, i32
  }
  func.func @transform_10(%arg0: i32, %arg1: i32) -> (i32, i32) {
    %c0_i32 = arith.constant 0 : i32
    %c0_i32_0 = arith.constant 0 : i32
    %c0_i32_1 = arith.constant 0 : i32
    return %c0_i32, %c0_i32_0 : i32, i32
  }
  func.func @transform_11(%arg0: i32, %arg1: i32) -> (i32, i32) {
    %c0_i32 = arith.constant 0 : i32
    %c0_i32_0 = arith.constant 0 : i32
    %c0_i32_1 = arith.constant 0 : i32
    return %c0_i32, %c0_i32_0 : i32, i32
  }
  func.func @transform_12(%arg0: i32, %arg1: i32) -> (i32, i32) {
    %c0_i32 = arith.constant 0 : i32
    %c0_i32_0 = arith.constant 0 : i32
    %c0_i32_1 = arith.constant 0 : i32
    return %c0_i32, %c0_i32_0 : i32, i32
  }
  func.func @transform_13(%arg0: i32, %arg1: i32) -> (i32, i32) {
    %c0_i32 = arith.constant 0 : i32
    %c0_i32_0 = arith.constant 0 : i32
    %c0_i32_1 = arith.constant 0 : i32
    return %c0_i32, %c0_i32_0 : i32, i32
  }
  func.func @transform_14(%arg0: i32, %arg1: i32) -> (i32, i32) {
    %c0_i32 = arith.constant 0 : i32
    %c0_i32_0 = arith.constant 0 : i32
    %c0_i32_1 = arith.constant 0 : i32
    return %c0_i32, %c0_i32_0 : i32, i32
  }
  func.func @transform_15(%arg0: i32, %arg1: i32) -> (i32, i32) {
    %c0_i32 = arith.constant 0 : i32
    %c0_i32_0 = arith.constant 0 : i32
    %c0_i32_1 = arith.constant 0 : i32
    return %c0_i32, %c0_i32_0 : i32, i32
  }
  func.func @transform_16(%arg0: i32, %arg1: i32) -> (i32, i32) {
    %c0_i32 = arith.constant 0 : i32
    %c0_i32_0 = arith.constant 0 : i32
    %c0_i32_1 = arith.constant 0 : i32
    return %c0_i32, %c0_i32_0 : i32, i32
  }
  func.func @transform_17(%arg0: i32, %arg1: i32) -> (i32, i32) {
    %c0_i32 = arith.constant 0 : i32
    %c0_i32_0 = arith.constant 0 : i32
    %c0_i32_1 = arith.constant 0 : i32
    return %c0_i32, %c0_i32_0 : i32, i32
  }
  func.func @transform_18(%arg0: i32, %arg1: i32) -> (i32, i32) {
    %c0_i32 = arith.constant 0 : i32
    %c0_i32_0 = arith.constant 0 : i32
    %c0_i32_1 = arith.constant 0 : i32
    return %c0_i32, %c0_i32_0 : i32, i32
  }
  func.func @transform_19(%arg0: i32, %arg1: i32) -> (i32, i32) {
    %c0_i32 = arith.constant 0 : i32
    %c0_i32_0 = arith.constant 0 : i32
    %c0_i32_1 = arith.constant 0 : i32
    return %c0_i32, %c0_i32_0 : i32, i32
  }
  func.func @transform_20(%arg0: i32, %arg1: i32) -> (i32, i32) {
    %c0_i32 = arith.constant 0 : i32
    %c0_i32_0 = arith.constant 0 : i32
    %c0_i32_1 = arith.constant 0 : i32
    return %c0_i32, %c0_i32_0 : i32, i32
  }
  func.func @transform_21(%arg0: i32, %arg1: i32) -> (i32, i32) {
    %c0_i32 = arith.constant 0 : i32
    %c0_i32_0 = arith.constant 0 : i32
    %c0_i32_1 = arith.constant 0 : i32
    return %c0_i32, %c0_i32_0 : i32, i32
  }
  func.func @transform_22(%arg0: i32, %arg1: i32) -> (i32, i32) {
    %c0_i32 = arith.constant 0 : i32
    %c0_i32_0 = arith.constant 0 : i32
    %c0_i32_1 = arith.constant 0 : i32
    return %c0_i32, %c0_i32_0 : i32, i32
  }
  func.func @transform_23(%arg0: i32, %arg1: i32) -> (i32, i32) {
    %c0_i32 = arith.constant 0 : i32
    %c0_i32_0 = arith.constant 0 : i32
    %c0_i32_1 = arith.constant 0 : i32
    return %c0_i32, %c0_i32_0 : i32, i32
  }
  func.func @transform_24(%arg0: i32, %arg1: i32) -> (i32, i32) {
    %c0_i32 = arith.constant 0 : i32
    %c0_i32_0 = arith.constant 0 : i32
    %c0_i32_1 = arith.constant 0 : i32
    return %c0_i32, %c0_i32_0 : i32, i32
  }
  func.func @transform_25(%arg0: i32, %arg1: i32) -> (i32, i32) {
    %c0_i32 = arith.constant 0 : i32
    %c0_i32_0 = arith.constant 0 : i32
    %c0_i32_1 = arith.constant 0 : i32
    return %c0_i32, %c0_i32_0 : i32, i32
  }
  func.func @transform_26(%arg0: i32, %arg1: i32) -> (i32, i32, i32) {
    %c0_i32 = arith.constant 0 : i32
    %c0_i32_0 = arith.constant 0 : i32
    %c0_i32_1 = arith.constant 0 : i32
    return %arg0, %c0_i32, %c0_i32_0 : i32, i32, i32
  }
}

</mosaic_0001>

<bundles_post_ra>
// kernel: tpu_custom_call.1
= control target key start
LH: loop header
LB: loop body
LE: loop exit
PB: predicated region body
PF: predicated region fallthrough
CT: control target
= control target key end

     0   :  { %s6304_s0 = inlined_call_operand.vmem [shape: f32[2,8,32], index: 0, kind: input, shape index: {}]   ;;  %s6305_s1 = inlined_call_operand.vmem [shape: f32[2,16,32], index: 1, kind: input, shape index: {}]   ;;  %s6306_s2 = inlined_call_operand.hbm [shape: f32[2,8,8], index: 2, kind: input, shape index: {}]   ;;  %s6307_s3 = inlined_call_operand.hbm [shape: f32[2,8,16], index: 3, kind: input, shape index: {}]   ;;  %s6308_s4 = inlined_call_operand.hbm [shape: bf16[32,96], index: 4, kind: input, shape index: {}]   ;;  %s6309_s5 = inlined_call_operand.vmem [shape: f32[1,96], index: 5, kind: input, shape index: {}]   ;;  %s6310_s6 = inlined_call_operand.hbm [shape: bf16[32,32], index: 6, kind: input, shape index: {}]   ;;  %s6311_s7 = inlined_call_operand.hbm [shape: f32[1,32], index: 7, kind: input, shape index: {}]   ;;  %s6312_s8 = inlined_call_operand.hbm [shape: bf16[32,32], index: 8, kind: input, shape index: {}]   ;;  %s6313_s9 = inlined_call_operand.hbm [shape: f32[1,32], index: 9, kind: input, shape index: {}]   ;;  %s6314_s10 = inlined_call_operand.vmem [shape: bf16[32,64], index: 10, kind: input, shape index: {}]   ;;  %s6315_s11 = inlined_call_operand.hbm [shape: f32[1,64], index: 11, kind: input, shape index: {}]   ;;  %s6316_s12 = inlined_call_operand.hbm [shape: bf16[32,32], index: 12, kind: input, shape index: {}]   ;;  %s6317_s13 = inlined_call_operand.hbm [shape: f32[1,32], index: 13, kind: input, shape index: {}]   ;;  %s6318_s14 = inlined_call_operand.vmem [shape: bf16[32,64], index: 14, kind: input, shape index: {}]   ;;  %s6319_s15 = inlined_call_operand.vmem [shape: f32[1,64], index: 15, kind: input, shape index: {}]   ;;  %s6320_s16 = inlined_call_operand.vmem [shape: bf16[64,32], index: 16, kind: input, shape index: {}]   ;;  %s6321_s17 = inlined_call_operand.vmem [shape: f32[1,32], index: 17, kind: input, shape index: {}]   ;;  %s6322_s18 = inlined_call_operand.vmem [shape: f32[1,32], index: 18, kind: input, shape index: {}]   ;;  %s6323_s19 = inlined_call_operand.vmem [shape: f32[1,32], index: 19, kind: input, shape index: {}]   ;;  %s6324_s20 = inlined_call_operand.vmem [shape: f32[1,32], index: 20, kind: input, shape index: {}]   ;;  %s6325_s21 = inlined_call_operand.vmem [shape: f32[1,32], index: 21, kind: input, shape index: {}]   ;;  %s6326_s22 = inlined_call_operand.vmem [shape: f32[1,32], index: 22, kind: input, shape index: {}]   ;;  %s6327_s23 = inlined_call_operand.vmem [shape: f32[1,32], index: 23, kind: input, shape index: {}]   ;;  %s6328_s24 = inlined_call_operand.vmem [shape: f32[1,32], index: 24, kind: input, shape index: {}]   ;;  %s6329_s25 = inlined_call_operand.vmem [shape: f32[1,32], index: 25, kind: input, shape index: {}]   ;;  %s6330_s26 = inlined_call_operand.hbm [shape: f32[2,8,32], index: 26, kind: output, shape index: {}]  }
   0x1   :  { %6355 = sst [smem:[#allocation33_spill]] %s6304_s0 }
   0x2   :  { %6356 = sst [smem:[#allocation34_spill]] %s6305_s1 }
   0x3   :  { %6357 = sst [smem:[#allocation35_spill]] %s6306_s2 }
   0x4   :  { %6358 = sst [smem:[#allocation36_spill]] %s6307_s3 }
   0x5   :  { %6359 = sst [smem:[#allocation37_spill]] %s6308_s4 }
   0x6   :  { %6360 = sst [smem:[#allocation38_spill]] %s6309_s5 }
   0x7   :  { %6361 = sst [smem:[#allocation39_spill]] %s6310_s6 }
   0x8   :  { %6362 = sst [smem:[#allocation40_spill]] %s6311_s7 }
   0x9   :  { %6363 = sst [smem:[#allocation41_spill]] %s6312_s8 }
   0xa   :  { %6364 = sst [smem:[#allocation42_spill]] %s6313_s9 }
   0xb   :  { %6365 = sst [smem:[#allocation43_spill]] %s6314_s10 }
   0xc   :  { %6366 = sst [smem:[#allocation44_spill]] %s6315_s11 }
   0xd   :  { %6367 = sst [smem:[#allocation45_spill]] %s6316_s12 }
   0xe   :  { %6368 = sst [smem:[#allocation46_spill]] %s6317_s13 }
   0xf   :  { %6369 = sst [smem:[#allocation47_spill]] %s6318_s14 }
  0x10   :  { %6370 = sst [smem:[#allocation48_spill]] %s6319_s15 }
  0x11   :  { %6371 = sst [smem:[#allocation49_spill]] %s6320_s16 }
  0x12   :  { %6372 = sst [smem:[#allocation50_spill]] %s6321_s17 }
  0x13   :  { %6373 = sst [smem:[#allocation51_spill]] %s6322_s18 }
  0x14   :  { %6374 = sst [smem:[#allocation52_spill]] %s6323_s19 }
  0x15   :  { %6375 = sst [smem:[#allocation53_spill]] %s6324_s20 }
  0x16   :  { %6376 = sst [smem:[#allocation54_spill]] %s6325_s21 }
  0x17   :  { %6377 = sst [smem:[#allocation55_spill]] %s6326_s22 }
  0x18   :  { %6378 = sst [smem:[#allocation56_spill]] %s6327_s23 }
  0x19   :  { %6379 = sst [smem:[#allocation57_spill]] %s6328_s24 }
  0x1a   :  { %6380 = sst [smem:[#allocation58_spill]] %s6329_s25 }
  0x1b   :  { %6381 = sst [smem:[#allocation59_spill]] %s6330_s26 }
  0x1c   :  { %31 = vsyncpa [#allocation5], 0 }
  0x1d   :  { %33 = vsyncpa [#allocation5 + $0x1], 0 }
  0x1e   :  { %34 = vsyncpa [#allocation8], 0 }
  0x1f   :  { %36 = vsyncpa [#allocation8 + $0x1], 0 }
  0x20   :  { %37 = vsyncpa [#allocation11], 0 }
  0x21   :  { %38 = vsyncpa [#allocation14], 0 }
  0x22   :  { %39 = vsyncpa [#allocation17], 0 }
  0x23   :  { %40 = vsyncpa [#allocation20], 0 }
  0x24   :  { %41 = vsyncpa [#allocation6], 0 }
  0x25   :  { %43 = vsyncpa [#allocation6 + $0x1], 0  ;;  %s5323_s27 = smov 0   ;;  %s5325_s3 = smov 0  }
  0x26   :  { %s5327_s7 = smov 0   ;;  %s5329_s28 = smov 0  }
  0x27   :  { %s5331_s8 = smov 0   ;;  %s5333_s4 = smov 0  }
  0x28   :  { %s5335_s29 = smov 0   ;;  %s5337_s0 = smov 0  }
  0x29 LB: > { %6382 = sst [smem:[#allocation30_spill]] %s5154_s29  ;;  %s5364_s9 = sadd.s32 4294967295, %s5158_s0   ;;  %s5158_s0 = sphi %s5337_s0, %s49_s0   ;;  %s5154_s29 = sphi %s5335_s29, %s6440_s29   ;;  %s5150_s4 = sphi %s5333_s4, %s6445_s4   ;;  %s5146_s8 = sphi %s5331_s8, %s6438_s8   ;;  %s5142_s28 = sphi %s5329_s28, %s6444_s28   ;;  %s5138_s7 = sphi %s5327_s7, %s6443_s7   ;;  %s5134_s3 = sphi %s5325_s3, %s6442_s3   ;;  %s5130_s27 = sphi %s5323_s27, %s6441_s27  }
  0x2a   : > { %p4202_p0 = scmp.ge.s32.totalorder %s5158_s0, 1  ;;  %p6342_p1 = scmp.eq.s32.totalorder %s5364_s9, 0 }
  0x2b   : > { %p658_p2 = scmp.lt.s32.totalorder %s5158_s0, 5  ;;  %s5160_s2 = smov [#allocation9]  }
  0x2c   : > { %s670_s5 = sshll.u32 %s5160_s2, 4  ;;  %s5161_s6 = smov [#allocation10]   ;;  %s5373_s5 = int_to_ptr.vmem [resolvable:$true] %s670_s5 }
  0x2d   : > { %p5369_p3 = pnand %p4202_p0, %p658_p2  ;;  %s686_s1 = sshll.u32 %s5161_s6, 4  ;;  %s5383_s1 = int_to_ptr.vmem [resolvable:$true] %s686_s1 }
  0x2e   : > { %s5162_s26 = smov [#allocation13]   ;;  %s6385_s2 = sld [smem:[#allocation37_spill]] }
  0x2f   : > { %s6383_s30 = scalar_select %p5369_p3, 1, 0 }
  0x30   : > { %p4553_p4 = pneg %p5369_p3  ;;  %s5385_s25 = sshll.u32 %s5162_s26, 4  ;;  %s711_s25 = int_to_ptr.vmem [resolvable:$true] %s5385_s25 }
  0x32   : > { %p5379_p5 = pnand %p4553_p4, %p6342_p1 }
  0x34   : > { %s4752_s22 = scalar_lea.hbm %s6385_s2, 256  ;;  %p5395_p7 = pneg %p5379_p5 }
  0x35   : > { %p4753_p6 = scmp.ne.s32.totalorder %s6385_s2, %s4752_s22  ;;  %p4759_p10 = scmp.lt.u32.totalorder %s4752_s22, %s6385_s2 }
  0x37   : > { %p4755_p8 = pnand %p5395_p7, %p4753_p6 }
  0x39   : > { %p4756_p9 = pneg %p4755_p8 }
  0x3b   : > { %p4761_p11 = pnand %p4759_p10, %p4756_p9 }
  0x3d   : > { %4764 = shalt.err (!%p4761_p11)
}
  0x3e   : > { %s4765_s15 = scalar_lea.vmem %s5373_s5, 256  ;;  %p4773_p2 = scmp.lt.s32.totalorder %s5373_s5, %s5373_s5 }
  0x3f   : > { %p4766_p12 = scmp.ne.s32.totalorder %s5373_s5, %s4765_s15  ;;  %p4774_p4 = scmp.lt.s32.totalorder %s4765_s15, %s4765_s15 }
  0x41   : > { %p4768_p13 = pnand %p4766_p12, %p5395_p7  ;;  %p4775_p6 = por %p4774_p4, %p4773_p2 }
  0x43   : > { %p4769_p0 = pneg %p4768_p13 }
  0x45   : > { %p4776_p8 = pnand %p4775_p6, %p4769_p0 }
  0x47   : > { %4779 = shalt.err (!%p4776_p8)
}
  0x48   : > { %s6346_s17 = smov 64   ;;  %s6347_s22 = smov 4  }
  0x49   : > { %4556 = dma.hbm_to_vmem [thread:$0]  (!%p5379_p5), %s6385_s2, 256, %s5373_s5, [#allocation8], %s6346_s17, %s6346_s17, %s6347_s22  }
  0x4a   : > { %s6387_s20 = sld [smem:[#allocation39_spill]] }
  0x50   : > { %s4780_s15 = scalar_lea.hbm %s6387_s20, 256 }
  0x51   : > { %p4781_p9 = scmp.ne.s32.totalorder %s6387_s20, %s4780_s15  ;;  %p4787_p12 = scmp.lt.u32.totalorder %s4780_s15, %s6387_s20 }
  0x53   : > { %p4783_p10 = pnand %p4781_p9, %p5395_p7 }
  0x55   : > { %p4784_p11 = pneg %p4783_p10 }
  0x57   : > { %p4789_p13 = pnand %p4787_p12, %p4784_p11 }
  0x59   : > { %4792 = shalt.err (!%p4789_p13)
}
  0x5a   : > { %s4793_s5 = scalar_lea.vmem %s5383_s1, 256  ;;  %p4801_p6 = scmp.lt.s32.totalorder %s5383_s1, %s5383_s1 }
  0x5b   : > { %p4794_p0 = scmp.ne.s32.totalorder %s5383_s1, %s4793_s5  ;;  %p4802_p8 = scmp.lt.s32.totalorder %s4793_s5, %s4793_s5 }
  0x5d   : > { %p4796_p2 = pnand %p4794_p0, %p5395_p7  ;;  %p4803_p9 = por %p4802_p8, %p4801_p6 }
  0x5f   : > { %p4797_p4 = pneg %p4796_p2 }
  0x61   : > { %p4804_p10 = pnand %p4803_p9, %p4797_p4 }
  0x63   : > { %4807 = shalt.err (!%p4804_p10)
}
  0x64   : > { %4559 = dma.hbm_to_vmem [thread:$0]  (!%p5379_p5), %s6387_s20, 256, %s5383_s1, [#allocation11], %s6346_s17, %s6346_s17, %s6347_s22  }
  0x65   : > { %s6388_s23 = sld [smem:[#allocation41_spill]] }
  0x6b   : > { %s4808_s24 = scalar_lea.hbm %s6388_s23, 256 }
  0x6c   : > { %p4809_p11 = scmp.ne.s32.totalorder %s6388_s23, %s4808_s24  ;;  %p4815_p0 = scmp.lt.u32.totalorder %s4808_s24, %s6388_s23 }
  0x6e   : > { %p4811_p12 = pnand %p4809_p11, %p5395_p7 }
  0x70   : > { %p4812_p13 = pneg %p4811_p12 }
  0x72   : > { %p4817_p2 = pnand %p4815_p0, %p4812_p13 }
  0x74   : > { %4820 = shalt.err (!%p4817_p2)
}
  0x75   : > { %s4821_s14 = scalar_lea.vmem %s711_s25, 256  ;;  %p4829_p9 = scmp.lt.s32.totalorder %s711_s25, %s711_s25 }
  0x76   : > { %p4822_p4 = scmp.ne.s32.totalorder %s711_s25, %s4821_s14  ;;  %p4830_p10 = scmp.lt.s32.totalorder %s4821_s14, %s4821_s14 }
  0x78   : > { %p4824_p6 = pnand %p4822_p4, %p5395_p7  ;;  %p4831_p1 = por %p4830_p10, %p4829_p9 }
  0x7a   : > { %p4825_p8 = pneg %p4824_p6 }
  0x7c   : > { %p4832_p3 = pnand %p4831_p1, %p4825_p8 }
  0x7e   : > { %4835 = shalt.err (!%p4832_p3)
}
  0x7f   : > { %4565 = dma.hbm_to_vmem [thread:$0]  (!%p5379_p5), %s6388_s23, 256, %s711_s25, [#allocation14], %s6346_s17, %s6346_s17, %s6347_s22  }
  0x80   : > { %s5165_s18 = smov [#allocation16]   ;;  %s5166_s24 = smov [#allocation12]  }
  0x81   : > { %s738_s19 = sshll.u32 %s5165_s18, 4  ;;  %s700_s6 = sshll.u32 %s5166_s24, 4  ;;  %s739_s19 = int_to_ptr.vmem [resolvable:$true] %s738_s19  ;;  %s701_s6 = int_to_ptr.vmem [resolvable:$true] %s700_s6 }
  0x82   : > { %s6389_s11 = sld [smem:[#allocation44_spill]] }
  0x88   : > { %s4836_s5 = scalar_lea.hbm %s6389_s11, 16 }
  0x89   : > { %p4837_p1 = scmp.ne.s32.totalorder %s6389_s11, %s4836_s5  ;;  %p4843_p12 = scmp.lt.u32.totalorder %s4836_s5, %s6389_s11 }
  0x8b   : > { %p4839_p3 = pnand %p4837_p1, %p5395_p7 }
  0x8d   : > { %p4840_p11 = pneg %p4839_p3 }
  0x8f   : > { %p4845_p13 = pnand %p4843_p12, %p4840_p11 }
  0x91   : > { %4848 = shalt.err (!%p4845_p13)
}
  0x92   : > { %s4849_s25 = scalar_lea.vmem %s739_s19, 16  ;;  %s4856_s16 = scalar_lea.vmem %s739_s19, 32 }
  0x93   : > { %p4850_p0 = scmp.ne.s32.totalorder %s739_s19, %s4849_s25  ;;  %p4857_p6 = scmp.lt.s32.totalorder %s739_s19, %s739_s19 }
  0x94   : > { %p4858_p8 = scmp.lt.s32.totalorder %s4856_s16, %s4849_s25 }
  0x95   : > { %p4852_p2 = pnand %p4850_p0, %p5395_p7 }
  0x96   : > { %p4859_p9 = por %p4858_p8, %p4857_p6 }
  0x97   : > { %p4853_p4 = pneg %p4852_p2 }
  0x99   : > { %p4860_p10 = pnand %p4859_p9, %p4853_p4 }
  0x9b   : > { %4863 = shalt.err (!%p4860_p10)
}
  0x9c   : > { %4571 = dma.hbm_to_vmem [thread:$0]  (!%p5379_p5), %s6389_s11, 16, %s739_s19, [#allocation17]  }
  0x9d   : > { %s6390_s26 = sld [smem:[#allocation40_spill]] }
  0xa3   : > { %s4864_s15 = scalar_lea.hbm %s6390_s26, 16 }
  0xa4   : > { %p4865_p1 = scmp.ne.s32.totalorder %s6390_s26, %s4864_s15  ;;  %p4871_p12 = scmp.lt.u32.totalorder %s4864_s15, %s6390_s26 }
  0xa6   : > { %p4867_p3 = pnand %p4865_p1, %p5395_p7 }
  0xa8   : > { %p4868_p11 = pneg %p4867_p3 }
  0xaa   : > { %p4873_p13 = pnand %p4871_p12, %p4868_p11 }
  0xac   : > { %4876 = shalt.err (!%p4873_p13)
}
  0xad   : > { %s4877_s16 = scalar_lea.vmem %s701_s6, 16  ;;  %s4884_s19 = scalar_lea.vmem %s701_s6, 32 }
  0xae   : > { %p4878_p0 = scmp.ne.s32.totalorder %s701_s6, %s4877_s16  ;;  %p4885_p6 = scmp.lt.s32.totalorder %s701_s6, %s701_s6 }
  0xaf   : > { %p4886_p8 = scmp.lt.s32.totalorder %s4884_s19, %s4877_s16 }
  0xb0   : > { %p4880_p2 = pnand %p4878_p0, %p5395_p7 }
  0xb1   : > { %p4887_p9 = por %p4886_p8, %p4885_p6 }
  0xb2   : > { %p4881_p4 = pneg %p4880_p2 }
  0xb4   : > { %p4888_p10 = pnand %p4887_p9, %p4881_p4 }
  0xb6   : > { %4891 = shalt.err (!%p4888_p10)
}
  0xb7   : > { %4562 = dma.hbm_to_vmem [thread:$0]  (!%p5379_p5), %s6390_s26, 16, %s701_s6, [#allocation11]  }
  0xb8   : > { %s5167_s20 = smov [#allocation15]   ;;  %s5168_s15 = smov [#allocation18]  }
  0xb9   : > { %s724_s24 = sshll.u32 %s5167_s20, 4  ;;  %s748_s5 = sshll.u32 %s5168_s15, 4  ;;  %s725_s24 = int_to_ptr.vmem [resolvable:$true] %s724_s24  ;;  %s749_s5 = int_to_ptr.vmem [resolvable:$true] %s748_s5 }
  0xba   : > { %s6391_s25 = sld [smem:[#allocation42_spill]] }
  0xc0   : > { %s4892_s17 = scalar_lea.hbm %s6391_s25, 16 }
  0xc1   : > { %p4893_p1 = scmp.ne.s32.totalorder %s6391_s25, %s4892_s17  ;;  %p4899_p12 = scmp.lt.u32.totalorder %s4892_s17, %s6391_s25 }
  0xc3   : > { %p4895_p3 = pnand %p4893_p1, %p5395_p7 }
  0xc5   : > { %p4896_p11 = pneg %p4895_p3 }
  0xc7   : > { %p4901_p13 = pnand %p4899_p12, %p4896_p11 }
  0xc9   : > { %4904 = shalt.err (!%p4901_p13)
}
  0xca   : > { %s4905_s6 = scalar_lea.vmem %s725_s24, 16  ;;  %s4912_s18 = scalar_lea.vmem %s725_s24, 32 }
  0xcb   : > { %p4906_p0 = scmp.ne.s32.totalorder %s725_s24, %s4905_s6  ;;  %p4913_p6 = scmp.lt.s32.totalorder %s725_s24, %s725_s24 }
  0xcc   : > { %p4914_p8 = scmp.lt.s32.totalorder %s4912_s18, %s4905_s6 }
  0xcd   : > { %p4908_p2 = pnand %p4906_p0, %p5395_p7 }
  0xce   : > { %p4915_p9 = por %p4914_p8, %p4913_p6 }
  0xcf   : > { %p4909_p4 = pneg %p4908_p2 }
  0xd1   : > { %p4916_p10 = pnand %p4915_p9, %p4909_p4 }
  0xd3   : > { %4919 = shalt.err (!%p4916_p10)
}
  0xd4   : > { %4568 = dma.hbm_to_vmem [thread:$0]  (!%p5379_p5), %s6391_s25, 16, %s725_s24, [#allocation14]  }
  0xd5   : > { %s6392_s12 = sld [smem:[#allocation45_spill]] }
  0xdb   : > { %s4920_s14 = scalar_lea.hbm %s6392_s12, 256 }
  0xdc   : > { %p4921_p1 = scmp.ne.s32.totalorder %s6392_s12, %s4920_s14  ;;  %p4927_p12 = scmp.lt.u32.totalorder %s4920_s14, %s6392_s12 }
  0xde   : > { %p4923_p3 = pnand %p4921_p1, %p5395_p7 }
  0xe0   : > { %p4924_p11 = pneg %p4923_p3 }
  0xe2   : > { %p4929_p13 = pnand %p4927_p12, %p4924_p11 }
  0xe4   : > { %4932 = shalt.err (!%p4929_p13)
}
  0xe5   : > { %s4933_s6 = scalar_lea.vmem %s749_s5, 256  ;;  %p4941_p6 = scmp.lt.s32.totalorder %s749_s5, %s749_s5 }
  0xe6   : > { %p4934_p0 = scmp.ne.s32.totalorder %s749_s5, %s4933_s6  ;;  %p4942_p8 = scmp.lt.s32.totalorder %s4933_s6, %s4933_s6 }
  0xe8   : > { %p4936_p2 = pnand %p4934_p0, %p5395_p7  ;;  %p4943_p9 = por %p4942_p8, %p4941_p6 }
  0xea   : > { %p4937_p4 = pneg %p4936_p2 }
  0xec   : > { %p4944_p10 = pnand %p4943_p9, %p4937_p4 }
  0xee   : > { %4947 = shalt.err (!%p4944_p10)
}
  0xef   : > { %s6393_s24 = smov 4   ;;  %s6394_s18 = smov 64  }
  0xf0   : > { %4574 = dma.hbm_to_vmem [thread:$0]  (!%p5379_p5), %s6392_s12, 256, %s749_s5, [#allocation17], %s6394_s18, %s6394_s18, %s6393_s24  }
  0xf1   : > { %s5169_s17 = smov [#allocation19]   ;;  %s6395_s13 = sld [smem:[#allocation46_spill]] }
  0xf2   : > { %s762_s22 = sshll.u32 %s5169_s17, 4  ;;  %s763_s22 = int_to_ptr.vmem [resolvable:$true] %s762_s22 }
  0xf7   : > { %s4948_s16 = scalar_lea.hbm %s6395_s13, 16 }
  0xf8   : > { %p4949_p1 = scmp.ne.s32.totalorder %s6395_s13, %s4948_s16  ;;  %p4955_p12 = scmp.lt.u32.totalorder %s4948_s16, %s6395_s13 }
  0xfa   : > { %p4951_p3 = pnand %p4949_p1, %p5395_p7 }
  0xfc   : > { %p4952_p11 = pneg %p4951_p3 }
  0xfe   : > { %p4957_p13 = pnand %p4955_p12, %p4952_p11 }
 0x100   : > { %4960 = shalt.err (!%p4957_p13)
}
 0x101   : > { %s4961_s5 = scalar_lea.vmem %s763_s22, 16  ;;  %s4968_s24 = scalar_lea.vmem %s763_s22, 32 }
 0x102   : > { %p4962_p0 = scmp.ne.s32.totalorder %s763_s22, %s4961_s5  ;;  %p4969_p6 = scmp.lt.s32.totalorder %s763_s22, %s763_s22 }
 0x103   : > { %p4970_p8 = scmp.lt.s32.totalorder %s4968_s24, %s4961_s5 }
 0x104   : > { %p4964_p2 = pnand %p4962_p0, %p5395_p7 }
 0x105   : > { %p4971_p9 = por %p4970_p8, %p4969_p6 }
 0x106   : > { %p4965_p4 = pneg %p4964_p2 }
 0x108   : > { %p4972_p10 = pnand %p4971_p9, %p4965_p4 }
 0x10a   : > { %4975 = shalt.err (!%p4972_p10)
}
 0x10b   : > { %4577 = dma.hbm_to_vmem [thread:$0]  (!%p5379_p5), %s6395_s13, 16, %s763_s22, [#allocation20]  }
 0x10c   : > { %s4201_s11 = sadd.s32 4294967294, %s5158_s0   ;;  %s58_s21 = sadd.s32 1, %s5150_s4 }
 0x10d   : > { %p59_p7 = scmp.ge.s32.totalorder %s58_s21, 2  ;;  %s61_s10 = sadd.s32 1, %s5154_s29 }
 0x10e   : > { %s120_s15 = sadd.s32 1, %s5138_s7  ;;  %p127_p1 = scmp.ne.s32.totalorder %s5138_s7, %s5134_s3 }
 0x10f   : > { %s6447_s21 = smov (%p59_p7, %s58_s21), 0  ;;  %s6449_s10 = smov (!%p59_p7, %s61_s10), %s5154_s29 }
 0x110   : > { %6396 = sst [smem:[#allocation31_spill]] %s6447_s21  ;;  %p128_p3 = scmp.eq.s32.totalorder %s5158_s0, 0 }
 0x111   : > { %p133_p11 = scmp.ne.s32.totalorder %s5134_s3, %s5130_s27  ;;  %p63_p12 = scmp.ge.s32.totalorder %s6449_s10, 2 }
 0x112   : > { %p645_p13 = scmp.eq.s32.totalorder %s5364_s9, 3  ;;  %p5573_p0 = por %p128_p3, %p127_p1 }
 0x113   : > { %p6398_p5 = scmp.eq.s32.totalorder %s5364_s9, 0  ;;  %s6451_s10 = smov (%p63_p12, %s6449_s10), 0 }
 0x114   : > { %6400 = sst [smem:[#allocation32_spill]] %s6451_s10  ;;  %p5585_p4 = por %p645_p13, %p127_p1 }
 0x115   : > { %p5579_p2 = por %p6398_p5, %p133_p11  ;;  %p651_p6 = scmp.eq.s32.totalorder %s4201_s11, 3 }
 0x116   : > { %s6401_s14 = scalar_select %p5585_p4, 1, 0 }
 0x117   : > { %s6399_s22 = scalar_select %p5579_p2, 1, 0 }
 0x118   : > { %s117_s1 = ssub.s32 %s5154_s29, %s6451_s10  ;;  %p4597_p8 = scmp.lt.s32.totalorder %s5158_s0, 4 }
 0x119   : > { %p118_p9 = scmp.eq.s32.totalorder %s117_s1, 0  ;;  %p5592_p10 = por %p651_p6, %p133_p11 }
 0x11a   : > { %s824_s19 = sand.u32 1, %s5138_s7   ;;  %s4213_s2 = sshll.u32 %s5154_s29, 7 }
 0x11b   : > { %s6402_s16 = scalar_select %p5592_p10, 1, 0 }
 0x11c   : > { %s5599_s6 = scalar_select %p118_p9, %s5138_s7, %s120_s15  }
 0x11d   : > { %s5601_s5 = sshll.u32 %s824_s19, 3  ;;  %s6403_s20 = sld [smem:[#allocation35_spill]] }
 0x11e   : > { %s828_s11 = scalar_lea.vmem [#allocation4], %s5601_s5  ;;  %p5611_p7 = pnand %p4597_p8, %p5573_p0 }
 0x11f   : > { %s835_s1 = sshll.u32 %s828_s11, 4  ;;  %s6405_s18 = sld [smem:[#allocation36_spill]]  ;;  %s5615_s1 = int_to_ptr.vmem [resolvable:$true] %s835_s1 }
 0x120   : > { %s825_s25 = scalar_lea.sflag [#allocation5], %s824_s19  ;;  %p4978_p3 = pneg %p5611_p7 }
 0x123   : > { %s5606_s12 = scalar_lea.hbm %s6403_s20, %s4213_s2  ;;  %s4981_s10 = scalar_lea.hbm %s6403_s20, 256 }
 0x124   : > { %s4976_s26 = scalar_lea.hbm %s5606_s12, 128  ;;  %p4982_p13 = scmp.lt.u32.totalorder %s5606_s12, %s6403_s20 }
 0x125   : > { %s5620_s23 = scalar_lea.hbm %s6405_s18, %s4213_s2  ;;  %p4977_p1 = scmp.ne.s32.totalorder %s5606_s12, %s4976_s26 }
 0x126   : > { %p4983_p0 = scmp.lt.u32.totalorder %s4981_s10, %s4976_s26  ;;  %p4985_p6 = scmp.lt.u32.totalorder %s4976_s26, %s5606_s12 }
 0x127   : > { %p4979_p11 = pnand %p4978_p3, %p4977_p1 }
 0x128   : > { %p4984_p5 = por %p4983_p0, %p4982_p13 }
 0x129   : > { %p4980_p12 = pneg %p4979_p11 }
 0x12a   : > { %p4986_p8 = por %p4985_p6, %p4984_p5 }
 0x12c   : > { %p4987_p9 = pnand %p4986_p8, %p4980_p12 }
 0x12e   : > { %4990 = shalt.err (!%p4987_p9)
}
 0x12f   : > { %s4991_s19 = scalar_lea.vmem %s5615_s1, 128  ;;  %s5170_s2 = smov [#allocation4]  }
 0x130   : > { %p4992_p1 = scmp.ne.s32.totalorder %s5615_s1, %s4991_s19  ;;  %s4996_s15 = sshll.u32 %s5170_s2, 4  ;;  %s4997_s15 = int_to_ptr.vmem [resolvable:$false] %s4996_s15 }
 0x131   : > { %s4998_s29 = scalar_lea.vmem %s4997_s15, 256  ;;  %p4999_p4 = scmp.lt.s32.totalorder %s5615_s1, %s4997_s15 }
 0x132   : > { %p4994_p11 = pnand %p4992_p1, %p4978_p3  ;;  %p5000_p13 = scmp.lt.s32.totalorder %s4998_s29, %s4991_s19 }
 0x134   : > { %p4995_p10 = pneg %p4994_p11  ;;  %p5001_p0 = por %p5000_p13, %p4999_p4 }
 0x136   : > { %p5002_p5 = pnand %p5001_p0, %p4995_p10 }
 0x138   : > { %5005 = shalt.err (!%p5002_p5)
}
 0x139   : > { %4581 = dma.hbm_to_vmem [thread:$0]  (!%p5611_p7), %s5606_s12, 128, %s5615_s1, %s825_s25  }
 0x13a   : > { %s842_s26 = sand.u32 1, %s5158_s0   ;;  %s846_s21 = scalar_lea.vmem [#allocation7], %s5601_s5 }
 0x13b   : > { %s853_s10 = sshll.u32 %s846_s21, 4  ;;  %s843_s24 = scalar_lea.sflag [#allocation8], %s842_s26  ;;  %s854_s10 = int_to_ptr.vmem [resolvable:$true] %s853_s10 }
 0x13c   : > { %s5006_s17 = scalar_lea.hbm %s5620_s23, 128  ;;  %s5011_s2 = scalar_lea.hbm %s6405_s18, 256 }
 0x13d   : > { %p5007_p4 = scmp.ne.s32.totalorder %s5620_s23, %s5006_s17  ;;  %p5012_p6 = scmp.lt.u32.totalorder %s5620_s23, %s6405_s18 }
 0x13e   : > { %p5013_p8 = scmp.lt.u32.totalorder %s5011_s2, %s5006_s17  ;;  %p5015_p1 = scmp.lt.u32.totalorder %s5006_s17, %s5620_s23 }
 0x13f   : > { %p5009_p10 = pnand %p5007_p4, %p4978_p3 }
 0x140   : > { %p5014_p9 = por %p5013_p8, %p5012_p6 }
 0x141   : > { %p5010_p12 = pneg %p5009_p10 }
 0x142   : > { %p5016_p11 = por %p5015_p1, %p5014_p9 }
 0x144   : > { %p5017_p13 = pnand %p5016_p11, %p5010_p12 }
 0x146   : > { %5020 = shalt.err (!%p5017_p13)
}
 0x147   : > { %s5021_s12 = scalar_lea.vmem %s854_s10, 128  ;;  %s5171_s25 = smov [#allocation7]  }
 0x148   : > { %p5022_p0 = scmp.ne.s32.totalorder %s854_s10, %s5021_s12  ;;  %s5026_s5 = sshll.u32 %s5171_s25, 4  ;;  %s5027_s5 = int_to_ptr.vmem [resolvable:$false] %s5026_s5 }
 0x149   : > { %s5028_s1 = scalar_lea.vmem %s5027_s5, 256  ;;  %p5029_p10 = scmp.lt.s32.totalorder %s854_s10, %s5027_s5 }
 0x14a   : > { %p5024_p5 = pnand %p5022_p0, %p4978_p3  ;;  %p5030_p2 = scmp.lt.s32.totalorder %s5028_s1, %s5021_s12 }
 0x14c   : > { %p5025_p4 = pneg %p5024_p5  ;;  %p5031_p6 = por %p5030_p2, %p5029_p10 }
 0x14e   : > { %p5032_p8 = pnand %p5031_p6, %p5025_p4 }
 0x150   : > { %5035 = shalt.err (!%p5032_p8)
}
 0x151   : > { %4584 = dma.hbm_to_vmem [thread:$0]  (!%p5611_p7), %s5620_s23, 128, %s854_s10, %s843_s24  }
 0x152   : > { %p6406_p12 = scmp.ne.s32.totalorder %s6383_s30, 0 }
 0x153   : > { %s5671_s26 = sand.u32 (!%p6406_p12), 1, %s5134_s3   ;;  %p6407_p2 = scmp.ne.s32.totalorder (!%p6406_p12), %s6399_s22, 0 }
 0x154   : > { %862 = sbr.rel (%p6406_p12) target bundleno = 5434 (0x153a), region = 124  ;;  %s5674_s21 = sshll.u32 (!%p6406_p12), %s5671_s26, 3 }
 0x155   : > { %s865_s17 = scalar_lea.sflag (!%p6406_p12), [#allocation5], %s5671_s26  ;;  %s868_s11 = scalar_lea.vmem (!%p6406_p12), [#allocation4], %s5674_s21 }
 0x15b   : > { %5097 = dma.done.wait (%p6407_p2), %s865_s17, 128  }
 0x15c   : > { %5099 = vsyncadd (%p6407_p2), %s865_s17, 4294967168  ;;  %s873_s13 = sand.u32 1, %s5364_s9  }
 0x15d   : > { %s874_s30 = scalar_lea.sflag [#allocation8], %s873_s13 }
 0x15e   : > { %5101 = dma.done.wait (%p6407_p2), %s874_s30, 128  }
 0x15f   : > { %5103 = vsyncadd (%p6407_p2), %s874_s30, 4294967168  ;;  %p6408_p7 = scmp.eq.s32.totalorder %s5364_s9, 0 }
 0x161   : > { %5105 = dma.done.wait (%p6408_p7), [#allocation8], 256   ;;  %p6409_p3 = pmov %p6408_p7 }
 0x163   : > { %5107 = vsyncadd (%p6409_p3), [#allocation8], 4294967040  ;;  %p6410_p9 = pmov %p6409_p3 }
 0x164   : > { %p6411_p1 = pmov %p6409_p3 }
 0x165   : > { %5109 = dma.done.wait (%p6410_p9), [#allocation11], 272  }
 0x166   : > { %5111 = vsyncadd (%p6411_p1), [#allocation11], 4294967024  ;;  %p6412_p11 = pmov %p6411_p1 }
 0x167   : > { %p6413_p13 = pmov %p6411_p1 }
 0x168   : > { %5113 = dma.done.wait (%p6412_p11), [#allocation14], 272  }
 0x169   : > { %5115 = vsyncadd (%p6413_p13), [#allocation14], 4294967024  ;;  %p6414_p0 = pmov %p6411_p1 }
 0x16b   : > { %5117 = dma.done.wait (%p6414_p0), [#allocation17], 272   ;;  %p6415_p5 = pmov %p6414_p0 }
 0x16c   : > { %p6416_p4 = pmov %p6414_p0 }
 0x16d   : > { %5119 = vsyncadd (%p6415_p5), [#allocation17], 4294967024 }
 0x16e   : > { %5121 = dma.done.wait (%p6416_p4), [#allocation20], 16   ;;  %p6417_p10 = pmov %p6414_p0 }
 0x16f   : > { %p992_p6 = scmp.lt.s32.totalorder %s5146_s8, 1  ;;  %s6418_s15 = sld [smem:[#allocation33_spill]] }
 0x170   : > { %5123 = vsyncadd (%p6417_p10), [#allocation20], 4294967280  ;;  %s6419_s5 = sld [smem:[#allocation34_spill]]  ;;  %s991_s17 = scalar_lea.vmem [#allocation21], %s5674_s21 }
 0x171   : > { %s993_s22 = scalar_select %p992_p6, %s5146_s8, 1 }
 0x172   : > { %p4231_p8 = scmp.ne.s32.totalorder %s5142_s28, 0 }
 0x173   : > { %s4228_s10 = sshll.u32 %s993_s22, 3  ;;  %s4303_s24 = sshll.u32 %s993_s22, 4  ;;  %v5172_v1 = vmov (!%p4231_p8), 0.0   ;;  %vm5173_vm0 = vmmov (!%p4231_p8), 0   ;;  %vm1007_vm1 = vcmask (!%p4231_p8), 261120   ;;  %vm1080_vm2 = vcmask (!%p4231_p8), 523264  }
 0x174   : > { %1005 = sbr.rel (%p4231_p8) target bundleno = 605 (0x25d), region = 168  ;;  %s6420_s30 = sld [smem:[#allocation43_spill]] (!%p4231_p8)  ;;  %4359 = vmatprep.subr.bf16.mxu0 (!%p4231_p8), %v5172_v1  ;;  %4363 = vmatprep.mubr.msk.bf16.mxu0 (!%p4231_p8), %vm5173_vm0, %v5172_v1  ;;  %v4232_v7 = vld [vmem:[#allocation16] ss:$0 sm:$0xff] (!%p4231_p8) }
 0x175   : > { %s995_s29 = scalar_lea.vmem %s6418_s15, %s4228_s10 }
 0x176   : > { %s1000_s1 = scalar_lea.vmem %s6419_s5, %s4303_s24  ;;  %v1006_v3 = vld [vmem:[%s995_s29] sm:$0xff] (!%p4231_p8) }
 0x177   : > { %v1009_v4 = vld [vmem:[%s1000_s1] sm:$0xff] (!%p4231_p8)  ;;  %v1010_v5 = vld [vmem:[%s1000_s1 + $0x8] sm:$0xff] (!%p4231_p8)  ;;  %1008 = vst.msk [vmem:[#allocation2] sm:$0xff] (!%p4231_p8), %vm1007_vm1, %v1006_v3 }
 0x178   : > { %v1011_v6 = vpack.c.bf16 (!%p4231_p8), %v1010_v5, %v1009_v4 }
 0x17a   : > { %v4696_v0 = vld [vmem:[%s6420_s30] sm:$0xff] (!%p4231_p8)   ;;  %v4697_v2 = vld [vmem:[%s6420_s30 + $0x8] sm:$0xff] (!%p4231_p8)  }
 0x17b   : > { %4360 = vmatpush3.bf16.msra.mxu0 %v4696_v0 }
 0x17c   : > { %4361 = vmatprep.subr.bf16.mxu0 %v5172_v1 }
 0x17f   : > { %4362 = vmatpush3.bf16.msra.mxu0 %v4697_v2 }
 0x182   : > { %4364 = vmatmul.mubr.msk.bf16.vlgmr.msra.gmra.mrb[0].mxu0 %vm1007_vm1, %v1011_v6 }
 0x255   : > { %v1072_v8 = vpop.f32.mrb[0].mxu0 }
 0x256   : > { %v4365_v9 = vpop.f32.mrb[1].mxu0  ;;  %v1073_v11 = vadd.f32 %v4232_v7, %v1072_v8 }
 0x257   : > { %v1075_v10 = vpop.f32.mrb[2].mxu0 }
 0x258   : > { %v1076_v12 = vadd.f32 %v4232_v7, %v1075_v10  ;;  %v4366_v13 = vpop.f32.mrb[3].mxu0 }
 0x25a   : > { %v1079_v14 = vpack.c.bf16 %v1076_v12, %v1073_v11 }
 0x25c   : > { %1081 = vst.msk [vmem:[#allocation3] sm:$0xff] %vm1080_vm2, %v1079_v14 }
 0x25d PF: > { %v4698_v15 = vld [vmem:[#allocation9] sm:$0xff]   ;;  %v5174_v16 = vmov 0.0   ;;  %v4699_v17 = vld [vmem:[#allocation9 + $0x8] sm:$0xff]   ;;  %vm5175_vm3 = vmmov 0   ;;  %vm1107_vm4 = vcmask 261120   ;;  %s6421_s24 = sld [smem:[#allocation38_spill]]  ;;  %v1163_v32 = vlaneseq }
 0x25e   : > { %4367 = vmatprep.subr.bf16.mxu0 %v5174_v16  ;;  %4375 = vmatprep.subr.bf16.mxu1 %v5174_v16  ;;  %s5176_s19 = smov 104   ;;  %s5177_s2 = smov 120   ;;  %v5180_v30 = vmov 1983009808   ;;  %v5181_v35 = vmov 1934713408  }
 0x25f   : > { %4368 = vmatpush3.bf16.msra.mxu0 %v4698_v15  ;;  %4371 = vmatprep.mubr.msk.bf16.mxu0 %vm5175_vm3, %v5174_v16  ;;  %s5178_s15 = smov 96   ;;  %s5179_s29 = smov 112   ;;  %v1161_v31 = vunpack.c.l.s4 %v5180_v30  ;;  %v1164_v34 = vshrl.u32 %v1163_v32, 7  ;;  %v1178_v36 = vunpack.c.l.s4 %v5181_v35  ;;  %v5182_v54 = vmov 0  }
 0x260   : > { %v5728_v18 = vld [vmem:[#allocation2] sm:$0xff]  ;;  %4369 = vmatprep.subr.bf16.mxu0 %v5174_v16  ;;  %4377 = vmatprep.mubr.msk.bf16.mxu1 %vm5175_vm3, %v5174_v16  ;;  %vm1661_vm5 = vcmask 64512   ;;  %vm1897_vm6 = vcmask 1043456   ;;  %s5184_s12 = smov 16   ;;  %s5185_s25 = smov 8   ;;  %vm2228_vm7 = vcmask 130048  }
 0x261   : > { %v1083_v19 = vpack.c.bf16 %v5728_v18, %v5728_v18  ;;  %v1162_v33 = vunpack.c.0.s8 %v1161_v31  ;;  %v1179_v39 = vunpack.c.0.s8 %v1178_v36  ;;  %s5186_s5 = smov 24   ;;  %vm2230_vm8 = vcmask 195584   ;;  %s6422_s13 = sld [smem:[#allocation51_spill]] }
 0x262   : > { %s6423_s10 = sld [smem:[#allocation52_spill]]  ;;  %s6427_s23 = sld [smem:[#allocation53_spill]]  ;;  %vm3873_vm9 = vcmask 523264  }
 0x263   : > { %4370 = vmatpush3.bf16.msra.mxu0 %v4699_v17  ;;  %v4236_v20 = vld [vmem:[%s6421_s24] ss:$0 sm:$0xff]  ;;  %v5764_v37 = vsub.s32 %v1162_v33, %v1164_v34  ;;  %v5774_v43 = vsub.s32 %v1179_v39, %v1164_v34  ;;  %s6424_s24 = scalar_lea.vmem [#allocation7], %s5674_s21  ;;  %s6429_s9 = sld [smem:[#allocation48_spill]] }
 0x264   : > { %4381 = vmatprep.subr.bf16.mxu0 %v5174_v16  ;;  %p4296_p12 = scmp.ne.s32.totalorder %s5142_s28, 1 }
 0x265   : > { %s6433_s28 = sld [smem:[#allocation57_spill]] (!%p4296_p12) }
 0x266   : > { %4372 = vmatmul.mubr.msk.bf16.vlgmr.msra.gmra.mrb[0].mxu0 %vm1107_vm4, %v1083_v19 }
 0x267   : > { %4383 = vmatprep.mubr.msk.bf16.mxu0 %vm5175_vm3, %v5174_v16 }
 0x339   : > { %v1145_v21 = vpop.f32.mrb[0].mxu0 }
 0x33a   : > { %v1146_v22 = vadd.f32 %v4236_v20, %v1145_v21  ;;  %v4373_v23 = vpop.f32.mrb[1].mxu0 }
 0x33b   : > { %v1148_v24 = vpop.f32.mrb[2].mxu0 }
 0x33c   : > { %v5742_v25 = vpack.c.bf16 %v1146_v22, %v1146_v22  ;;  %v4374_v26 = vpop.f32.mrb[3].mxu0 }
 0x33e   : > { %1158 = vrot.lane.b32.xlu1 %v5742_v25, %s5176_s19  ;;  %1154 = vrot.lane.b32.xlu0 %v5742_v25, %s5177_s2  ;;  %v1166_v42 = vrot.slane %v5742_v25, %v5764_v37 }
 0x342   : > { %1321 = vrot.lane.b32.xlu1 %v5742_v25, %s5178_s15  ;;  %1156 = vrot.lane.b32.xlu0 %v5742_v25, %s5179_s29 }
 0x3b0   : > { %v5752_v27 = vpop.permute.xlu0 %1154  ;;  %v5756_v28 = vpop.permute.xlu1 %1158 }
 0x3b1   : > { %1323 = vrot.lane.b32.xlu0 %v5752_v27, %s5178_s15  ;;  %v1208_v38 = vrot.slane %v5756_v28, %v5764_v37  ;;  %v1200_v40 = vrot.slane %v5752_v27, %v5764_v37 }
 0x3b3   : > { %v1209_v44 = vcombine.low %v1200_v40, %v1208_v38  ;;  %v1210_v47 = vcombine.high %v1200_v40, %v1208_v38 }
 0x3b4   : > { %v5758_v29 = vpop.permute.xlu0 %1156  ;;  %v1322_v53 = vpop.permute.xlu1 %1321 }
 0x3b5   : > { %1327 = vrot.lane.b32.xlu0 %v5756_v28, %s5178_s15  ;;  %1325 = vrot.lane.b32.xlu1 %v5758_v29, %s5178_s15  ;;  %v1174_v41 = vrot.slane %v5758_v29, %v5764_v37  ;;  %v5777_v48 = vrot.slane %v1209_v44, %v5774_v43  ;;  %v5786_v51 = vrot.slane %v1210_v47, %v5774_v43 }
 0x3b6   : > { %v1336_v60 = vrot.slane %v1322_v53, %v5764_v37 }
 0x3b7   : > { %v1175_v45 = vcombine.low %v1166_v42, %v1174_v41  ;;  %v1176_v46 = vcombine.high %v1166_v42, %v1174_v41  ;;  %v1225_v55 = vcombine.high %v5777_v48, %v5182_v54  ;;  %v1226_v58 = vcombine.high %v5786_v51, %v5182_v54 }
 0x3b8   : > { %v1232_v59 = vshrl.u32 %v5777_v48, 16  ;;  %v1248_v63 = vshrl.u32 %v5786_v51, 16 }
 0x3b9   : > { %v5780_v49 = vrot.slane %v1175_v45, %v5774_v43  ;;  %v5783_v50 = vrot.slane %v1176_v46, %v5774_v43  ;;  %v1240_v4 = vshrl.u32 %v1225_v55, 16  ;;  %v1256_v8 = vshrl.u32 %v1226_v58, 16 }
 0x3bb   : > { %v1191_v56 = vcombine.high %v5780_v49, %v5182_v54  ;;  %v1192_v57 = vcombine.high %v5783_v50, %v5182_v54  ;;  %v1231_v61 = vshrl.u32 %v5780_v49, 16  ;;  %v1247_v0 = vshrl.u32 %v5783_v50, 16 }
 0x3bc   : > { %v1229_v9 = vpack.i.b16 %v5777_v48, %v5780_v49  ;;  %v1245_v48 = vpack.i.b16 %v5786_v51, %v5783_v50 }
 0x3bd   : > { %v1239_v5 = vshrl.u32 %v1191_v56, 16  ;;  %v1255_v6 = vshrl.u32 %v1192_v57, 16  ;;  %v1233_v12 = vpack.i.b16 %v1232_v59, %v1231_v61  ;;  %v1237_v13 = vpack.i.b16 %v1225_v55, %v1191_v56 }
 0x3be   : > { %v1249_v17 = vpack.i.b16 %v1248_v63, %v1247_v0  ;;  %v1253_v19 = vpack.i.b16 %v1226_v58, %v1192_v57  ;;  %v1259_v63 = vcombine.low %v1229_v9, %v1245_v48 }
 0x3bf   : > { %v1241_v22 = vpack.i.b16 %v1240_v4, %v1239_v5  ;;  %v1257_v23 = vpack.i.b16 %v1256_v8, %v1255_v6 }
 0x3c0   : > { %v1267_v58 = vcombine.low %v1237_v13, %v1253_v19  ;;  %v1284_v61 = vcombine.low %v1233_v12, %v1249_v17  ;;  %v1266_v8 = vrot.slane %v1259_v63, %v5764_v37 }
 0x3c1   : > { %v1292_v57 = vcombine.low %v1241_v22, %v1257_v23 }
 0x3c2   : > { %v1274_v4 = vrot.slane %v1267_v58, %v5764_v37  ;;  %v1291_v6 = vrot.slane %v1284_v61, %v5764_v37 }
 0x3c3   : > { %v1299_v51 = vrot.slane %v1292_v57, %v5764_v37 }
 0x423   : > { %v1324_v52 = vpop.permute.xlu0 %1323 }
 0x424   : > { %v1370_v1 = vrot.slane %v1324_v52, %v5764_v37 }
 0x427   : > { %v1328_v62 = vpop.permute.xlu0 %1327  ;;  %v1326_v2 = vpop.permute.xlu1 %1325 }
 0x428   : > { %v1378_v3 = vrot.slane %v1328_v62, %v5764_v37  ;;  %v1344_v7 = vrot.slane %v1326_v2, %v5764_v37 }
 0x42a   : > { %v1379_v10 = vcombine.low %v1370_v1, %v1378_v3  ;;  %v1380_v11 = vcombine.high %v1370_v1, %v1378_v3  ;;  %v1345_v14 = vcombine.low %v1336_v60, %v1344_v7  ;;  %v1346_v15 = vcombine.high %v1336_v60, %v1344_v7 }
 0x42c   : > { %v1387_v20 = vrot.slane %v1379_v10, %v5774_v43  ;;  %v1394_v21 = vrot.slane %v1380_v11, %v5774_v43  ;;  %v1353_v24 = vrot.slane %v1345_v14, %v5774_v43  ;;  %v1360_v26 = vrot.slane %v1346_v15, %v5774_v43 }
 0x42d   : > { %v1300_v10 = vcombine.low %v1291_v6, %v1299_v51  ;;  %v1275_v11 = vcombine.low %v1266_v8, %v1274_v4 }
 0x42e   : > { %v1395_v30 = vcombine.high %v1387_v20, %v5182_v54  ;;  %v1396_v31 = vcombine.high %v1394_v21, %v5182_v54  ;;  %v1402_v32 = vshrl.u32 %v1387_v20, 16  ;;  %v1418_v33 = vshrl.u32 %v1394_v21, 16 }
 0x42f   : > { %v1361_v34 = vcombine.high %v1353_v24, %v5182_v54  ;;  %v1362_v35 = vcombine.high %v1360_v26, %v5182_v54  ;;  %v1401_v36 = vshrl.u32 %v1353_v24, 16  ;;  %v1417_v38 = vshrl.u32 %v1360_v26, 16 }
 0x430   : > { %v1399_v39 = vpack.i.b16 %v1387_v20, %v1353_v24  ;;  %v1410_v40 = vshrl.u32 %v1395_v30, 16  ;;  %v1415_v41 = vpack.i.b16 %v1394_v21, %v1360_v26  ;;  %v1426_v42 = vshrl.u32 %v1396_v31, 16 }
 0x431   : > { %v1409_v44 = vshrl.u32 %v1361_v34, 16  ;;  %v1425_v45 = vshrl.u32 %v1362_v35, 16  ;;  %v1403_v46 = vpack.i.b16 %v1402_v32, %v1401_v36  ;;  %v1407_v47 = vpack.i.b16 %v1395_v30, %v1361_v34 }
 0x432   : > { %v1419_v49 = vpack.i.b16 %v1418_v33, %v1417_v38  ;;  %v1423_v52 = vpack.i.b16 %v1396_v31, %v1362_v35  ;;  %v1429_v53 = vcombine.low %v1399_v39, %v1415_v41  ;;  %v1307_v20 = vrot.slane %v1300_v10, %v5774_v43 }
 0x433   : > { %v1411_v55 = vpack.i.b16 %v1410_v40, %v1409_v44  ;;  %v1427_v56 = vpack.i.b16 %v1426_v42, %v1425_v45  ;;  %v1282_v23 = vrot.slane %v1275_v11, %v5774_v43 }
 0x434   : > { %v1437_v59 = vcombine.low %v1407_v47, %v1423_v52  ;;  %v1454_v60 = vcombine.low %v1403_v46, %v1419_v49  ;;  %v1436_v0 = vrot.slane %v1429_v53, %v5764_v37  ;;  %v1313_v30 = vshrl.u32 %v1307_v20, 16  ;;  %v1151_v46 = vld [vmem:[%s868_s11] sm:$0xff]  ;;  %s5183_s11 = smov 64  }
 0x435   : > { %v1462_v62 = vcombine.low %v1411_v55, %v1427_v56  ;;  %v1311_v32 = vpack.i.b16 %v1307_v20, %v1282_v23  ;;  %v1312_v33 = vshrl.u32 %v1282_v23, 16  ;;  %v1308_v38 = vcombine.high %v1307_v20, %v5182_v54 }
 0x436   : > { %v1444_v1 = vrot.slane %v1437_v59, %v5764_v37  ;;  %v1461_v2 = vrot.slane %v1454_v60, %v5764_v37  ;;  %v1283_v40 = vcombine.high %v1282_v23, %v5182_v54 }
 0x437   : > { %v1469_v50 = vrot.slane %v1462_v62, %v5764_v37  ;;  %v1314_v36 = vpack.i.b16 %v1313_v30, %v1312_v33  ;;  %v1319_v41 = vshrl.u32 %v1308_v38, 16 }
 0x438   : > { %v1445_v3 = vcombine.low %v1436_v0, %v1444_v1  ;;  %v1317_v42 = vpack.i.b16 %v1308_v38, %v1283_v40  ;;  %v1318_v44 = vshrl.u32 %v1283_v40, 16 }
 0x439   : > { %v1470_v5 = vcombine.low %v1461_v2, %v1469_v50 }
 0x43a   : > { %v1452_v7 = vrot.slane %v1445_v3, %v5774_v43  ;;  %v1320_v45 = vpack.i.b16 %v1319_v41, %v1318_v44 }
 0x43b   : > { %v1477_v9 = vrot.slane %v1470_v5, %v5774_v43 }
 0x43c   : > { %v1482_v13 = vshrl.u32 %v1452_v7, 16  ;;  %v1453_v21 = vcombine.high %v1452_v7, %v5182_v54 }
 0x43d   : > { %v1481_v12 = vpack.i.b16 %v1477_v9, %v1452_v7  ;;  %v1483_v14 = vshrl.u32 %v1477_v9, 16  ;;  %v1478_v15 = vcombine.high %v1477_v9, %v5182_v54 }
 0x43e   : > { %v1488_v31 = vshrl.u32 %v1453_v21, 16 }
 0x43f   : > { %v1666_v17 = vsel %vm1661_vm5, %v1481_v12, 0  ;;  %v1484_v19 = vpack.i.b16 %v1483_v14, %v1482_v13  ;;  %v1489_v24 = vshrl.u32 %v1478_v15, 16  ;;  %v1487_v26 = vpack.i.b16 %v1478_v15, %v1453_v21 }
 0x440   : > { %4376 = vmatpush3.bf16.xpose.msra.mxu1 %v1666_v17 }
 0x441   : > { %v1712_v22 = vsel %vm1661_vm5, %v1484_v19, 0  ;;  %4387 = vmatprep.subr.bf16.mxu1 %v5174_v16  ;;  %v1490_v34 = vpack.i.b16 %v1489_v24, %v1488_v31  ;;  %v1758_v35 = vsel %vm1661_vm5, %v1487_v26, 0 }
 0x442   : > { %4382 = vmatpush3.bf16.xpose.msra.mxu0 %v1712_v22 }
 0x443   : > { %4393 = vmatprep.subr.bf16.mxu0 %v5174_v16  ;;  %v1804_v39 = vsel %vm1661_vm5, %v1490_v34, 0 }
 0x447   : > { %4378 = vmatmul.mubr.msk.bf16.vlgmr.msra.gmra.mrb[0].mxu1 %vm1661_vm5, %v1311_v32 }
 0x448   : > { %4388 = vmatpush3.bf16.xpose.msra.mxu1 %v1758_v35  ;;  %4389 = vmatprep.mubr.msk.bf16.mxu1 %vm5175_vm3, %v5174_v16 }
 0x449   : > { %4384 = vmatmul.mubr.msk.bf16.vlgmr.msra.gmra.mrb[4].mxu0 %vm1661_vm5, %v1314_v36  ;;  %4399 = vmatprep.subr.bf16.mxu1 %v5174_v16 }
 0x44a   : > { %4394 = vmatpush3.bf16.xpose.msra.mxu0 %v1804_v39  ;;  %4395 = vmatprep.mubr.msk.bf16.mxu0 %vm5175_vm3, %v5174_v16 }
 0x44b   : > { %4405 = vmatprep.subr.bf16.mxu0 %v5174_v16 }
 0x44f   : > { %4390 = vmatmul.mubr.msk.bf16.vlgmr.msra.gmra.mrb[4].mxu1 %vm1661_vm5, %v1317_v42 }
 0x450   : > { %4401 = vmatprep.mubr.msk.bf16.mxu1 %vm5175_vm3, %v5174_v16 }
 0x451   : > { %4396 = vmatmul.mubr.msk.bf16.vlgmr.msra.gmra.mrb[8].mxu0 %vm1661_vm5, %v1320_v45 }
 0x452   : > { %4407 = vmatprep.mubr.msk.bf16.mxu0 %vm5175_vm3, %v5174_v16 }
 0x51a   : > { %v1702_v47 = vpop.f32.mrb[0].mxu1 }
 0x51b   : > { %v1703_v48 = vadd.f32 %v1702_v47, %v1151_v46  ;;  %v4379_v49 = vpop.f32.mrb[1].mxu1 }
 0x51c   : > { %v1705_v52 = vpop.f32.mrb[2].mxu1  ;;  %v1748_v53 = vpop.f32.mrb[4].mxu0 }
 0x51d   : > { %v1749_v55 = vadd.f32 %v1748_v53, %v1151_v46  ;;  %v4380_v56 = vpop.f32.mrb[3].mxu1  ;;  %v4385_v57 = vpop.f32.mrb[5].mxu0  ;;  %v1846_v58 = vsel %vm1661_vm5, %v1703_v48, -inf }
 0x51e   : > { %1847 = vmax.xlane.f32.xlu1 %v1846_v58  ;;  %v1751_v59 = vpop.f32.mrb[6].mxu0 }
 0x51f   : > { %v4386_v60 = vpop.f32.mrb[7].mxu0  ;;  %v1849_v61 = vsel %vm1661_vm5, %v1749_v55, -inf }
 0x520   : > { %1850 = vmax.xlane.f32.xlu0 %v1849_v61 }
 0x522   : > { %v1794_v62 = vpop.f32.mrb[4].mxu1 }
 0x523   : > { %v1795_v63 = vadd.f32 %v1794_v62, %v1151_v46  ;;  %v4391_v0 = vpop.f32.mrb[5].mxu1 }
 0x524   : > { %v1797_v1 = vpop.f32.mrb[6].mxu1  ;;  %v1840_v2 = vpop.f32.mrb[8].mxu0 }
 0x525   : > { %v1841_v50 = vadd.f32 %v1840_v2, %v1151_v46  ;;  %v4392_v51 = vpop.f32.mrb[7].mxu1  ;;  %v4397_v3 = vpop.f32.mrb[9].mxu0  ;;  %v1852_v4 = vsel %vm1661_vm5, %v1795_v63, -inf }
 0x526   : > { %1853 = vmax.xlane.f32.xlu0 %v1852_v4  ;;  %v1843_v5 = vpop.f32.mrb[10].mxu0 }
 0x527   : > { %v4398_v6 = vpop.f32.mrb[11].mxu0  ;;  %v1855_v7 = vsel %vm1661_vm5, %v1841_v50, -inf }
 0x528   : > { %1856 = vmax.xlane.f32.xlu1 %v1855_v7 }
 0x539   : > { %1493 = vrot.lane.b32.xlu1 %v5752_v27, %s5183_s11 }
 0x53c   : > { %1491 = vrot.lane.b32.xlu0 %v5742_v25, %s5183_s11 }
 0x5ab   : > { %v1848_v8 = vpop.xlane.xlu1 %1847 }
 0x5ac   : > { %v1858_v9 = vsub.f32 %v1703_v48, %v1848_v8 }
 0x5ad   : > { %v1851_v10 = vpop.xlane.xlu0 %1850 }
 0x5ae   : > { %v1862_v11 = vmul.f32 1.442695, %v1858_v9  ;;  %v1859_v12 = vsub.f32 %v1749_v55, %v1851_v10 }
 0x5b0   : > { %4712 = vpow2.f32 %v1862_v11  ;;  %v1864_v13 = vmul.f32 1.442695, %v1859_v12 }
 0x5b2   : > { %4714 = vpow2.f32 %v1864_v13 }
 0x5b3   : > { %v1854_v19 = vpop.xlane.xlu0 %1853 }
 0x5b4   : > { %v1860_v21 = vsub.f32 %v1795_v63, %v1854_v19 }
 0x5b5   : > { %v1857_v25 = vpop.xlane.xlu1 %1856 }
 0x5b6   : > { %v1861_v20 = vsub.f32 %v1841_v50, %v1857_v25  ;;  %v1866_v23 = vmul.f32 1.442695, %v1860_v21 }
 0x5b8   : > { %v1868_v22 = vmul.f32 1.442695, %v1861_v20 }
 0x5b9   : > { %v1494_v31 = vpop.permute.xlu1 %1493 }
 0x5ba   : > { %v5860_v14 = vpop.eup %4712  ;;  %4716 = vpow2.f32 %v1868_v22  ;;  %v1540_v35 = vrot.slane %v1494_v31, %v5764_v37 }
 0x5bb   : > { %v1870_v15 = vsel %vm1661_vm5, %v5860_v14, 0.0  ;;  %4718 = vpow2.f32 %v1866_v23 }
 0x5bc   : > { %v5864_v17 = vpop.eup %4714  ;;  %1871 = vadd.xlane.f32.xlu0 %v1870_v15 }
 0x5bd   : > { %v1873_v27 = vsel %vm1661_vm5, %v5864_v17, 0.0 }
 0x5be   : > { %1874 = vadd.xlane.f32.xlu1 %v1873_v27 }
 0x5c4   : > { %v5870_v24 = vpop.eup %4716 }
 0x5c5   : > { %v5872_v26 = vpop.eup %4718  ;;  %v1879_v30 = vsel %vm1661_vm5, %v5870_v24, 0.0 }
 0x5cf   : > { %1495 = vrot.lane.b32.xlu1 %v5758_v29, %s5183_s11  ;;  %v1876_v29 = vsel %vm1661_vm5, %v5872_v26, 0.0 }
 0x5d2   : > { %1497 = vrot.lane.b32.xlu0 %v5756_v28, %s5183_s11  ;;  %v1492_v28 = vpop.permute.xlu0 %1491  ;;  %s6432_s11 = sld [smem:[#allocation56_spill]] }
 0x5d3   : > { %v1506_v39 = vrot.slane %v1492_v28, %v5764_v37 }
 0x5f1   : > { %1880 = vadd.xlane.f32.xlu0 %v1879_v30 }
 0x5f3   : > { %1877 = vadd.xlane.f32.xlu1 %v1876_v29 }
 0x649   : > { %v1872_v32 = vpop.xlane.xlu0 %1871 }
 0x64a   : > { %4720 = vrcp.f32 %v1872_v32 }
 0x64b   : > { %v1875_v33 = vpop.xlane.xlu1 %1874 }
 0x64c   : > { %4722 = vrcp.f32 %v1875_v33 }
 0x64d   : > { %v1498_v34 = vpop.permute.xlu0 %1497 }
 0x64e   : > { %v1548_v36 = vrot.slane %v1498_v34, %v5764_v37 }
 0x64f   : > { %v1496_v38 = vpop.permute.xlu1 %1495 }
 0x650   : > { %v1549_v40 = vcombine.low %v1540_v35, %v1548_v36  ;;  %v1550_v41 = vcombine.high %v1540_v35, %v1548_v36  ;;  %v1514_v42 = vrot.slane %v1496_v38, %v5764_v37 }
 0x652   : > { %v1557_v44 = vrot.slane %v1549_v40, %v5774_v43  ;;  %v1564_v45 = vrot.slane %v1550_v41, %v5774_v43  ;;  %v1515_v46 = vcombine.low %v1506_v39, %v1514_v42  ;;  %v1516_v47 = vcombine.high %v1506_v39, %v1514_v42 }
 0x654   : > { %v1565_v48 = vcombine.high %v1557_v44, %v5182_v54  ;;  %v1566_v49 = vcombine.high %v1564_v45, %v5182_v54  ;;  %v1523_v52 = vrot.slane %v1515_v46, %v5774_v43  ;;  %v1530_v53 = vrot.slane %v1516_v47, %v5774_v43  ;;  %v4721_v13 = vpop.eup %4720 }
 0x655   : > { %v1572_v55 = vshrl.u32 %v1557_v44, 16  ;;  %v1588_v56 = vshrl.u32 %v1564_v45, 16  ;;  %v1886_v30 = vmul.f32 %v4721_v13, %v5860_v14 }
 0x656   : > { %v1580_v57 = vshrl.u32 %v1565_v48, 16  ;;  %v1531_v58 = vcombine.high %v1523_v52, %v5182_v54  ;;  %v1532_v59 = vcombine.high %v1530_v53, %v5182_v54  ;;  %v1569_v60 = vpack.i.b16 %v1557_v44, %v1523_v52  ;;  %v4723_v19 = vpop.eup %4722 }
 0x657   : > { %v1596_v61 = vshrl.u32 %v1566_v49, 16  ;;  %v1571_v62 = vshrl.u32 %v1523_v52, 16  ;;  %v1585_v63 = vpack.i.b16 %v1564_v45, %v1530_v53  ;;  %v1587_v0 = vshrl.u32 %v1530_v53, 16 }
 0x658   : > { %v1577_v1 = vpack.i.b16 %v1565_v48, %v1531_v58  ;;  %v1579_v2 = vshrl.u32 %v1531_v58, 16  ;;  %v1593_v50 = vpack.i.b16 %v1566_v49, %v1532_v59  ;;  %v1595_v51 = vshrl.u32 %v1532_v59, 16 }
 0x659   : > { %v1573_v3 = vpack.i.b16 %v1572_v55, %v1571_v62  ;;  %v1589_v4 = vpack.i.b16 %v1588_v56, %v1587_v0  ;;  %v1599_v5 = vcombine.low %v1569_v60, %v1585_v63  ;;  %v1887_v33 = vmul.f32 %v4723_v19, %v5864_v17 }
 0x65a   : > { %v1581_v6 = vpack.i.b16 %v1580_v57, %v1579_v2  ;;  %v1597_v7 = vpack.i.b16 %v1596_v61, %v1595_v51  ;;  %v1607_v8 = vcombine.low %v1577_v1, %v1593_v50  ;;  %v1890_v41 = vpack.c.bf16 %v1886_v30, %v1886_v30 }
 0x65b   : > { %v1624_v9 = vcombine.low %v1573_v3, %v1589_v4  ;;  %v1606_v10 = vrot.slane %v1599_v5, %v5764_v37  ;;  %v1891_v44 = vpack.c.bf16 %v1887_v33, %v1887_v33 }
 0x65c   : > { %v1632_v11 = vcombine.low %v1581_v6, %v1597_v7  ;;  %v1614_v12 = vrot.slane %v1607_v8, %v5764_v37 }
 0x65d   : > { %v1631_v27 = vrot.slane %v1624_v9, %v5764_v37 }
 0x65e   : > { %v1615_v15 = vcombine.low %v1606_v10, %v1614_v12  ;;  %v1639_v25 = vrot.slane %v1632_v11, %v5764_v37 }
 0x660   : > { %v1622_v20 = vrot.slane %v1615_v15, %v5774_v43  ;;  %v1640_v21 = vcombine.low %v1631_v27, %v1639_v25  ;;  %v4700_v25 = vld [vmem:[#allocation10] sm:$0xff]  }
 0x662   : > { %v1647_v22 = vrot.slane %v1640_v21, %v5774_v43  ;;  %v1623_v23 = vcombine.high %v1622_v20, %v5182_v54  ;;  %v1652_v28 = vshrl.u32 %v1622_v20, 16 }
 0x664   : > { %v1651_v29 = vpack.i.b16 %v1647_v22, %v1622_v20  ;;  %v1653_v31 = vshrl.u32 %v1647_v22, 16  ;;  %v1648_v32 = vcombine.high %v1647_v22, %v5182_v54  ;;  %v1658_v34 = vshrl.u32 %v1623_v23, 16 }
 0x666   : > { %v1899_v35 = vsel %vm1897_vm6, %v1651_v29, 0  ;;  %v1654_v36 = vpack.i.b16 %v1653_v31, %v1652_v28  ;;  %v1657_v38 = vpack.i.b16 %v1648_v32, %v1623_v23  ;;  %v1659_v39 = vshrl.u32 %v1648_v32, 16  ;;  %v4701_v31 = vld [vmem:[#allocation10 + $0x8] sm:$0xff]  }
 0x667   : > { %4400 = vmatpush3.bf16.msra.mxu1 %v1899_v35 }
 0x668   : > { %v1945_v40 = vsel %vm1897_vm6, %v1654_v36, 0  ;;  %4411 = vmatprep.subr.bf16.mxu1 %v5174_v16  ;;  %v1660_v14 = vpack.i.b16 %v1659_v39, %v1658_v34  ;;  %v1991_v42 = vsel %vm1897_vm6, %v1657_v38, 0 }
 0x669   : > { %4406 = vmatpush3.bf16.msra.mxu0 %v1945_v40 }
 0x66a   : > { %4402 = vmatmul.mubr.msk.bf16.vlgmr.msra.gmra.mrb[8].mxu1 %vm1661_vm5, %v1890_v41  ;;  %4417 = vmatprep.subr.bf16.mxu0 %v5174_v16  ;;  %v2037_v17 = vsel %vm1897_vm6, %v1660_v14, 0 }
 0x66b   : > { %4412 = vmatpush3.bf16.msra.mxu1 %v1991_v42  ;;  %4413 = vmatprep.mubr.msk.bf16.mxu1 %vm5175_vm3, %v5174_v16 }
 0x66c   : > { %4408 = vmatmul.mubr.msk.bf16.vlgmr.msra.gmra.mrb[12].mxu0 %vm1661_vm5, %v1891_v44  ;;  %4423 = vmatprep.subr.bf16.mxu1 %v5174_v16 }
 0x66d   : > { %4418 = vmatpush3.bf16.msra.mxu0 %v2037_v17  ;;  %4419 = vmatprep.mubr.msk.bf16.mxu0 %vm5175_vm3, %v5174_v16 }
 0x66e   : > { %4431 = vmatprep.subr.bf16.mxu0 %v5174_v16 }
 0x67e   : > { %v1881_v45 = vpop.xlane.xlu0 %1880 }
 0x67f   : > { %4724 = vrcp.f32 %v1881_v45 }
 0x680   : > { %v1878_v46 = vpop.xlane.xlu1 %1877 }
 0x681   : > { %4726 = vrcp.f32 %v1878_v46 }
 0x689   : > { %v4725_v47 = vpop.eup %4724 }
 0x68a   : > { %v1889_v48 = vmul.f32 %v4725_v47, %v5870_v24 }
 0x68b   : > { %v4727_v49 = vpop.eup %4726 }
 0x68c   : > { %v1888_v52 = vmul.f32 %v4727_v49, %v5872_v26  ;;  %v1893_v53 = vpack.c.bf16 %v1889_v48, %v1889_v48 }
 0x68e   : > { %4420 = vmatmul.mubr.msk.bf16.vlgmr.msra.gmra.mrb[16].mxu0 %vm1661_vm5, %v1893_v53  ;;  %v1892_v55 = vpack.c.bf16 %v1888_v52, %v1888_v52 }
 0x68f   : > { %4435 = vmatprep.mubr.msk.bf16.mxu0 %vm5175_vm3, %v5174_v16 }
 0x690   : > { %4414 = vmatmul.mubr.msk.bf16.vlgmr.msra.gmra.mrb[12].mxu1 %vm1661_vm5, %v1892_v55 }
 0x691   : > { %4427 = vmatprep.mubr.msk.bf16.mxu1 %vm5175_vm3, %v5174_v16  ;;  %4424 = vmatpush3.bf16.msra.mxu1 %v4700_v25 }
 0x692   : > { %4425 = vmatprep.subr.bf16.mxu1 %v5174_v16 }
 0x695   : > { %4426 = vmatpush3.bf16.msra.mxu1 %v4701_v31 }
 0x696   : > { %4439 = vmatprep.subr.bf16.mxu1 %v5174_v16 }
 0x73d   : > { %v1935_v56 = vpop.f32.mrb[8].mxu1 }
 0x73e   : > { %v4403_v57 = vpop.f32.mrb[9].mxu1 }
 0x73f   : > { %v1938_v58 = vpop.f32.mrb[10].mxu1  ;;  %v1981_v59 = vpop.f32.mrb[12].mxu0 }
 0x740   : > { %v4404_v24 = vpop.f32.mrb[11].mxu1  ;;  %v4409_v60 = vpop.f32.mrb[13].mxu0  ;;  %v4250_v58 = vld [vmem:[#allocation12] ss:$0 sm:$0xff] }
 0x741   : > { %v1984_v61 = vpop.f32.mrb[14].mxu0 }
 0x742   : > { %v4410_v26 = vpop.f32.mrb[15].mxu0 }
 0x761   : > { %v2073_v62 = vpop.f32.mrb[16].mxu0 }
 0x762   : > { %v2095_v63 = vcombine.low %v1981_v59, %v2073_v62  ;;  %v2096_v0 = vcombine.high %v1981_v59, %v2073_v62  ;;  %v4421_v1 = vpop.f32.mrb[17].mxu0 }
 0x763   : > { %v2027_v2 = vpop.f32.mrb[12].mxu1  ;;  %v2076_v50 = vpop.f32.mrb[18].mxu0 }
 0x764   : > { %v2079_v51 = vcombine.low %v1935_v56, %v2027_v2  ;;  %v2080_v3 = vcombine.high %v1935_v56, %v2027_v2  ;;  %v4415_v4 = vpop.f32.mrb[13].mxu1  ;;  %v4422_v5 = vpop.f32.mrb[19].mxu0  ;;  %v2103_v7 = vrot.slane %v2095_v63, %v5764_v37  ;;  %v2110_v8 = vrot.slane %v2096_v0, %v5764_v37 }
 0x765   : > { %v2030_v6 = vpop.f32.mrb[14].mxu1  ;;  %v4703_v4 = vld [vmem:[#allocation13 + $0x8] sm:$0xff]   ;;  %v5953_v5 = vld [vmem:[#allocation3] sm:$0xff] }
 0x766   : > { %v2087_v9 = vrot.slane %v2079_v51, %v5764_v37  ;;  %v2094_v10 = vrot.slane %v2080_v3, %v5764_v37  ;;  %v4416_v11 = vpop.f32.mrb[15].mxu1  ;;  %v4702_v3 = vld [vmem:[#allocation13] sm:$0xff]  }
 0x767   : > { %4432 = vmatpush3.bf16.msra.mxu0 %v4702_v3  ;;  %v4255_v11 = vld [vmem:[%s6423_s10] ss:$0 sm:$0xff] }
 0x768   : > { %v2111_v12 = vcombine.low %v2087_v9, %v2103_v7  ;;  %v2112_v13 = vcombine.high %v2087_v9, %v2103_v7  ;;  %v2127_v15 = vcombine.low %v2094_v10, %v2110_v8  ;;  %v2128_v27 = vcombine.high %v2094_v10, %v2110_v8  ;;  %4433 = vmatprep.subr.bf16.mxu0 %v5174_v16  ;;  %v4254_v9 = vld [vmem:[%s6422_s13] ss:$0 sm:$0xff]  ;;  %s6434_s13 = sld [smem:[#allocation58_spill]] (!%p4296_p12) }
 0x76a   : > { %v2119_v19 = vrot.slane %v2111_v12, %v5774_v43  ;;  %v2126_v20 = vrot.slane %v2112_v13, %v5774_v43  ;;  %v2135_v21 = vrot.slane %v2127_v15, %v5774_v43  ;;  %v2142_v22 = vrot.slane %v2128_v27, %v5774_v43 }
 0x76b   : > { %4434 = vmatpush3.bf16.msra.mxu0 %v4703_v4 }
 0x76c   : > { %v2147_v23 = vcombine.low %v2119_v19, %v2126_v20  ;;  %v4248_v30 = vcombine.high %v2119_v19, %v2126_v20  ;;  %v2163_v29 = vcombine.low %v2135_v21, %v2142_v22  ;;  %v4249_v28 = vcombine.high %v2135_v21, %v2142_v22  ;;  %4445 = vmatprep.subr.bf16.mxu0 %v5174_v16 }
 0x76d   : > { %v2579_v20 = vshrl.u32 %v5953_v5, 16 }
 0x76e   : > { %v2154_v32 = vrot.slane %v2147_v23, %v5764_v37  ;;  %v2162_v33 = vrot.slane %v4248_v30, %v5764_v37  ;;  %v2170_v34 = vrot.slane %v2163_v29, %v5764_v37  ;;  %v2178_v35 = vrot.slane %v4249_v28, %v5764_v37 }
 0x76f   : > { %v5987_v30 = vpack.i.b16 %v5182_v54, %v5182_v54 }
 0x770   : > { %v2180_v36 = vcombine.high %v2154_v32, %v2162_v33  ;;  %v2196_v38 = vcombine.high %v2170_v34, %v2178_v35  ;;  %v2179_v39 = vcombine.low %v2154_v32, %v2162_v33  ;;  %v2195_v40 = vcombine.low %v2170_v34, %v2178_v35 }
 0x772   : > { %v2194_v41 = vrot.slane %v2180_v36, %v5774_v43  ;;  %v2210_v14 = vrot.slane %v2196_v38, %v5774_v43  ;;  %v2187_v42 = vrot.slane %v2179_v39, %v5774_v43  ;;  %v2203_v44 = vrot.slane %v2195_v40, %v5774_v43 }
 0x774   : > { %v2213_v17 = vcombine.low %v2194_v41, %v2210_v14  ;;  %v2212_v45 = vcombine.high %v2187_v42, %v2203_v44  ;;  %v2214_v46 = vcombine.high %v2194_v41, %v2210_v14  ;;  %v2211_v47 = vcombine.low %v2187_v42, %v2203_v44 }
 0x776   : > { %2220 = vrot.lane.b32.xlu1 %v2213_v17, %s5184_s12  ;;  %2216 = vrot.lane.b32.xlu0 %v2212_v45, %s5185_s25 }
 0x77a   : > { %2224 = vrot.lane.b32.xlu1 %v2214_v46, %s5186_s5 }
 0x7e8   : > { %v2221_v48 = vpop.permute.xlu1 %2220  ;;  %v2217_v49 = vpop.permute.xlu0 %2216 }
 0x7e9   : > { %v2227_v52 = vsel %vm1661_vm5, %v2211_v47, %v2217_v49 }
 0x7ea   : > { %v2229_v55 = vsel %vm2228_vm7, %v2227_v52, %v2221_v48 }
 0x7ec   : > { %v2225_v53 = vpop.permute.xlu1 %2224 }
 0x7ed   : > { %v2231_v56 = vsel %vm2230_vm8, %v2229_v55, %v2225_v53 }
 0x7ee   : > { %v2232_v57 = vpack.c.bf16 %v2231_v56, %v2231_v56 }
 0x7f0   : > { %4428 = vmatmul.mubr.msk.bf16.vlgmr.msra.gmra.mrb[16].mxu1 %vm1107_vm4, %v2232_v57 }
 0x7f1   : > { %4441 = vmatprep.mubr.msk.bf16.mxu1 %vm5175_vm3, %v5174_v16 }
 0x8c3   : > { %v2293_v59 = vpop.f32.mrb[16].mxu1 }
 0x8c4   : > { %v2294_v24 = vadd.f32 %v4250_v58, %v2293_v59  ;;  %v4429_v60 = vpop.f32.mrb[17].mxu1 }
 0x8c5   : > { %v2296_v61 = vpop.f32.mrb[18].mxu1 }
 0x8c6   : > { %v4430_v26 = vpop.f32.mrb[19].mxu1  ;;  %v2299_v62 = vadd.f32 %v2294_v24, %v5728_v18 }
 0x8c8   : > { %v2300_v63 = vsel %vm1107_vm4, %v2299_v62, 0.0 }
 0x8c9   : > { %2301 = vadd.xlane.f32.xlu0 %v2300_v63 }
 0x8df   : > { %2569 = vrot.lane.b32.xlu0 %v5953_v5, %s5177_s2 }
 0x8e3   : > { %2573 = vrot.lane.b32.xlu0 %v5953_v5, %s5176_s19 }
 0x956   : > { %v2302_v0 = vpop.xlane.xlu0 %2301 }
 0x957   : > { %v2304_v1 = vmul.f32 0.03125, %v2302_v0 }
 0x959   : > { %v2305_v2 = vsub.f32 %v2299_v62, %v2304_v1 }
 0x95a   : > { %v5975_v27 = vpop.permute.xlu0 %2569 }
 0x95b   : > { %v2306_v50 = vmul.f32 %v2305_v2, %v2305_v2  ;;  %v2580_v21 = vshrl.u32 %v5975_v27, 16  ;;  %v2577_v29 = vpack.i.b16 %v5975_v27, %v5953_v5 }
 0x95d   : > { %v2307_v51 = vsel %vm1107_vm4, %v2306_v50, 0.0  ;;  %v2581_v31 = vpack.i.b16 %v2580_v21, %v2579_v20  ;;  %v2597_v33 = vcombine.high %v2577_v29, %v5987_v30  ;;  %v2604_v38 = vrot.slane %v2577_v29, %v5764_v37 }
 0x95e   : > { %2308 = vadd.xlane.f32.xlu1 %v2307_v51  ;;  %v5979_v19 = vpop.permute.xlu0 %2573 }
 0x95f   : > { %v2588_v23 = vshrl.u32 %v5979_v19, 16  ;;  %v2663_v35 = vcombine.high %v2581_v31, %v5987_v30  ;;  %v2611_v39 = vrot.slane %v2597_v33, %v5764_v37  ;;  %v2670_v14 = vrot.slane %v2581_v31, %v5764_v37 }
 0x961   : > { %v2677_v44 = vrot.slane %v2663_v35, %v5764_v37 }
 0x96f   : > { %2571 = vrot.lane.b32.xlu1 %v5953_v5, %s5179_s29 }
 0x9eb   : > { %v2309_v18 = vpop.xlane.xlu1 %2308 }
 0x9ec   : > { %v2310_v6 = vmul.f32 0.03125, %v2309_v18 }
 0x9ee   : > { %v2311_v7 = vadd.f32 1e-05, %v2310_v6 }
 0x9ef   : > { %v5977_v25 = vpop.permute.xlu1 %2571 }
 0x9f0   : > { %4728 = vrsqrt.f32 %v2311_v7  ;;  %v2587_v22 = vshrl.u32 %v5977_v25, 16  ;;  %v2585_v28 = vpack.i.b16 %v5979_v19, %v5977_v25 }
 0x9f2   : > { %v2589_v32 = vpack.i.b16 %v2588_v23, %v2587_v22  ;;  %v2612_v34 = vcombine.high %v2585_v28, %v5987_v30  ;;  %v2619_v40 = vrot.slane %v2585_v28, %v5764_v37  ;;  %v4256_v22 = vld [vmem:[#allocation15] ss:$0 sm:$0xff] }
 0x9f4   : > { %v2678_v36 = vcombine.high %v2589_v32, %v5987_v30  ;;  %v2626_v41 = vrot.slane %v2612_v34, %v5764_v37  ;;  %v2685_v42 = vrot.slane %v2589_v32, %v5764_v37  ;;  %v2627_v45 = vcombine.low %v2604_v38, %v2619_v40 }
 0x9f5   : > { %v2628_v46 = vcombine.high %v2604_v38, %v2619_v40 }
 0x9f6   : > { %v2692_v17 = vrot.slane %v2678_v36, %v5764_v37  ;;  %v2643_v47 = vcombine.low %v2611_v39, %v2626_v41  ;;  %v2644_v48 = vcombine.high %v2611_v39, %v2626_v41  ;;  %v2693_v49 = vcombine.low %v2670_v14, %v2685_v42 }
 0x9f7   : > { %v2694_v52 = vcombine.high %v2670_v14, %v2685_v42  ;;  %v2635_v56 = vrot.slane %v2627_v45, %v5774_v43  ;;  %v2642_v57 = vrot.slane %v2628_v46, %v5774_v43 }
 0x9f8   : > { %v2709_v53 = vcombine.low %v2677_v44, %v2692_v17  ;;  %v2710_v55 = vcombine.high %v2677_v44, %v2692_v17  ;;  %v2651_v58 = vrot.slane %v2643_v47, %v5774_v43  ;;  %v2658_v59 = vrot.slane %v2644_v48, %v5774_v43 }
 0x9f9   : > { %v2701_v24 = vrot.slane %v2693_v49, %v5774_v43  ;;  %v2708_v60 = vrot.slane %v2694_v52, %v5774_v43  ;;  %v2729_v62 = vcombine.low %v2635_v56, %v2642_v57  ;;  %v4260_v63 = vcombine.high %v2635_v56, %v2642_v57 }
 0x9fa   : > { %v4729_v8 = vpop.eup %4728  ;;  %v2717_v61 = vrot.slane %v2709_v53, %v5774_v43  ;;  %v2724_v26 = vrot.slane %v2710_v55, %v5774_v43  ;;  %v2745_v0 = vcombine.low %v2651_v58, %v2658_v59  ;;  %v4261_v1 = vcombine.high %v2651_v58, %v2658_v59 }
 0x9fb   : > { %v2313_v10 = vmul.f32 %v4729_v8, %v2305_v2  ;;  %v2779_v2 = vcombine.low %v2701_v24, %v2708_v60  ;;  %v4262_v50 = vcombine.high %v2701_v24, %v2708_v60  ;;  %v2736_v4 = vrot.slane %v2729_v62, %v5764_v37 }
 0x9fc   : > { %v2795_v51 = vcombine.low %v2717_v61, %v2724_v26  ;;  %v4263_v3 = vcombine.high %v2717_v61, %v2724_v26  ;;  %v2744_v18 = vrot.slane %v4260_v63, %v5764_v37  ;;  %v2752_v6 = vrot.slane %v2745_v0, %v5764_v37 }
 0x9fd   : > { %v2321_v12 = vmul.f32 %v4254_v9, %v2313_v10  ;;  %v2760_v7 = vrot.slane %v4261_v1, %v5764_v37  ;;  %v2786_v8 = vrot.slane %v2779_v2, %v5764_v37  ;;  %v2794_v9 = vrot.slane %v4262_v50, %v5764_v37 }
 0x9fe   : > { %v2802_v10 = vrot.slane %v2795_v51, %v5764_v37 }
 0x9ff   : > { %v5968_v13 = vadd.f32 %v4255_v11, %v2321_v12  ;;  %v2810_v11 = vrot.slane %v4263_v3, %v5764_v37  ;;  %v2761_v12 = vcombine.low %v2736_v4, %v2744_v18  ;;  %v2811_v20 = vcombine.low %v2786_v8, %v2794_v9 }
 0xa01   : > { %v2330_v15 = vpack.c.bf16 %v5968_v13, %v5968_v13  ;;  %v2819_v21 = vcombine.low %v2802_v10, %v2810_v11  ;;  %v2768_v23 = vrot.slane %v2761_v12, %v5774_v43  ;;  %v2818_v28 = vrot.slane %v2811_v20, %v5774_v43 }
 0xa03   : > { %4436 = vmatmul.mubr.msk.bf16.vlgmr.msra.gmra.mrb[20].mxu0 %vm1107_vm4, %v2330_v15  ;;  %v2769_v15 = vcombine.low %v2752_v6, %v2760_v7  ;;  %v2826_v31 = vrot.slane %v2819_v21, %v5774_v43 }
 0xa04   : > { %4447 = vmatprep.mubr.msk.bf16.mxu0 %vm5175_vm3, %v5174_v16 }
 0xa05   : > { %v2776_v29 = vrot.slane %v2769_v15, %v5774_v43  ;;  %v2827_v38 = vcombine.low %v2818_v28, %v2826_v31  ;;  %v6027_v39 = vcombine.high %v2818_v28, %v2826_v31 }
 0xa07   : > { %v2777_v33 = vcombine.low %v2768_v23, %v2776_v29  ;;  %v6025_v34 = vcombine.high %v2768_v23, %v2776_v29  ;;  %v2833_v17 = vshrl.u32 %v2827_v38, 16  ;;  %v2839_v47 = vshrl.u32 %v6027_v39, 16 }
 0xa09   : > { %v2832_v41 = vshrl.u32 %v2777_v33, 16  ;;  %v2831_v44 = vpack.i.b16 %v2827_v38, %v2777_v33  ;;  %v2837_v45 = vpack.i.b16 %v6027_v39, %v6025_v34  ;;  %v2838_v46 = vshrl.u32 %v6025_v34, 16 }
 0xa0b   : > { %v3117_v48 = vsel %vm1661_vm5, %v2831_v44, 0  ;;  %v2834_v49 = vpack.i.b16 %v2833_v17, %v2832_v41  ;;  %v6036_v52 = vpack.i.b16 %v2839_v47, %v2838_v46 }
 0xa0c   : > { %4440 = vmatpush3.bf16.xpose.msra.mxu1 %v3117_v48 }
 0xa0d   : > { %v3163_v53 = vsel %vm1661_vm5, %v2834_v49, 0  ;;  %4451 = vmatprep.subr.bf16.mxu1 %v5174_v16 }
 0xa0e   : > { %4446 = vmatpush3.bf16.xpose.msra.mxu0 %v3163_v53 }
 0xa0f   : > { %4457 = vmatprep.subr.bf16.mxu0 %v5174_v16 }
 0xad6   : > { %v2391_v32 = vpop.f32.mrb[20].mxu0 }
 0xad7   : > { %v2392_v35 = vadd.f32 %v4256_v22, %v2391_v32  ;;  %v4437_v36 = vpop.f32.mrb[21].mxu0 }
 0xad8   : > { %v2394_v40 = vpop.f32.mrb[22].mxu0 }
 0xad9   : > { %v2399_v14 = vpack.c.bf16 %v2392_v35, %v2392_v35  ;;  %v4438_v42 = vpop.f32.mrb[23].mxu0 }
 0xadb   : > { %2403 = vrot.lane.b32.xlu0 %v2399_v14, %s5179_s29  ;;  %2401 = vrot.lane.b32.xlu1 %v2399_v14, %s5177_s2  ;;  %v2413_v57 = vrot.slane %v2399_v14, %v5764_v37 }
 0xadf   : > { %2405 = vrot.lane.b32.xlu1 %v2399_v14, %s5176_s19  ;;  %s6428_s19 = sld [smem:[#allocation54_spill]] }
 0xb4d   : > { %v2404_v55 = vpop.permute.xlu0 %2403  ;;  %v2402_v56 = vpop.permute.xlu1 %2401 }
 0xb4e   : > { %v2421_v58 = vrot.slane %v2404_v55, %v5764_v37  ;;  %v2447_v62 = vrot.slane %v2402_v56, %v5764_v37  ;;  %v3209_v55 = vsel %vm1661_vm5, %v2837_v45, 0 }
 0xb50   : > { %v2422_v59 = vcombine.low %v2413_v57, %v2421_v58  ;;  %v2423_v24 = vcombine.high %v2413_v57, %v2421_v58  ;;  %v3255_v58 = vsel %vm1661_vm5, %v6036_v52, 0 }
 0xb51   : > { %v2406_v60 = vpop.permute.xlu1 %2405 }
 0xb52   : > { %v2430_v61 = vrot.slane %v2422_v59, %v5774_v43  ;;  %v2455_v26 = vrot.slane %v2406_v60, %v5764_v37  ;;  %v2437_v63 = vrot.slane %v2423_v24, %v5774_v43 }
 0xb54   : > { %v2456_v0 = vcombine.low %v2447_v62, %v2455_v26  ;;  %v2457_v1 = vcombine.high %v2447_v62, %v2455_v26  ;;  %v2438_v2 = vcombine.high %v2430_v61, %v5182_v54  ;;  %v2439_v3 = vcombine.high %v2437_v63, %v5182_v54 }
 0xb55   : > { %v2478_v4 = vshrl.u32 %v2430_v61, 16  ;;  %v2494_v10 = vshrl.u32 %v2437_v63, 16 }
 0xb56   : > { %v2464_v50 = vrot.slane %v2456_v0, %v5774_v43  ;;  %v2471_v51 = vrot.slane %v2457_v1, %v5774_v43  ;;  %v2486_v9 = vshrl.u32 %v2438_v2, 16  ;;  %v2502_v23 = vshrl.u32 %v2439_v3, 16 }
 0xb58   : > { %v2472_v18 = vcombine.high %v2464_v50, %v5182_v54  ;;  %v2473_v6 = vcombine.high %v2471_v51, %v5182_v54  ;;  %v2476_v7 = vpack.i.b16 %v2464_v50, %v2430_v61  ;;  %v2479_v8 = vshrl.u32 %v2464_v50, 16 }
 0xb59   : > { %v2492_v11 = vpack.i.b16 %v2471_v51, %v2437_v63  ;;  %v2495_v12 = vshrl.u32 %v2471_v51, 16 }
 0xb5a   : > { %v2480_v15 = vpack.i.b16 %v2479_v8, %v2478_v4  ;;  %v2484_v20 = vpack.i.b16 %v2472_v18, %v2438_v2  ;;  %v2487_v21 = vshrl.u32 %v2472_v18, 16  ;;  %v2500_v22 = vpack.i.b16 %v2473_v6, %v2439_v3 }
 0xb5b   : > { %v2496_v29 = vpack.i.b16 %v2495_v12, %v2494_v10  ;;  %v2503_v28 = vshrl.u32 %v2473_v6, 16  ;;  %v2506_v31 = vcombine.low %v2476_v7, %v2492_v11 }
 0xb5c   : > { %v2488_v32 = vpack.i.b16 %v2487_v21, %v2486_v9  ;;  %v2514_v33 = vcombine.low %v2484_v20, %v2500_v22 }
 0xb5d   : > { %v2504_v35 = vpack.i.b16 %v2503_v28, %v2502_v23  ;;  %v2531_v36 = vcombine.low %v2480_v15, %v2496_v29  ;;  %v2513_v38 = vrot.slane %v2506_v31, %v5764_v37 }
 0xb5e   : > { %v2521_v40 = vrot.slane %v2514_v33, %v5764_v37 }
 0xb5f   : > { %v2539_v41 = vcombine.low %v2488_v32, %v2504_v35  ;;  %v2538_v42 = vrot.slane %v2531_v36, %v5764_v37 }
 0xb60   : > { %v2522_v14 = vcombine.low %v2513_v38, %v2521_v40 }
 0xb61   : > { %v2546_v44 = vrot.slane %v2539_v41, %v5764_v37 }
 0xb62   : > { %v2529_v46 = vrot.slane %v2522_v14, %v5774_v43 }
 0xb63   : > { %v2547_v17 = vcombine.low %v2538_v42, %v2546_v44 }
 0xb64   : > { %v2559_v49 = vshrl.u32 %v2529_v46, 16  ;;  %v2530_v59 = vcombine.high %v2529_v46, %v5182_v54 }
 0xb65   : > { %v2554_v47 = vrot.slane %v2547_v17, %v5774_v43 }
 0xb66   : > { %v2565_v45 = vshrl.u32 %v2530_v59, 16 }
 0xb67   : > { %v2558_v48 = vpack.i.b16 %v2554_v47, %v2529_v46  ;;  %v2560_v53 = vshrl.u32 %v2554_v47, 16  ;;  %v2555_v57 = vcombine.high %v2554_v47, %v5182_v54  ;;  %v2398_v54 = vld [vmem:[%s6424_s24] sm:$0xff] }
 0xb69   : > { %4442 = vmatmul.mubr.msk.bf16.vlgmr.msra.gmra.mrb[20].mxu1 %vm1661_vm5, %v2558_v48  ;;  %v2561_v56 = vpack.i.b16 %v2560_v53, %v2559_v49  ;;  %v2566_v34 = vshrl.u32 %v2555_v57, 16  ;;  %v2564_v39 = vpack.i.b16 %v2555_v57, %v2530_v59 }
 0xb6a   : > { %4452 = vmatpush3.bf16.xpose.msra.mxu1 %v3209_v55  ;;  %4453 = vmatprep.mubr.msk.bf16.mxu1 %vm5175_vm3, %v5174_v16 }
 0xb6b   : > { %4448 = vmatmul.mubr.msk.bf16.vlgmr.msra.gmra.mrb[24].mxu0 %vm1661_vm5, %v2561_v56  ;;  %4463 = vmatprep.subr.bf16.mxu1 %v5174_v16  ;;  %v2567_v24 = vpack.i.b16 %v2566_v34, %v2565_v45 }
 0xb6c   : > { %4458 = vmatpush3.bf16.xpose.msra.mxu0 %v3255_v58  ;;  %4459 = vmatprep.mubr.msk.bf16.mxu0 %vm5175_vm3, %v5174_v16 }
 0xb6d   : > { %4469 = vmatprep.subr.bf16.mxu0 %v5174_v16 }
 0xb71   : > { %4454 = vmatmul.mubr.msk.bf16.vlgmr.msra.gmra.mrb[24].mxu1 %vm1661_vm5, %v2564_v39 }
 0xb72   : > { %4465 = vmatprep.mubr.msk.bf16.mxu1 %vm5175_vm3, %v5174_v16 }
 0xb73   : > { %4460 = vmatmul.mubr.msk.bf16.vlgmr.msra.gmra.mrb[28].mxu0 %vm1661_vm5, %v2567_v24 }
 0xb74   : > { %4471 = vmatprep.mubr.msk.bf16.mxu0 %vm5175_vm3, %v5174_v16 }
 0xc3c   : > { %v3153_v52 = vpop.f32.mrb[20].mxu1 }
 0xc3d   : > { %v3154_v60 = vadd.f32 %v3153_v52, %v2398_v54  ;;  %v4443_v61 = vpop.f32.mrb[21].mxu1 }
 0xc3e   : > { %v3156_v26 = vpop.f32.mrb[22].mxu1  ;;  %v3199_v62 = vpop.f32.mrb[24].mxu0 }
 0xc3f   : > { %v3200_v63 = vadd.f32 %v3199_v62, %v2398_v54  ;;  %v4444_v0 = vpop.f32.mrb[23].mxu1  ;;  %v4449_v1 = vpop.f32.mrb[25].mxu0  ;;  %v3297_v2 = vsel %vm2228_vm7, %v3154_v60, -inf }
 0xc40   : > { %3298 = vmax.xlane.f32.xlu0 %v3297_v2  ;;  %v3202_v50 = vpop.f32.mrb[26].mxu0 }
 0xc41   : > { %v4450_v51 = vpop.f32.mrb[27].mxu0  ;;  %v3300_v3 = vsel %vm2228_vm7, %v3200_v63, -inf }
 0xc42   : > { %3301 = vmax.xlane.f32.xlu1 %v3300_v3 }
 0xc44   : > { %v3245_v4 = vpop.f32.mrb[24].mxu1 }
 0xc45   : > { %v3246_v18 = vadd.f32 %v3245_v4, %v2398_v54  ;;  %v4455_v6 = vpop.f32.mrb[25].mxu1 }
 0xc46   : > { %v3248_v7 = vpop.f32.mrb[26].mxu1  ;;  %v3291_v8 = vpop.f32.mrb[28].mxu0 }
 0xc47   : > { %v3292_v9 = vadd.f32 %v3291_v8, %v2398_v54  ;;  %v4456_v10 = vpop.f32.mrb[27].mxu1  ;;  %v4461_v11 = vpop.f32.mrb[29].mxu0  ;;  %v3303_v12 = vsel %vm2228_vm7, %v3246_v18, -inf }
 0xc48   : > { %3304 = vmax.xlane.f32.xlu0 %v3303_v12  ;;  %v3294_v15 = vpop.f32.mrb[30].mxu0 }
 0xc49   : > { %v4462_v20 = vpop.f32.mrb[31].mxu0  ;;  %v3306_v21 = vsel %vm2228_vm7, %v3292_v9, -inf }
 0xc4c   : > { %3307 = vmax.xlane.f32.xlu0 %v3306_v21 }
 0xc53   : > { %2841 = vrot.lane.b32.xlu1 %v5953_v5, %s5178_s15 }
 0xc57   : > { %2845 = vrot.lane.b32.xlu1 %v5977_v25, %s5178_s15 }
 0xc5b   : > { %2847 = vrot.lane.b32.xlu1 %v5979_v19, %s5178_s15 }
 0xc62   : > { %2843 = vrot.lane.b32.xlu0 %v5975_v27, %s5178_s15  ;;  %s6425_s15 = sld [smem:[#allocation47_spill]] }
 0xccd   : > { %v3299_v22 = vpop.xlane.xlu0 %3298 }
 0xcce   : > { %v3309_v23 = vsub.f32 %v3154_v60, %v3299_v22 }
 0xccf   : > { %v3302_v29 = vpop.xlane.xlu1 %3301 }
 0xcd0   : > { %v3313_v28 = vmul.f32 1.442695, %v3309_v23  ;;  %v3310_v31 = vsub.f32 %v3200_v63, %v3302_v29 }
 0xcd2   : > { %4730 = vpow2.f32 %v3313_v28  ;;  %v3315_v32 = vmul.f32 1.442695, %v3310_v31 }
 0xcd3   : > { %v2842_v33 = vpop.permute.xlu1 %2841 }
 0xcd4   : > { %4732 = vpow2.f32 %v3315_v32  ;;  %v2853_v17 = vshrl.u32 %v2842_v33, 16 }
 0xcd5   : > { %v3305_v35 = vpop.xlane.xlu0 %3304 }
 0xcd6   : > { %v3311_v5 = vsub.f32 %v3246_v18, %v3305_v35 }
 0xcd7   : > { %v2846_v36 = vpop.permute.xlu1 %2845 }
 0xcd8   : > { %v3317_v38 = vmul.f32 1.442695, %v3311_v5  ;;  %v2861_v27 = vshrl.u32 %v2846_v36, 16 }
 0xcd9   : > { %v3308_v25 = vpop.xlane.xlu0 %3307 }
 0xcda   : > { %4734 = vpow2.f32 %v3317_v38  ;;  %v3312_v40 = vsub.f32 %v3292_v9, %v3308_v25 }
 0xcdb   : > { %v2848_v19 = vpop.permute.xlu1 %2847 }
 0xcdc   : > { %v6096_v41 = vpop.eup %4730  ;;  %v3319_v14 = vmul.f32 1.442695, %v3312_v40  ;;  %v2859_v42 = vpack.i.b16 %v2848_v19, %v2846_v36  ;;  %v2862_v44 = vshrl.u32 %v2848_v19, 16 }
 0xcdd   : > { %v2844_v46 = vpop.permute.xlu0 %2843  ;;  %v3321_v47 = vsel %vm2228_vm7, %v6096_v41, 0.0 }
 0xcde   : > { %v6100_v48 = vpop.eup %4732  ;;  %4736 = vpow2.f32 %v3319_v14  ;;  %v2863_v49 = vpack.i.b16 %v2862_v44, %v2861_v27  ;;  %v2880_v53 = vcombine.high %v2859_v42, %v5987_v30  ;;  %3322 = vadd.xlane.f32.xlu0 %v3321_v47  ;;  %v2851_v55 = vpack.i.b16 %v2844_v46, %v2842_v33 }
 0xcdf   : > { %v2854_v56 = vshrl.u32 %v2844_v46, 16  ;;  %v3324_v57 = vsel %vm2228_vm7, %v6100_v48, 0.0  ;;  %v2887_v59 = vrot.slane %v2859_v42, %v5764_v37 }
 0xce0   : > { %v2946_v58 = vcombine.high %v2863_v49, %v5987_v30  ;;  %3325 = vadd.xlane.f32.xlu1 %v3324_v57  ;;  %v2865_v39 = vcombine.high %v2851_v55, %v5987_v30  ;;  %v2872_v45 = vrot.slane %v2851_v55, %v5764_v37  ;;  %v2894_v24 = vrot.slane %v2880_v53, %v5764_v37 }
 0xce1   : > { %v2855_v34 = vpack.i.b16 %v2854_v56, %v2853_v17  ;;  %v2953_v62 = vrot.slane %v2863_v49, %v5764_v37 }
 0xce2   : > { %v2879_v54 = vrot.slane %v2865_v39, %v5764_v37  ;;  %v2895_v52 = vcombine.low %v2872_v45, %v2887_v59  ;;  %v2896_v60 = vcombine.high %v2872_v45, %v2887_v59  ;;  %v2960_v63 = vrot.slane %v2946_v58, %v5764_v37 }
 0xce3   : > { %v2931_v61 = vcombine.high %v2855_v34, %v5987_v30  ;;  %v2938_v0 = vrot.slane %v2855_v34, %v5764_v37 }
 0xce4   : > { %v6112_v26 = vpop.eup %4734  ;;  %v2903_v1 = vrot.slane %v2895_v52, %v5774_v43  ;;  %v2910_v2 = vrot.slane %v2896_v60, %v5774_v43  ;;  %v2911_v50 = vcombine.low %v2879_v54, %v2894_v24  ;;  %v2912_v51 = vcombine.high %v2879_v54, %v2894_v24 }
 0xce5   : > { %v2945_v3 = vrot.slane %v2931_v61, %v5764_v37  ;;  %v2961_v4 = vcombine.low %v2938_v0, %v2953_v62  ;;  %v2962_v18 = vcombine.high %v2938_v0, %v2953_v62  ;;  %v3327_v30 = vsel %vm2228_vm7, %v6112_v26, 0.0 }
 0xce6   : > { %v2919_v6 = vrot.slane %v2911_v50, %v5774_v43  ;;  %v2926_v7 = vrot.slane %v2912_v51, %v5774_v43  ;;  %v2997_v8 = vcombine.low %v2903_v1, %v2910_v2  ;;  %v4264_v9 = vcombine.high %v2903_v1, %v2910_v2  ;;  %3328 = vadd.xlane.f32.xlu0 %v3327_v30 }
 0xce7   : > { %v2969_v11 = vrot.slane %v2961_v4, %v5774_v43  ;;  %v2976_v12 = vrot.slane %v2962_v18, %v5774_v43  ;;  %v2977_v15 = vcombine.low %v2945_v3, %v2960_v63  ;;  %v2978_v20 = vcombine.high %v2945_v3, %v2960_v63 }
 0xce8   : > { %v6124_v10 = vpop.eup %4736  ;;  %v3004_v21 = vrot.slane %v2997_v8, %v5764_v37  ;;  %v3012_v22 = vrot.slane %v4264_v9, %v5764_v37  ;;  %v3013_v23 = vcombine.low %v2919_v6, %v2926_v7  ;;  %v4265_v29 = vcombine.high %v2919_v6, %v2926_v7 }
 0xce9   : > { %v2985_v28 = vrot.slane %v2977_v15, %v5774_v43  ;;  %v2992_v31 = vrot.slane %v2978_v20, %v5774_v43  ;;  %v3047_v32 = vcombine.low %v2969_v11, %v2976_v12  ;;  %v4266_v33 = vcombine.high %v2969_v11, %v2976_v12 }
 0xcea   : > { %v3020_v35 = vrot.slane %v3013_v23, %v5764_v37  ;;  %v3028_v5 = vrot.slane %v4265_v29, %v5764_v37  ;;  %v3330_v36 = vsel %vm2228_vm7, %v6124_v10, 0.0  ;;  %v3029_v38 = vcombine.low %v3004_v21, %v3012_v22 }
 0xceb   : > { %v3054_v25 = vrot.slane %v3047_v32, %v5764_v37  ;;  %v3062_v40 = vrot.slane %v4266_v33, %v5764_v37  ;;  %v3063_v19 = vcombine.low %v2985_v28, %v2992_v31  ;;  %v4267_v27 = vcombine.high %v2985_v28, %v2992_v31  ;;  %3331 = vadd.xlane.f32.xlu0 %v3330_v36 }
 0xcec   : > { %v3037_v14 = vcombine.low %v3020_v35, %v3028_v5  ;;  %v3036_v46 = vrot.slane %v3029_v38, %v5774_v43 }
 0xced   : > { %v3070_v42 = vrot.slane %v3063_v19, %v5764_v37  ;;  %v3078_v44 = vrot.slane %v4267_v27, %v5764_v37  ;;  %v3079_v17 = vcombine.low %v3054_v25, %v3062_v40 }
 0xcee   : > { %v3044_v47 = vrot.slane %v3037_v14, %v5774_v43 }
 0xcef   : > { %v3087_v49 = vcombine.low %v3070_v42, %v3078_v44  ;;  %v3086_v56 = vrot.slane %v3079_v17, %v5774_v43  ;;  %v4704_v42 = vld [vmem:[#allocation18] sm:$0xff]  }
 0xcf0   : > { %v3045_v53 = vcombine.low %v3036_v46, %v3044_v47  ;;  %v3046_v55 = vcombine.high %v3036_v46, %v3044_v47 }
 0xcf1   : > { %v3094_v57 = vrot.slane %v3087_v49, %v5774_v43 }
 0xcf2   : > { %v3101_v34 = vshrl.u32 %v3045_v53, 16  ;;  %v3109_v39 = vshrl.u32 %v3046_v55, 16 }
 0xcf3   : > { %v3095_v58 = vcombine.low %v3086_v56, %v3094_v57  ;;  %v3096_v59 = vcombine.high %v3086_v56, %v3094_v57  ;;  %v4705_v57 = vld [vmem:[#allocation18 + $0x8] sm:$0xff]  }
 0xcf5   : > { %v3099_v45 = vpack.i.b16 %v3095_v58, %v3045_v53  ;;  %v3102_v24 = vshrl.u32 %v3095_v58, 16  ;;  %v3107_v54 = vpack.i.b16 %v3096_v59, %v3046_v55  ;;  %v3110_v52 = vshrl.u32 %v3096_v59, 16 }
 0xcf7   : > { %4464 = vmatpush3.bf16.msra.mxu1 %v3099_v45  ;;  %v3103_v60 = vpack.i.b16 %v3102_v24, %v3101_v34  ;;  %v3111_v61 = vpack.i.b16 %v3110_v52, %v3109_v39 }
 0xcf8   : > { %4475 = vmatprep.subr.bf16.mxu1 %v5174_v16 }
 0xcf9   : > { %4470 = vmatpush3.bf16.msra.mxu0 %v3103_v60 }
 0xcfa   : > { %4481 = vmatprep.subr.bf16.mxu0 %v5174_v16 }
 0xd6b   : > { %v3323_v62 = vpop.xlane.xlu0 %3322 }
 0xd6c   : > { %4738 = vrcp.f32 %v3323_v62 }
 0xd6d   : > { %v3326_v63 = vpop.xlane.xlu1 %3325 }
 0xd6e   : > { %4740 = vrcp.f32 %v3326_v63 }
 0xd73   : > { %v3329_v0 = vpop.xlane.xlu0 %3328 }
 0xd74   : > { %4742 = vrcp.f32 %v3329_v0 }
 0xd76   : > { %v4739_v1 = vpop.eup %4738 }
 0xd77   : > { %v3337_v2 = vmul.f32 %v4739_v1, %v6096_v41 }
 0xd78   : > { %v4741_v50 = vpop.eup %4740  ;;  %v3332_v3 = vpop.xlane.xlu0 %3331 }
 0xd79   : > { %v3338_v51 = vmul.f32 %v4741_v50, %v6100_v48  ;;  %v3341_v4 = vpack.c.bf16 %v3337_v2, %v3337_v2  ;;  %4744 = vrcp.f32 %v3332_v3 }
 0xd7b   : > { %4466 = vmatmul.mubr.msk.bf16.vlgmr.msra.gmra.mrb[28].mxu1 %vm2228_vm7, %v3341_v4  ;;  %v3342_v18 = vpack.c.bf16 %v3338_v51, %v3338_v51 }
 0xd7c   : > { %4476 = vmatpush3.bf16.msra.mxu1 %v3107_v54  ;;  %4477 = vmatprep.mubr.msk.bf16.mxu1 %vm5175_vm3, %v5174_v16 }
 0xd7d   : > { %4472 = vmatmul.mubr.msk.bf16.vlgmr.msra.gmra.mrb[32].mxu0 %vm2228_vm7, %v3342_v18  ;;  %4487 = vmatprep.subr.bf16.mxu1 %v5174_v16 }
 0xd7e   : > { %4482 = vmatpush3.bf16.msra.mxu0 %v3111_v61  ;;  %4483 = vmatprep.mubr.msk.bf16.mxu0 %vm5175_vm3, %v5174_v16  ;;  %v4743_v41 = vpop.eup %4742 }
 0xd7f   : > { %4495 = vmatprep.subr.bf16.mxu0 %v5174_v16  ;;  %v3339_v48 = vmul.f32 %v4743_v41, %v6112_v26 }
 0xd81   : > { %v3343_v30 = vpack.c.bf16 %v3339_v48, %v3339_v48 }
 0xd83   : > { %v4745_v6 = vpop.eup %4744  ;;  %4478 = vmatmul.mubr.msk.bf16.vlgmr.msra.gmra.mrb[32].mxu1 %vm2228_vm7, %v3343_v30 }
 0xd84   : > { %v3340_v7 = vmul.f32 %v4745_v6, %v6124_v10  ;;  %4491 = vmatprep.mubr.msk.bf16.mxu1 %vm5175_vm3, %v5174_v16  ;;  %4488 = vmatpush3.bf16.msra.mxu1 %v4704_v42 }
 0xd85   : > { %4489 = vmatprep.subr.bf16.mxu1 %v5174_v16 }
 0xd86   : > { %v3344_v8 = vpack.c.bf16 %v3340_v7, %v3340_v7 }
 0xd88   : > { %4484 = vmatmul.mubr.msk.bf16.vlgmr.msra.gmra.mrb[36].mxu0 %vm2228_vm7, %v3344_v8  ;;  %4490 = vmatpush3.bf16.msra.mxu1 %v4705_v57  ;;  %v4278_v8 = vld [vmem:[#allocation19] ss:$0 sm:$0xff] }
 0xd89   : > { %4499 = vmatprep.mubr.msk.bf16.mxu0 %vm5175_vm3, %v5174_v16  ;;  %4503 = vmatprep.subr.bf16.mxu1 %v5174_v16 }
 0xe4e   : > { %v3382_v9 = vpop.f32.mrb[28].mxu1 }
 0xe4f   : > { %v4467_v11 = vpop.f32.mrb[29].mxu1 }
 0xe50   : > { %v3385_v12 = vpop.f32.mrb[30].mxu1  ;;  %v3425_v15 = vpop.f32.mrb[32].mxu0 }
 0xe51   : > { %v4468_v26 = vpop.f32.mrb[31].mxu1  ;;  %v4473_v20 = vpop.f32.mrb[33].mxu0 }
 0xe52   : > { %v3428_v21 = vpop.f32.mrb[34].mxu0 }
 0xe53   : > { %v4474_v22 = vpop.f32.mrb[35].mxu0 }
 0xe56   : > { %v3468_v23 = vpop.f32.mrb[32].mxu1 }
 0xe57   : > { %v3517_v29 = vcombine.low %v3382_v9, %v3468_v23  ;;  %v3518_v10 = vcombine.high %v3382_v9, %v3468_v23  ;;  %v4479_v28 = vpop.f32.mrb[33].mxu1 }
 0xe58   : > { %v3471_v31 = vpop.f32.mrb[34].mxu1 }
 0xe59   : > { %v4480_v32 = vpop.f32.mrb[35].mxu1  ;;  %v3525_v25 = vrot.slane %v3517_v29, %v5764_v37  ;;  %v3532_v40 = vrot.slane %v3518_v10, %v5764_v37  ;;  %v4706_v31 = vld [vmem:[%s6425_s15] sm:$0xff]  }
 0xe5a   : > { %4496 = vmatpush3.bf16.msra.mxu0 %v4706_v31 }
 0xe5b   : > { %v3511_v33 = vpop.f32.mrb[36].mxu0  ;;  %4497 = vmatprep.subr.bf16.mxu0 %v5174_v16 }
 0xe5c   : > { %v3533_v35 = vcombine.low %v3425_v15, %v3511_v33  ;;  %v3534_v5 = vcombine.high %v3425_v15, %v3511_v33  ;;  %v4485_v36 = vpop.f32.mrb[37].mxu0 }
 0xe5d   : > { %v3514_v38 = vpop.f32.mrb[38].mxu0 }
 0xe5e   : > { %v3541_v19 = vrot.slane %v3533_v35, %v5764_v37  ;;  %v3548_v27 = vrot.slane %v3534_v5, %v5764_v37  ;;  %v4486_v14 = vpop.f32.mrb[39].mxu0 }
 0xe60   : > { %v3549_v44 = vcombine.low %v3525_v25, %v3541_v19  ;;  %v3550_v17 = vcombine.high %v3525_v25, %v3541_v19  ;;  %v3565_v46 = vcombine.low %v3532_v40, %v3548_v27  ;;  %v3566_v47 = vcombine.high %v3532_v40, %v3548_v27  ;;  %v4282_v25 = vld [vmem:[%s6427_s23] ss:$0 sm:$0xff]  ;;  %s6430_s23 = sld [smem:[#allocation50_spill]] }
 0xe61   : > { %v4283_v19 = vld [vmem:[%s6428_s19] ss:$0 sm:$0xff]  ;;  %s6431_s19 = sld [smem:[#allocation55_spill]] }
 0xe62   : > { %v3557_v49 = vrot.slane %v3549_v44, %v5774_v43  ;;  %v3564_v53 = vrot.slane %v3550_v17, %v5774_v43  ;;  %v3573_v55 = vrot.slane %v3565_v46, %v5774_v43  ;;  %v3580_v56 = vrot.slane %v3566_v47, %v5774_v43  ;;  %v4284_v46 = vld [vmem:[%s6429_s9] ss:$0 sm:$0xff] }
 0xe64   : > { %v3585_v58 = vcombine.low %v3557_v49, %v3564_v53  ;;  %v4276_v59 = vcombine.high %v3557_v49, %v3564_v53  ;;  %v3601_v34 = vcombine.low %v3573_v55, %v3580_v56  ;;  %v4277_v39 = vcombine.high %v3573_v55, %v3580_v56 }
 0xe66   : > { %v3592_v45 = vrot.slane %v3585_v58, %v5764_v37  ;;  %v3600_v24 = vrot.slane %v4276_v59, %v5764_v37  ;;  %v3608_v54 = vrot.slane %v3601_v34, %v5764_v37  ;;  %v3616_v52 = vrot.slane %v4277_v39, %v5764_v37 }
 0xe68   : > { %v3618_v60 = vcombine.high %v3592_v45, %v3600_v24  ;;  %v3634_v61 = vcombine.high %v3608_v54, %v3616_v52  ;;  %v3617_v62 = vcombine.low %v3592_v45, %v3600_v24  ;;  %v3633_v63 = vcombine.low %v3608_v54, %v3616_v52 }
 0xe6a   : > { %v3632_v0 = vrot.slane %v3618_v60, %v5774_v43  ;;  %v3648_v1 = vrot.slane %v3634_v61, %v5774_v43  ;;  %v3625_v2 = vrot.slane %v3617_v62, %v5774_v43  ;;  %v3641_v50 = vrot.slane %v3633_v63, %v5774_v43 }
 0xe6c   : > { %v3651_v51 = vcombine.low %v3632_v0, %v3648_v1  ;;  %v3650_v3 = vcombine.high %v3625_v2, %v3641_v50  ;;  %v3652_v4 = vcombine.high %v3632_v0, %v3648_v1  ;;  %v3649_v18 = vcombine.low %v3625_v2, %v3641_v50 }
 0xe6e   : > { %3658 = vrot.lane.b32.xlu0 %v3651_v51, %s5184_s12  ;;  %3654 = vrot.lane.b32.xlu1 %v3650_v3, %s5185_s25  ;;  %v4294_v3 = vld [vmem:[%s6431_s19] ss:$0 sm:$0xff] }
 0xe72   : > { %3662 = vrot.lane.b32.xlu1 %v3652_v4, %s5186_s5  ;;  %s6426_s5 = sld [smem:[#allocation49_spill]] }
 0xe78   : > { %v4708_v32 = vld [vmem:[%s6426_s5] sm:$0xff]   ;;  %v4709_v33 = vld [vmem:[%s6426_s5 + $0x8] sm:$0xff]   ;;  %v4710_v44 = vld [vmem:[%s6426_s5 + $0x10] sm:$0xff]  }
 0xe79   : > { %v4711_v17 = vld [vmem:[%s6426_s5 + $0x18] sm:$0xff]  }
 0xee0   : > { %v3655_v37 = vpop.permute.xlu1 %3654  ;;  %v3659_v41 = vpop.permute.xlu0 %3658 }
 0xee1   : > { %v3665_v48 = vsel %vm1661_vm5, %v3649_v18, %v3655_v37  ;;  %v4295_v18 = vld [vmem:[%s6432_s11] ss:$0 sm:$0xff] }
 0xee2   : > { %v3666_v6 = vsel %vm2228_vm7, %v3665_v48, %v3659_v41 }
 0xee4   : > { %v3663_v30 = vpop.permute.xlu1 %3662 }
 0xee5   : > { %v3667_v7 = vsel %vm2230_vm8, %v3666_v6, %v3663_v30 }
 0xee6   : > { %v3668_v43 = vpack.c.bf16 %v3667_v7, %v3667_v7 }
 0xee8   : > { %4492 = vmatmul.mubr.msk.bf16.vlgmr.msra.gmra.mrb[36].mxu1 %vm1107_vm4, %v3668_v43 }
 0xee9   : > { %4511 = vmatprep.mubr.msk.bf16.mxu1 %vm5175_vm3, %v5174_v16  ;;  %4504 = vmatpush3.bf16.msra.mxu1 %v4708_v32 }
 0xeea   : > { %4505 = vmatprep.subr.bf16.mxu1 %v5174_v16 }
 0xeed   : > { %4506 = vmatpush3.bf16.msra.mxu1 %v4709_v33 }
 0xeee   : > { %4507 = vmatprep.subr.bf16.mxu1 %v5174_v16 }
 0xef1   : > { %4508 = vmatpush3.bf16.msra.mxu1 %v4710_v44 }
 0xef2   : > { %4509 = vmatprep.subr.bf16.mxu1 %v5174_v16  ;;  %v4288_v16 = vld [vmem:[%s6430_s23] ss:$0 sm:$0xff] }
 0xef5   : > { %4510 = vmatpush3.bf16.msra.mxu1 %v4711_v17 }
 0xfbb   : > { %v3729_v9 = vpop.f32.mrb[36].mxu1 }
 0xfbc   : > { %v3730_v11 = vadd.f32 %v4278_v8, %v3729_v9  ;;  %v4493_v12 = vpop.f32.mrb[37].mxu1 }
 0xfbd   : > { %v3732_v15 = vpop.f32.mrb[38].mxu1 }
 0xfbe   : > { %v4494_v26 = vpop.f32.mrb[39].mxu1  ;;  %v3735_v20 = vadd.f32 %v3730_v11, %v5968_v13  ;;  %v4707_v13 = vld [vmem:[%s6425_s15 + $0x8] sm:$0xff]  }
 0xfbf   : > { %4498 = vmatpush3.bf16.msra.mxu0 %v4707_v13  ;;  %v4297_v26 = vld [vmem:[%s6433_s28] ss:$0 sm:$0xff] (!%p4296_p12) }
 0xfc0   : > { %v3736_v21 = vsel %vm1107_vm4, %v3735_v20, 0.0 }
 0xfc1   : > { %3737 = vadd.xlane.f32.xlu1 %v3736_v21  ;;  %v4298_v21 = vld [vmem:[%s6434_s13] ss:$0 sm:$0xff] (!%p4296_p12) }
0x104e   : > { %v3738_v22 = vpop.xlane.xlu1 %3737 }
0x104f   : > { %v3739_v23 = vmul.f32 0.03125, %v3738_v22 }
0x1051   : > { %v3740_v29 = vsub.f32 %v3735_v20, %v3739_v23 }
0x1053   : > { %v3741_v10 = vmul.f32 %v3740_v29, %v3740_v29 }
0x1055   : > { %v3742_v28 = vsel %vm1107_vm4, %v3741_v10, 0.0 }
0x1056   : > { %3743 = vadd.xlane.f32.xlu0 %v3742_v28 }
0x10e3   : > { %v3744_v35 = vpop.xlane.xlu0 %3743 }
0x10e4   : > { %v3745_v5 = vmul.f32 0.03125, %v3744_v35 }
0x10e6   : > { %v3746_v36 = vadd.f32 1e-05, %v3745_v5 }
0x10e8   : > { %4746 = vrsqrt.f32 %v3746_v36 }
0x10f2   : > { %v4747_v38 = vpop.eup %4746 }
0x10f3   : > { %v3748_v40 = vmul.f32 %v4747_v38, %v3740_v29 }
0x10f5   : > { %v3756_v27 = vmul.f32 %v4282_v25, %v3748_v40 }
0x10f7   : > { %v3764_v14 = vadd.f32 %v4283_v19, %v3756_v27 }
0x10f9   : > { %v3765_v42 = vpack.c.bf16 %v3764_v14, %v3764_v14 }
0x10fb   : > { %4500 = vmatmul.mubr.msk.bf16.vlgmr.msra.gmra.mrb[40].mxu0 %vm1107_vm4, %v3765_v42 }
0x11ce   : > { %v3826_v47 = vpop.f32.mrb[40].mxu0 }
0x11cf   : > { %v3827_v49 = vadd.f32 %v4284_v46, %v3826_v47  ;;  %v4501_v53 = vpop.f32.mrb[41].mxu0 }
0x11d0   : > { %v3829_v55 = vpop.f32.mrb[42].mxu0 }
0x11d1   : > { %v3832_v56 = vmax.f32 %v3827_v49, 0.0  ;;  %v4502_v57 = vpop.f32.mrb[43].mxu0 }
0x11d3   : > { %v3833_v58 = vpack.c.bf16 %v3832_v56, %v3832_v56 }
0x11d5   : > { %4512 = vmatmul.mubr.msk.bf16.vlgmr.msra.gmra.mrb[40].mxu1 %vm3873_vm9, %v3833_v58 }
0x12a8   : > { %v3911_v59 = vpop.f32.mrb[40].mxu1 }
0x12a9   : > { %v3912_v34 = vadd.f32 %v4288_v16, %v3911_v59  ;;  %v4513_v39 = vpop.f32.mrb[41].mxu1 }
0x12aa   : > { %v3914_v45 = vpop.f32.mrb[42].mxu1 }
0x12ab   : > { %v4514_v24 = vpop.f32.mrb[43].mxu1  ;;  %v3917_v54 = vadd.f32 %v3912_v34, %v3764_v14 }
0x12ad   : > { %v3918_v52 = vsel %vm1107_vm4, %v3917_v54, 0.0 }
0x12ae   : > { %3919 = vadd.xlane.f32.xlu0 %v3918_v52 }
0x133b   : > { %v3920_v60 = vpop.xlane.xlu0 %3919 }
0x133c   : > { %v3921_v61 = vmul.f32 0.03125, %v3920_v60 }
0x133e   : > { %v3922_v62 = vsub.f32 %v3917_v54, %v3921_v61 }
0x1340   : > { %v3923_v63 = vmul.f32 %v3922_v62, %v3922_v62 }
0x1342   : > { %v3924_v0 = vsel %vm1107_vm4, %v3923_v63, 0.0 }
0x1343   : > { %3925 = vadd.xlane.f32.xlu1 %v3924_v0 }
0x13d0   : > { %v3926_v1 = vpop.xlane.xlu1 %3925 }
0x13d1   : > { %v3927_v2 = vmul.f32 0.03125, %v3926_v1 }
0x13d3   : > { %v3928_v50 = vadd.f32 1e-05, %v3927_v2 }
0x13d5   : > { %4748 = vrsqrt.f32 %v3928_v50 }
0x13df   : > { %v4749_v51 = vpop.eup %4748 }
0x13e0   : > { %v3930_v4 = vmul.f32 %v4749_v51, %v3922_v62  ;;  %3951 = sbr.rel (%p4296_p12) target bundleno = 5408 (0x1520), region = 172 }
0x13e2   : > { %v3938_v37 = vmul.f32 %v4294_v3, %v3930_v4 }
0x13e4   : > { %v3946_v41 = vadd.f32 %v4295_v18, %v3938_v37 }
0x13e6   : > { %3947 = vst.msk [vmem:[#allocation2] sm:$0xff] %vm1107_vm4, %v3946_v41  ;;  %v3952_v48 = vsel (!%p4296_p12), %vm1107_vm4, %v3946_v41, 0.0 }
0x13e7   : > { %3953 = vadd.xlane.f32.xlu0 %v3952_v48 }
0x1474   : > { %v3954_v30 = vpop.xlane.xlu0 %3953 }
0x1475   : > { %v3955_v6 = vmul.f32 0.03125, %v3954_v30 }
0x1477   : > { %v3956_v7 = vsub.f32 %v3946_v41, %v3955_v6 }
0x1479   : > { %v3957_v43 = vmul.f32 %v3956_v7, %v3956_v7 }
0x147b   : > { %v3958_v8 = vsel %vm1107_vm4, %v3957_v43, 0.0 }
0x147c   : > { %3959 = vadd.xlane.f32.xlu0 %v3958_v8 }
0x1509   : > { %v3960_v9 = vpop.xlane.xlu0 %3959 }
0x150a   : > { %v3961_v11 = vmul.f32 0.03125, %v3960_v9 }
0x150c   : > { %v3962_v12 = vadd.f32 1e-05, %v3961_v11 }
0x150e   : > { %4750 = vrsqrt.f32 %v3962_v12 }
0x1518   : > { %v4751_v15 = vpop.eup %4750 }
0x1519   : > { %v3964_v20 = vmul.f32 %v4751_v15, %v3956_v7 }
0x151b   : > { %v3972_v22 = vmul.f32 %v4297_v26, %v3964_v20 }
0x151d   : > { %v3980_v23 = vadd.f32 %v4298_v21, %v3972_v22 }
0x151f   : > { %3981 = vst.msk [vmem:[%s991_s17] sm:$0xff] %vm1107_vm4, %v3980_v23 }
0x1520 PF: > { %s4300_s22 = sshll.u32 %s5146_s8, 7  ;;  %s6435_s24 = sld [smem:[#allocation59_spill]] }
0x1521   : > { %s3996_s2 = sshll.u32 %s991_s17, 4  ;;  %s3983_s29 = scalar_lea.sflag [#allocation6], %s5671_s26  ;;  %s3997_s2 = int_to_ptr.vmem [resolvable:$true] %s3996_s2 }
0x1522   : > { %s5036_s11 = scalar_lea.vmem %s3997_s2, 128  ;;  %p6436_p7 = scmp.ne.s32.totalorder %s6401_s14, 0 }
0x1523   : > { %p5037_p2 = scmp.ne.s32.totalorder %s3997_s2, %s5036_s11  ;;  %s5187_s12 = smov [#allocation21]  }
0x1524   : > { %s5040_s25 = sshll.u32 %s5187_s12, 4  ;;  %s5041_s25 = int_to_ptr.vmem [resolvable:$false] %s5040_s25 }
0x1525   : > { %p5038_p3 = pnand %p5037_p2, %p6436_p7  ;;  %s5042_s28 = scalar_lea.vmem %s5041_s25, 256 }
0x1526   : > { %s6254_s19 = scalar_lea.hbm %s6435_s24, %s4300_s22  ;;  %p5043_p1 = scmp.lt.s32.totalorder %s3997_s2, %s5041_s25 }
0x1527   : > { %p5039_p9 = pneg %p5038_p3  ;;  %p5044_p11 = scmp.lt.s32.totalorder %s5042_s28, %s5036_s11 }
0x1529   : > { %p5045_p13 = por %p5044_p11, %p5043_p1 }
0x152b   : > { %p5046_p0 = pnand %p5045_p13, %p5039_p9 }
0x152d   : > { %5049 = shalt.err (!%p5046_p0)
}
0x152e   : > { %s5050_s8 = scalar_lea.hbm %s6254_s19, 128  ;;  %s5054_s17 = scalar_lea.hbm %s6435_s24, 256 }
0x152f   : > { %p5051_p5 = scmp.ne.s32.totalorder %s6254_s19, %s5050_s8  ;;  %p5055_p6 = scmp.lt.u32.totalorder %s6254_s19, %s6435_s24 }
0x1530   : > { %p5056_p8 = scmp.lt.u32.totalorder %s5054_s17, %s5050_s8  ;;  %p5058_p2 = scmp.lt.u32.totalorder %s5050_s8, %s6254_s19 }
0x1531   : > { %p5052_p4 = pnand %p5051_p5, %p6436_p7 }
0x1532   : > { %p5057_p12 = por %p5056_p8, %p5055_p6 }
0x1533   : > { %p5053_p10 = pneg %p5052_p4 }
0x1534   : > { %p5059_p3 = por %p5058_p2, %p5057_p12 }
0x1536   : > { %p5060_p9 = pnand %p5059_p3, %p5053_p10 }
0x1538   : > { %5063 = shalt.err (!%p5060_p9)
}
0x1539   : > { %4551 = dma.vmem_to_hbm [thread:$0]  (%p6436_p7), %s3997_s2, 128, %s6254_s19, %s3983_s29  }
0x153a PF: > { %p4606_p1 = scmp.ge.s32.totalorder %s5158_s0, 2  ;;  %s4008_s13 = sand.u32 1, %s5130_s27  }
0x153b   : > { %p6437_p11 = scmp.ne.s32.totalorder %s6402_s16, 0  ;;  %s4009_s22 = scalar_lea.sflag [#allocation6], %s4008_s13 }
0x153d   : > { %p4586_p13 = pnand %p4606_p1, %p6437_p11 }
0x153f   : > { %5125 = dma.done.wait (!%p4586_p13), %s4009_s22, 128  }
0x1540   : > { %5127 = vsyncadd (!%p4586_p13), %s4009_s22, 4294967168  ;;  %s49_s0 = sadd.s32 1, %s5158_s0   ;;  %s6438_s8 = sld [smem:[#allocation30_spill]] }
0x1541   : > { %p46_p0 = scmp.ge.s32.totalorder %s49_s0, 6   ;;  %s6439_s14 = sld [smem:[#allocation31_spill]] }
0x1542   : > { %s6440_s29 = sld [smem:[#allocation32_spill]]  ;;  %s6441_s27 = smov %s5134_s3 }
0x1543   : > { %s6442_s3 = smov %s5138_s7  ;;  %s6443_s7 = smov %s5599_s6 }
0x1544   : > { %s6444_s28 = smov %s5150_s4  ;;  %48 = sbr.rel (!%p46_p0) target bundleno = 41 (0x29), region = 228 }
0x1547   : > { %s6445_s4 = smov %s6439_s14 }
0x154b   :  { %4014 = vsyncpa [#allocation5], 1 }
0x154c   :  { %4016 = vsyncpa [#allocation5 + $0x1], 1 }
0x154d   :  { %4017 = vsyncpa [#allocation8], 1 }
0x154e   :  { %4019 = vsyncpa [#allocation8 + $0x1], 1 }
0x154f   :  { %4020 = vsyncpa [#allocation11], 1 }
0x1550   :  { %4021 = vsyncpa [#allocation14], 1 }
0x1551   :  { %4022 = vsyncpa [#allocation17], 1 }
0x1552   :  { %4023 = vsyncpa [#allocation20], 1 }
0x1553   :  { %4024 = vsyncpa [#allocation6], 1 }
0x1554   :  { %4026 = vsyncpa [#allocation6 + $0x1], 1 }

// kernel: tpu_custom_call.1
= control target key start
LH: loop header
LB: loop body
LE: loop exit
PB: predicated region body
PF: predicated region fallthrough
CT: control target
= control target key end

     0   :  { %s6304_s0 = inlined_call_operand.vmem [shape: f32[2,8,32], index: 0, kind: input, shape index: {}]   ;;  %s6305_s1 = inlined_call_operand.vmem [shape: f32[2,16,32], index: 1, kind: input, shape index: {}]   ;;  %s6306_s2 = inlined_call_operand.hbm [shape: f32[2,8,8], index: 2, kind: input, shape index: {}]   ;;  %s6307_s3 = inlined_call_operand.hbm [shape: f32[2,8,16], index: 3, kind: input, shape index: {}]   ;;  %s6308_s4 = inlined_call_operand.hbm [shape: bf16[32,96], index: 4, kind: input, shape index: {}]   ;;  %s6309_s5 = inlined_call_operand.vmem [shape: f32[1,96], index: 5, kind: input, shape index: {}]   ;;  %s6310_s6 = inlined_call_operand.hbm [shape: bf16[32,32], index: 6, kind: input, shape index: {}]   ;;  %s6311_s7 = inlined_call_operand.hbm [shape: f32[1,32], index: 7, kind: input, shape index: {}]   ;;  %s6312_s8 = inlined_call_operand.hbm [shape: bf16[32,32], index: 8, kind: input, shape index: {}]   ;;  %s6313_s9 = inlined_call_operand.hbm [shape: f32[1,32], index: 9, kind: input, shape index: {}]   ;;  %s6314_s10 = inlined_call_operand.vmem [shape: bf16[32,64], index: 10, kind: input, shape index: {}]   ;;  %s6315_s11 = inlined_call_operand.hbm [shape: f32[1,64], index: 11, kind: input, shape index: {}]   ;;  %s6316_s12 = inlined_call_operand.hbm [shape: bf16[32,32], index: 12, kind: input, shape index: {}]   ;;  %s6317_s13 = inlined_call_operand.hbm [shape: f32[1,32], index: 13, kind: input, shape index: {}]   ;;  %s6318_s14 = inlined_call_operand.vmem [shape: bf16[32,64], index: 14, kind: input, shape index: {}]   ;;  %s6319_s15 = inlined_call_operand.vmem [shape: f32[1,64], index: 15, kind: input, shape index: {}]   ;;  %s6320_s16 = inlined_call_operand.vmem [shape: bf16[64,32], index: 16, kind: input, shape index: {}]   ;;  %s6321_s17 = inlined_call_operand.vmem [shape: f32[1,32], index: 17, kind: input, shape index: {}]   ;;  %s6322_s18 = inlined_call_operand.vmem [shape: f32[1,32], index: 18, kind: input, shape index: {}]   ;;  %s6323_s19 = inlined_call_operand.vmem [shape: f32[1,32], index: 19, kind: input, shape index: {}]   ;;  %s6324_s20 = inlined_call_operand.vmem [shape: f32[1,32], index: 20, kind: input, shape index: {}]   ;;  %s6325_s21 = inlined_call_operand.vmem [shape: f32[1,32], index: 21, kind: input, shape index: {}]   ;;  %s6326_s22 = inlined_call_operand.vmem [shape: f32[1,32], index: 22, kind: input, shape index: {}]   ;;  %s6327_s23 = inlined_call_operand.vmem [shape: f32[1,32], index: 23, kind: input, shape index: {}]   ;;  %s6328_s24 = inlined_call_operand.vmem [shape: f32[1,32], index: 24, kind: input, shape index: {}]   ;;  %s6329_s25 = inlined_call_operand.vmem [shape: f32[1,32], index: 25, kind: input, shape index: {}]   ;;  %s6330_s26 = inlined_call_operand.hbm [shape: f32[2,8,32], index: 26, kind: output, shape index: {}]  }
   0x1   :  { %6355 = sst [smem:[#allocation33_spill]] %s6304_s0 }
   0x2   :  { %6356 = sst [smem:[#allocation34_spill]] %s6305_s1 }
   0x3   :  { %6357 = sst [smem:[#allocation35_spill]] %s6306_s2 }
   0x4   :  { %6358 = sst [smem:[#allocation36_spill]] %s6307_s3 }
   0x5   :  { %6359 = sst [smem:[#allocation37_spill]] %s6308_s4 }
   0x6   :  { %6360 = sst [smem:[#allocation38_spill]] %s6309_s5 }
   0x7   :  { %6361 = sst [smem:[#allocation39_spill]] %s6310_s6 }
   0x8   :  { %6362 = sst [smem:[#allocation40_spill]] %s6311_s7 }
   0x9   :  { %6363 = sst [smem:[#allocation41_spill]] %s6312_s8 }
   0xa   :  { %6364 = sst [smem:[#allocation42_spill]] %s6313_s9 }
   0xb   :  { %6365 = sst [smem:[#allocation43_spill]] %s6314_s10 }
   0xc   :  { %6366 = sst [smem:[#allocation44_spill]] %s6315_s11 }
   0xd   :  { %6367 = sst [smem:[#allocation45_spill]] %s6316_s12 }
   0xe   :  { %6368 = sst [smem:[#allocation46_spill]] %s6317_s13 }
   0xf   :  { %6369 = sst [smem:[#allocation47_spill]] %s6318_s14 }
  0x10   :  { %6370 = sst [smem:[#allocation48_spill]] %s6319_s15 }
  0x11   :  { %6371 = sst [smem:[#allocation49_spill]] %s6320_s16 }
  0x12   :  { %6372 = sst [smem:[#allocation50_spill]] %s6321_s17 }
  0x13   :  { %6373 = sst [smem:[#allocation51_spill]] %s6322_s18 }
  0x14   :  { %6374 = sst [smem:[#allocation52_spill]] %s6323_s19 }
  0x15   :  { %6375 = sst [smem:[#allocation53_spill]] %s6324_s20 }
  0x16   :  { %6376 = sst [smem:[#allocation54_spill]] %s6325_s21 }
  0x17   :  { %6377 = sst [smem:[#allocation55_spill]] %s6326_s22 }
  0x18   :  { %6378 = sst [smem:[#allocation56_spill]] %s6327_s23 }
  0x19   :  { %6379 = sst [smem:[#allocation57_spill]] %s6328_s24 }
  0x1a   :  { %6380 = sst [smem:[#allocation58_spill]] %s6329_s25 }
  0x1b   :  { %6381 = sst [smem:[#allocation59_spill]] %s6330_s26 }
  0x1c   :  { %31 = vsyncpa [#allocation5], 0 }
  0x1d   :  { %33 = vsyncpa [#allocation5 + $0x1], 0 }
  0x1e   :  { %34 = vsyncpa [#allocation8], 0 }
  0x1f   :  { %36 = vsyncpa [#allocation8 + $0x1], 0 }
  0x20   :  { %37 = vsyncpa [#allocation11], 0 }
  0x21   :  { %38 = vsyncpa [#allocation14], 0 }
  0x22   :  { %39 = vsyncpa [#allocation17], 0 }
  0x23   :  { %40 = vsyncpa [#allocation20], 0 }
  0x24   :  { %41 = vsyncpa [#allocation6], 0 }
  0x25   :  { %43 = vsyncpa [#allocation6 + $0x1], 0  ;;  %s5323_s27 = smov 0   ;;  %s5325_s3 = smov 0  }
  0x26   :  { %s5327_s7 = smov 0   ;;  %s5329_s28 = smov 0  }
  0x27   :  { %s5331_s8 = smov 0   ;;  %s5333_s4 = smov 0  }
  0x28   :  { %s5335_s29 = smov 0   ;;  %s5337_s0 = smov 0  }
  0x29 LB: > { %6382 = sst [smem:[#allocation30_spill]] %s5154_s29  ;;  %s5364_s9 = sadd.s32 4294967295, %s5158_s0   ;;  %s5158_s0 = sphi %s5337_s0, %s49_s0   ;;  %s5154_s29 = sphi %s5335_s29, %s6440_s29   ;;  %s5150_s4 = sphi %s5333_s4, %s6445_s4   ;;  %s5146_s8 = sphi %s5331_s8, %s6438_s8   ;;  %s5142_s28 = sphi %s5329_s28, %s6444_s28   ;;  %s5138_s7 = sphi %s5327_s7, %s6443_s7   ;;  %s5134_s3 = sphi %s5325_s3, %s6442_s3   ;;  %s5130_s27 = sphi %s5323_s27, %s6441_s27  }
  0x2a   : > { %p4202_p0 = scmp.ge.s32.totalorder %s5158_s0, 1  ;;  %p6342_p1 = scmp.eq.s32.totalorder %s5364_s9, 0 }
  0x2b   : > { %p658_p2 = scmp.lt.s32.totalorder %s5158_s0, 5  ;;  %s5160_s2 = smov [#allocation9]  }
  0x2c   : > { %s670_s5 = sshll.u32 %s5160_s2, 4  ;;  %s5161_s6 = smov [#allocation10]   ;;  %s5373_s5 = int_to_ptr.vmem [resolvable:$true] %s670_s5 }
  0x2d   : > { %p5369_p3 = pnand %p4202_p0, %p658_p2  ;;  %s686_s1 = sshll.u32 %s5161_s6, 4  ;;  %s5383_s1 = int_to_ptr.vmem [resolvable:$true] %s686_s1 }
  0x2e   : > { %s5162_s26 = smov [#allocation13]   ;;  %s6385_s2 = sld [smem:[#allocation37_spill]] }
  0x2f   : > { %s6383_s30 = scalar_select %p5369_p3, 1, 0 }
  0x30   : > { %p4553_p4 = pneg %p5369_p3  ;;  %s5385_s25 = sshll.u32 %s5162_s26, 4  ;;  %s711_s25 = int_to_ptr.vmem [resolvable:$true] %s5385_s25 }
  0x32   : > { %p5379_p5 = pnand %p4553_p4, %p6342_p1 }
  0x34   : > { %s4752_s22 = scalar_lea.hbm %s6385_s2, 256  ;;  %p5395_p7 = pneg %p5379_p5 }
  0x35   : > { %p4753_p6 = scmp.ne.s32.totalorder %s6385_s2, %s4752_s22  ;;  %p4759_p10 = scmp.lt.u32.totalorder %s4752_s22, %s6385_s2 }
  0x37   : > { %p4755_p8 = pnand %p5395_p7, %p4753_p6 }
  0x39   : > { %p4756_p9 = pneg %p4755_p8 }
  0x3b   : > { %p4761_p11 = pnand %p4759_p10, %p4756_p9 }
  0x3d   : > { %4764 = shalt.err (!%p4761_p11)
}
  0x3e   : > { %s4765_s15 = scalar_lea.vmem %s5373_s5, 256  ;;  %p4773_p2 = scmp.lt.s32.totalorder %s5373_s5, %s5373_s5 }
  0x3f   : > { %p4766_p12 = scmp.ne.s32.totalorder %s5373_s5, %s4765_s15  ;;  %p4774_p4 = scmp.lt.s32.totalorder %s4765_s15, %s4765_s15 }
  0x41   : > { %p4768_p13 = pnand %p4766_p12, %p5395_p7  ;;  %p4775_p6 = por %p4774_p4, %p4773_p2 }
  0x43   : > { %p4769_p0 = pneg %p4768_p13 }
  0x45   : > { %p4776_p8 = pnand %p4775_p6, %p4769_p0 }
  0x47   : > { %4779 = shalt.err (!%p4776_p8)
}
  0x48   : > { %s6346_s17 = smov 64   ;;  %s6347_s22 = smov 4  }
  0x49   : > { %4556 = dma.hbm_to_vmem [thread:$0]  (!%p5379_p5), %s6385_s2, 256, %s5373_s5, [#allocation8], %s6346_s17, %s6346_s17, %s6347_s22  }
  0x4a   : > { %s6387_s20 = sld [smem:[#allocation39_spill]] }
  0x50   : > { %s4780_s15 = scalar_lea.hbm %s6387_s20, 256 }
  0x51   : > { %p4781_p9 = scmp.ne.s32.totalorder %s6387_s20, %s4780_s15  ;;  %p4787_p12 = scmp.lt.u32.totalorder %s4780_s15, %s6387_s20 }
  0x53   : > { %p4783_p10 = pnand %p4781_p9, %p5395_p7 }
  0x55   : > { %p4784_p11 = pneg %p4783_p10 }
  0x57   : > { %p4789_p13 = pnand %p4787_p12, %p4784_p11 }
  0x59   : > { %4792 = shalt.err (!%p4789_p13)
}
  0x5a   : > { %s4793_s5 = scalar_lea.vmem %s5383_s1, 256  ;;  %p4801_p6 = scmp.lt.s32.totalorder %s5383_s1, %s5383_s1 }
  0x5b   : > { %p4794_p0 = scmp.ne.s32.totalorder %s5383_s1, %s4793_s5  ;;  %p4802_p8 = scmp.lt.s32.totalorder %s4793_s5, %s4793_s5 }
  0x5d   : > { %p4796_p2 = pnand %p4794_p0, %p5395_p7  ;;  %p4803_p9 = por %p4802_p8, %p4801_p6 }
  0x5f   : > { %p4797_p4 = pneg %p4796_p2 }
  0x61   : > { %p4804_p10 = pnand %p4803_p9, %p4797_p4 }
  0x63   : > { %4807 = shalt.err (!%p4804_p10)
}
  0x64   : > { %4559 = dma.hbm_to_vmem [thread:$0]  (!%p5379_p5), %s6387_s20, 256, %s5383_s1, [#allocation11], %s6346_s17, %s6346_s17, %s6347_s22  }
  0x65   : > { %s6388_s23 = sld [smem:[#allocation41_spill]] }
  0x6b   : > { %s4808_s24 = scalar_lea.hbm %s6388_s23, 256 }
  0x6c   : > { %p4809_p11 = scmp.ne.s32.totalorder %s6388_s23, %s4808_s24  ;;  %p4815_p0 = scmp.lt.u32.totalorder %s4808_s24, %s6388_s23 }
  0x6e   : > { %p4811_p12 = pnand %p4809_p11, %p5395_p7 }
  0x70   : > { %p4812_p13 = pneg %p4811_p12 }
  0x72   : > { %p4817_p2 = pnand %p4815_p0, %p4812_p13 }
  0x74   : > { %4820 = shalt.err (!%p4817_p2)
}
  0x75   : > { %s4821_s14 = scalar_lea.vmem %s711_s25, 256  ;;  %p4829_p9 = scmp.lt.s32.totalorder %s711_s25, %s711_s25 }
  0x76   : > { %p4822_p4 = scmp.ne.s32.totalorder %s711_s25, %s4821_s14  ;;  %p4830_p10 = scmp.lt.s32.totalorder %s4821_s14, %s4821_s14 }
  0x78   : > { %p4824_p6 = pnand %p4822_p4, %p5395_p7  ;;  %p4831_p1 = por %p4830_p10, %p4829_p9 }
  0x7a   : > { %p4825_p8 = pneg %p4824_p6 }
  0x7c   : > { %p4832_p3 = pnand %p4831_p1, %p4825_p8 }
  0x7e   : > { %4835 = shalt.err (!%p4832_p3)
}
  0x7f   : > { %4565 = dma.hbm_to_vmem [thread:$0]  (!%p5379_p5), %s6388_s23, 256, %s711_s25, [#allocation14], %s6346_s17, %s6346_s17, %s6347_s22  }
  0x80   : > { %s5165_s18 = smov [#allocation16]   ;;  %s5166_s24 = smov [#allocation12]  }
  0x81   : > { %s738_s19 = sshll.u32 %s5165_s18, 4  ;;  %s700_s6 = sshll.u32 %s5166_s24, 4  ;;  %s739_s19 = int_to_ptr.vmem [resolvable:$true] %s738_s19  ;;  %s701_s6 = int_to_ptr.vmem [resolvable:$true] %s700_s6 }
  0x82   : > { %s6389_s11 = sld [smem:[#allocation44_spill]] }
  0x88   : > { %s4836_s5 = scalar_lea.hbm %s6389_s11, 16 }
  0x89   : > { %p4837_p1 = scmp.ne.s32.totalorder %s6389_s11, %s4836_s5  ;;  %p4843_p12 = scmp.lt.u32.totalorder %s4836_s5, %s6389_s11 }
  0x8b   : > { %p4839_p3 = pnand %p4837_p1, %p5395_p7 }
  0x8d   : > { %p4840_p11 = pneg %p4839_p3 }
  0x8f   : > { %p4845_p13 = pnand %p4843_p12, %p4840_p11 }
  0x91   : > { %4848 = shalt.err (!%p4845_p13)
}
  0x92   : > { %s4849_s25 = scalar_lea.vmem %s739_s19, 16  ;;  %s4856_s16 = scalar_lea.vmem %s739_s19, 32 }
  0x93   : > { %p4850_p0 = scmp.ne.s32.totalorder %s739_s19, %s4849_s25  ;;  %p4857_p6 = scmp.lt.s32.totalorder %s739_s19, %s739_s19 }
  0x94   : > { %p4858_p8 = scmp.lt.s32.totalorder %s4856_s16, %s4849_s25 }
  0x95   : > { %p4852_p2 = pnand %p4850_p0, %p5395_p7 }
  0x96   : > { %p4859_p9 = por %p4858_p8, %p4857_p6 }
  0x97   : > { %p4853_p4 = pneg %p4852_p2 }
  0x99   : > { %p4860_p10 = pnand %p4859_p9, %p4853_p4 }
  0x9b   : > { %4863 = shalt.err (!%p4860_p10)
}
  0x9c   : > { %4571 = dma.hbm_to_vmem [thread:$0]  (!%p5379_p5), %s6389_s11, 16, %s739_s19, [#allocation17]  }
  0x9d   : > { %s6390_s26 = sld [smem:[#allocation40_spill]] }
  0xa3   : > { %s4864_s15 = scalar_lea.hbm %s6390_s26, 16 }
  0xa4   : > { %p4865_p1 = scmp.ne.s32.totalorder %s6390_s26, %s4864_s15  ;;  %p4871_p12 = scmp.lt.u32.totalorder %s4864_s15, %s6390_s26 }
  0xa6   : > { %p4867_p3 = pnand %p4865_p1, %p5395_p7 }
  0xa8   : > { %p4868_p11 = pneg %p4867_p3 }
  0xaa   : > { %p4873_p13 = pnand %p4871_p12, %p4868_p11 }
  0xac   : > { %4876 = shalt.err (!%p4873_p13)
}
  0xad   : > { %s4877_s16 = scalar_lea.vmem %s701_s6, 16  ;;  %s4884_s19 = scalar_lea.vmem %s701_s6, 32 }
  0xae   : > { %p4878_p0 = scmp.ne.s32.totalorder %s701_s6, %s4877_s16  ;;  %p4885_p6 = scmp.lt.s32.totalorder %s701_s6, %s701_s6 }
  0xaf   : > { %p4886_p8 = scmp.lt.s32.totalorder %s4884_s19, %s4877_s16 }
  0xb0   : > { %p4880_p2 = pnand %p4878_p0, %p5395_p7 }
  0xb1   : > { %p4887_p9 = por %p4886_p8, %p4885_p6 }
  0xb2   : > { %p4881_p4 = pneg %p4880_p2 }
  0xb4   : > { %p4888_p10 = pnand %p4887_p9, %p4881_p4 }
  0xb6   : > { %4891 = shalt.err (!%p4888_p10)
}
  0xb7   : > { %4562 = dma.hbm_to_vmem [thread:$0]  (!%p5379_p5), %s6390_s26, 16, %s701_s6, [#allocation11]  }
  0xb8   : > { %s5167_s20 = smov [#allocation15]   ;;  %s5168_s15 = smov [#allocation18]  }
  0xb9   : > { %s724_s24 = sshll.u32 %s5167_s20, 4  ;;  %s748_s5 = sshll.u32 %s5168_s15, 4  ;;  %s725_s24 = int_to_ptr.vmem [resolvable:$true] %s724_s24  ;;  %s749_s5 = int_to_ptr.vmem [resolvable:$true] %s748_s5 }
  0xba   : > { %s6391_s25 = sld [smem:[#allocation42_spill]] }
  0xc0   : > { %s4892_s17 = scalar_lea.hbm %s6391_s25, 16 }
  0xc1   : > { %p4893_p1 = scmp.ne.s32.totalorder %s6391_s25, %s4892_s17  ;;  %p4899_p12 = scmp.lt.u32.totalorder %s4892_s17, %s6391_s25 }
  0xc3   : > { %p4895_p3 = pnand %p4893_p1, %p5395_p7 }
  0xc5   : > { %p4896_p11 = pneg %p4895_p3 }
  0xc7   : > { %p4901_p13 = pnand %p4899_p12, %p4896_p11 }
  0xc9   : > { %4904 = shalt.err (!%p4901_p13)
}
  0xca   : > { %s4905_s6 = scalar_lea.vmem %s725_s24, 16  ;;  %s4912_s18 = scalar_lea.vmem %s725_s24, 32 }
  0xcb   : > { %p4906_p0 = scmp.ne.s32.totalorder %s725_s24, %s4905_s6  ;;  %p4913_p6 = scmp.lt.s32.totalorder %s725_s24, %s725_s24 }
  0xcc   : > { %p4914_p8 = scmp.lt.s32.totalorder %s4912_s18, %s4905_s6 }
  0xcd   : > { %p4908_p2 = pnand %p4906_p0, %p5395_p7 }
  0xce   : > { %p4915_p9 = por %p4914_p8, %p4913_p6 }
  0xcf   : > { %p4909_p4 = pneg %p4908_p2 }
  0xd1   : > { %p4916_p10 = pnand %p4915_p9, %p4909_p4 }
  0xd3   : > { %4919 = shalt.err (!%p4916_p10)
}
  0xd4   : > { %4568 = dma.hbm_to_vmem [thread:$0]  (!%p5379_p5), %s6391_s25, 16, %s725_s24, [#allocation14]  }
  0xd5   : > { %s6392_s12 = sld [smem:[#allocation45_spill]] }
  0xdb   : > { %s4920_s14 = scalar_lea.hbm %s6392_s12, 256 }
  0xdc   : > { %p4921_p1 = scmp.ne.s32.totalorder %s6392_s12, %s4920_s14  ;;  %p4927_p12 = scmp.lt.u32.totalorder %s4920_s14, %s6392_s12 }
  0xde   : > { %p4923_p3 = pnand %p4921_p1, %p5395_p7 }
  0xe0   : > { %p4924_p11 = pneg %p4923_p3 }
  0xe2   : > { %p4929_p13 = pnand %p4927_p12, %p4924_p11 }
  0xe4   : > { %4932 = shalt.err (!%p4929_p13)
}
  0xe5   : > { %s4933_s6 = scalar_lea.vmem %s749_s5, 256  ;;  %p4941_p6 = scmp.lt.s32.totalorder %s749_s5, %s749_s5 }
  0xe6   : > { %p4934_p0 = scmp.ne.s32.totalorder %s749_s5, %s4933_s6  ;;  %p4942_p8 = scmp.lt.s32.totalorder %s4933_s6, %s4933_s6 }
  0xe8   : > { %p4936_p2 = pnand %p4934_p0, %p5395_p7  ;;  %p4943_p9 = por %p4942_p8, %p4941_p6 }
  0xea   : > { %p4937_p4 = pneg %p4936_p2 }
  0xec   : > { %p4944_p10 = pnand %p4943_p9, %p4937_p4 }
  0xee   : > { %4947 = shalt.err (!%p4944_p10)
}
  0xef   : > { %s6393_s24 = smov 4   ;;  %s6394_s18 = smov 64  }
  0xf0   : > { %4574 = dma.hbm_to_vmem [thread:$0]  (!%p5379_p5), %s6392_s12, 256, %s749_s5, [#allocation17], %s6394_s18, %s6394_s18, %s6393_s24  }
  0xf1   : > { %s5169_s17 = smov [#allocation19]   ;;  %s6395_s13 = sld [smem:[#allocation46_spill]] }
  0xf2   : > { %s762_s22 = sshll.u32 %s5169_s17, 4  ;;  %s763_s22 = int_to_ptr.vmem [resolvable:$true] %s762_s22 }
  0xf7   : > { %s4948_s16 = scalar_lea.hbm %s6395_s13, 16 }
  0xf8   : > { %p4949_p1 = scmp.ne.s32.totalorder %s6395_s13, %s4948_s16  ;;  %p4955_p12 = scmp.lt.u32.totalorder %s4948_s16, %s6395_s13 }
  0xfa   : > { %p4951_p3 = pnand %p4949_p1, %p5395_p7 }
  0xfc   : > { %p4952_p11 = pneg %p4951_p3 }
  0xfe   : > { %p4957_p13 = pnand %p4955_p12, %p4952_p11 }
 0x100   : > { %4960 = shalt.err (!%p4957_p13)
}
 0x101   : > { %s4961_s5 = scalar_lea.vmem %s763_s22, 16  ;;  %s4968_s24 = scalar_lea.vmem %s763_s22, 32 }
 0x102   : > { %p4962_p0 = scmp.ne.s32.totalorder %s763_s22, %s4961_s5  ;;  %p4969_p6 = scmp.lt.s32.totalorder %s763_s22, %s763_s22 }
 0x103   : > { %p4970_p8 = scmp.lt.s32.totalorder %s4968_s24, %s4961_s5 }
 0x104   : > { %p4964_p2 = pnand %p4962_p0, %p5395_p7 }
 0x105   : > { %p4971_p9 = por %p4970_p8, %p4969_p6 }
 0x106   : > { %p4965_p4 = pneg %p4964_p2 }
 0x108   : > { %p4972_p10 = pnand %p4971_p9, %p4965_p4 }
 0x10a   : > { %4975 = shalt.err (!%p4972_p10)
}
 0x10b   : > { %4577 = dma.hbm_to_vmem [thread:$0]  (!%p5379_p5), %s6395_s13, 16, %s763_s22, [#allocation20]  }
 0x10c   : > { %s4201_s11 = sadd.s32 4294967294, %s5158_s0   ;;  %s58_s21 = sadd.s32 1, %s5150_s4 }
 0x10d   : > { %p59_p7 = scmp.ge.s32.totalorder %s58_s21, 2  ;;  %s61_s10 = sadd.s32 1, %s5154_s29 }
 0x10e   : > { %s120_s15 = sadd.s32 1, %s5138_s7  ;;  %p127_p1 = scmp.ne.s32.totalorder %s5138_s7, %s5134_s3 }
 0x10f   : > { %s6447_s21 = smov (%p59_p7, %s58_s21), 0  ;;  %s6449_s10 = smov (!%p59_p7, %s61_s10), %s5154_s29 }
 0x110   : > { %6396 = sst [smem:[#allocation31_spill]] %s6447_s21  ;;  %p128_p3 = scmp.eq.s32.totalorder %s5158_s0, 0 }
 0x111   : > { %p133_p11 = scmp.ne.s32.totalorder %s5134_s3, %s5130_s27  ;;  %p63_p12 = scmp.ge.s32.totalorder %s6449_s10, 2 }
 0x112   : > { %p645_p13 = scmp.eq.s32.totalorder %s5364_s9, 3  ;;  %p5573_p0 = por %p128_p3, %p127_p1 }
 0x113   : > { %p6398_p5 = scmp.eq.s32.totalorder %s5364_s9, 0  ;;  %s6451_s10 = smov (%p63_p12, %s6449_s10), 0 }
 0x114   : > { %6400 = sst [smem:[#allocation32_spill]] %s6451_s10  ;;  %p5585_p4 = por %p645_p13, %p127_p1 }
 0x115   : > { %p5579_p2 = por %p6398_p5, %p133_p11  ;;  %p651_p6 = scmp.eq.s32.totalorder %s4201_s11, 3 }
 0x116   : > { %s6401_s14 = scalar_select %p5585_p4, 1, 0 }
 0x117   : > { %s6399_s22 = scalar_select %p5579_p2, 1, 0 }
 0x118   : > { %s117_s1 = ssub.s32 %s5154_s29, %s6451_s10  ;;  %p4597_p8 = scmp.lt.s32.totalorder %s5158_s0, 4 }
 0x119   : > { %p118_p9 = scmp.eq.s32.totalorder %s117_s1, 0  ;;  %p5592_p10 = por %p651_p6, %p133_p11 }
 0x11a   : > { %s824_s19 = sand.u32 1, %s5138_s7   ;;  %s4213_s2 = sshll.u32 %s5154_s29, 7 }
 0x11b   : > { %s6402_s16 = scalar_select %p5592_p10, 1, 0 }
 0x11c   : > { %s5599_s6 = scalar_select %p118_p9, %s5138_s7, %s120_s15  }
 0x11d   : > { %s5601_s5 = sshll.u32 %s824_s19, 3  ;;  %s6403_s20 = sld [smem:[#allocation35_spill]] }
 0x11e   : > { %s828_s11 = scalar_lea.vmem [#allocation4], %s5601_s5  ;;  %p5611_p7 = pnand %p4597_p8, %p5573_p0 }
 0x11f   : > { %s835_s1 = sshll.u32 %s828_s11, 4  ;;  %s6405_s18 = sld [smem:[#allocation36_spill]]  ;;  %s5615_s1 = int_to_ptr.vmem [resolvable:$true] %s835_s1 }
 0x120   : > { %s825_s25 = scalar_lea.sflag [#allocation5], %s824_s19  ;;  %p4978_p3 = pneg %p5611_p7 }
 0x123   : > { %s5606_s12 = scalar_lea.hbm %s6403_s20, %s4213_s2  ;;  %s4981_s10 = scalar_lea.hbm %s6403_s20, 256 }
 0x124   : > { %s4976_s26 = scalar_lea.hbm %s5606_s12, 128  ;;  %p4982_p13 = scmp.lt.u32.totalorder %s5606_s12, %s6403_s20 }
 0x125   : > { %s5620_s23 = scalar_lea.hbm %s6405_s18, %s4213_s2  ;;  %p4977_p1 = scmp.ne.s32.totalorder %s5606_s12, %s4976_s26 }
 0x126   : > { %p4983_p0 = scmp.lt.u32.totalorder %s4981_s10, %s4976_s26  ;;  %p4985_p6 = scmp.lt.u32.totalorder %s4976_s26, %s5606_s12 }
 0x127   : > { %p4979_p11 = pnand %p4978_p3, %p4977_p1 }
 0x128   : > { %p4984_p5 = por %p4983_p0, %p4982_p13 }
 0x129   : > { %p4980_p12 = pneg %p4979_p11 }
 0x12a   : > { %p4986_p8 = por %p4985_p6, %p4984_p5 }
 0x12c   : > { %p4987_p9 = pnand %p4986_p8, %p4980_p12 }
 0x12e   : > { %4990 = shalt.err (!%p4987_p9)
}
 0x12f   : > { %s4991_s19 = scalar_lea.vmem %s5615_s1, 128  ;;  %s5170_s2 = smov [#allocation4]  }
 0x130   : > { %p4992_p1 = scmp.ne.s32.totalorder %s5615_s1, %s4991_s19  ;;  %s4996_s15 = sshll.u32 %s5170_s2, 4  ;;  %s4997_s15 = int_to_ptr.vmem [resolvable:$false] %s4996_s15 }
 0x131   : > { %s4998_s29 = scalar_lea.vmem %s4997_s15, 256  ;;  %p4999_p4 = scmp.lt.s32.totalorder %s5615_s1, %s4997_s15 }
 0x132   : > { %p4994_p11 = pnand %p4992_p1, %p4978_p3  ;;  %p5000_p13 = scmp.lt.s32.totalorder %s4998_s29, %s4991_s19 }
 0x134   : > { %p4995_p10 = pneg %p4994_p11  ;;  %p5001_p0 = por %p5000_p13, %p4999_p4 }
 0x136   : > { %p5002_p5 = pnand %p5001_p0, %p4995_p10 }
 0x138   : > { %5005 = shalt.err (!%p5002_p5)
}
 0x139   : > { %4581 = dma.hbm_to_vmem [thread:$0]  (!%p5611_p7), %s5606_s12, 128, %s5615_s1, %s825_s25  }
 0x13a   : > { %s842_s26 = sand.u32 1, %s5158_s0   ;;  %s846_s21 = scalar_lea.vmem [#allocation7], %s5601_s5 }
 0x13b   : > { %s853_s10 = sshll.u32 %s846_s21, 4  ;;  %s843_s24 = scalar_lea.sflag [#allocation8], %s842_s26  ;;  %s854_s10 = int_to_ptr.vmem [resolvable:$true] %s853_s10 }
 0x13c   : > { %s5006_s17 = scalar_lea.hbm %s5620_s23, 128  ;;  %s5011_s2 = scalar_lea.hbm %s6405_s18, 256 }
 0x13d   : > { %p5007_p4 = scmp.ne.s32.totalorder %s5620_s23, %s5006_s17  ;;  %p5012_p6 = scmp.lt.u32.totalorder %s5620_s23, %s6405_s18 }
 0x13e   : > { %p5013_p8 = scmp.lt.u32.totalorder %s5011_s2, %s5006_s17  ;;  %p5015_p1 = scmp.lt.u32.totalorder %s5006_s17, %s5620_s23 }
 0x13f   : > { %p5009_p10 = pnand %p5007_p4, %p4978_p3 }
 0x140   : > { %p5014_p9 = por %p5013_p8, %p5012_p6 }
 0x141   : > { %p5010_p12 = pneg %p5009_p10 }
 0x142   : > { %p5016_p11 = por %p5015_p1, %p5014_p9 }
 0x144   : > { %p5017_p13 = pnand %p5016_p11, %p5010_p12 }
 0x146   : > { %5020 = shalt.err (!%p5017_p13)
}
 0x147   : > { %s5021_s12 = scalar_lea.vmem %s854_s10, 128  ;;  %s5171_s25 = smov [#allocation7]  }
 0x148   : > { %p5022_p0 = scmp.ne.s32.totalorder %s854_s10, %s5021_s12  ;;  %s5026_s5 = sshll.u32 %s5171_s25, 4  ;;  %s5027_s5 = int_to_ptr.vmem [resolvable:$false] %s5026_s5 }
 0x149   : > { %s5028_s1 = scalar_lea.vmem %s5027_s5, 256  ;;  %p5029_p10 = scmp.lt.s32.totalorder %s854_s10, %s5027_s5 }
 0x14a   : > { %p5024_p5 = pnand %p5022_p0, %p4978_p3  ;;  %p5030_p2 = scmp.lt.s32.totalorder %s5028_s1, %s5021_s12 }
 0x14c   : > { %p5025_p4 = pneg %p5024_p5  ;;  %p5031_p6 = por %p5030_p2, %p5029_p10 }
 0x14e   : > { %p5032_p8 = pnand %p5031_p6, %p5025_p4 }
 0x150   : > { %5035 = shalt.err (!%p5032_p8)
}
 0x151   : > { %4584 = dma.hbm_to_vmem [thread:$0]  (!%p5611_p7), %s5620_s23, 128, %s854_s10, %s843_s24  }
 0x152   : > { %p6406_p12 = scmp.ne.s32.totalorder %s6383_s30, 0 }
 0x153   : > { %s5671_s26 = sand.u32 (!%p6406_p12), 1, %s5134_s3   ;;  %p6407_p2 = scmp.ne.s32.totalorder (!%p6406_p12), %s6399_s22, 0 }
 0x154   : > { %862 = sbr.rel (%p6406_p12) target bundleno = 5434 (0x153a), region = 124  ;;  %s5674_s21 = sshll.u32 (!%p6406_p12), %s5671_s26, 3 }
 0x155   : > { %s865_s17 = scalar_lea.sflag (!%p6406_p12), [#allocation5], %s5671_s26  ;;  %s868_s11 = scalar_lea.vmem (!%p6406_p12), [#allocation4], %s5674_s21 }
 0x15b   : > { %5097 = dma.done.wait (%p6407_p2), %s865_s17, 128  }
 0x15c   : > { %5099 = vsyncadd (%p6407_p2), %s865_s17, 4294967168  ;;  %s873_s13 = sand.u32 1, %s5364_s9  }
 0x15d   : > { %s874_s30 = scalar_lea.sflag [#allocation8], %s873_s13 }
 0x15e   : > { %5101 = dma.done.wait (%p6407_p2), %s874_s30, 128  }
 0x15f   : > { %5103 = vsyncadd (%p6407_p2), %s874_s30, 4294967168  ;;  %p6408_p7 = scmp.eq.s32.totalorder %s5364_s9, 0 }
 0x161   : > { %5105 = dma.done.wait (%p6408_p7), [#allocation8], 256   ;;  %p6409_p3 = pmov %p6408_p7 }
 0x163   : > { %5107 = vsyncadd (%p6409_p3), [#allocation8], 4294967040  ;;  %p6410_p9 = pmov %p6409_p3 }
 0x164   : > { %p6411_p1 = pmov %p6409_p3 }
 0x165   : > { %5109 = dma.done.wait (%p6410_p9), [#allocation11], 272  }
 0x166   : > { %5111 = vsyncadd (%p6411_p1), [#allocation11], 4294967024  ;;  %p6412_p11 = pmov %p6411_p1 }
 0x167   : > { %p6413_p13 = pmov %p6411_p1 }
 0x168   : > { %5113 = dma.done.wait (%p6412_p11), [#allocation14], 272  }
 0x169   : > { %5115 = vsyncadd (%p6413_p13), [#allocation14], 4294967024  ;;  %p6414_p0 = pmov %p6411_p1 }
 0x16b   : > { %5117 = dma.done.wait (%p6414_p0), [#allocation17], 272   ;;  %p6415_p5 = pmov %p6414_p0 }
 0x16c   : > { %p6416_p4 = pmov %p6414_p0 }
 0x16d   : > { %5119 = vsyncadd (%p6415_p5), [#allocation17], 4294967024 }
 0x16e   : > { %5121 = dma.done.wait (%p6416_p4), [#allocation20], 16   ;;  %p6417_p10 = pmov %p6414_p0 }
 0x16f   : > { %p992_p6 = scmp.lt.s32.totalorder %s5146_s8, 1  ;;  %s6418_s15 = sld [smem:[#allocation33_spill]] }
 0x170   : > { %5123 = vsyncadd (%p6417_p10), [#allocation20], 4294967280  ;;  %s6419_s5 = sld [smem:[#allocation34_spill]]  ;;  %s991_s17 = scalar_lea.vmem [#allocation21], %s5674_s21 }
 0x171   : > { %s993_s22 = scalar_select %p992_p6, %s5146_s8, 1 }
 0x172   : > { %p4231_p8 = scmp.ne.s32.totalorder %s5142_s28, 0 }
 0x173   : > { %s4228_s10 = sshll.u32 %s993_s22, 3  ;;  %s4303_s24 = sshll.u32 %s993_s22, 4  ;;  %v5172_v1 = vmov (!%p4231_p8), 0.0   ;;  %vm5173_vm0 = vmmov (!%p4231_p8), 0   ;;  %vm1007_vm1 = vcmask (!%p4231_p8), 261120   ;;  %vm1080_vm2 = vcmask (!%p4231_p8), 523264  }
 0x174   : > { %1005 = sbr.rel (%p4231_p8) target bundleno = 605 (0x25d), region = 168  ;;  %s6420_s30 = sld [smem:[#allocation43_spill]] (!%p4231_p8)  ;;  %4359 = vmatprep.subr.bf16.mxu0 (!%p4231_p8), %v5172_v1  ;;  %4363 = vmatprep.mubr.msk.bf16.mxu0 (!%p4231_p8), %vm5173_vm0, %v5172_v1  ;;  %v4232_v7 = vld [vmem:[#allocation16] ss:$0 sm:$0xff] (!%p4231_p8) }
 0x175   : > { %s995_s29 = scalar_lea.vmem %s6418_s15, %s4228_s10 }
 0x176   : > { %s1000_s1 = scalar_lea.vmem %s6419_s5, %s4303_s24  ;;  %v1006_v3 = vld [vmem:[%s995_s29] sm:$0xff] (!%p4231_p8) }
 0x177   : > { %v1009_v4 = vld [vmem:[%s1000_s1] sm:$0xff] (!%p4231_p8)  ;;  %v1010_v5 = vld [vmem:[%s1000_s1 + $0x8] sm:$0xff] (!%p4231_p8)  ;;  %1008 = vst.msk [vmem:[#allocation2] sm:$0xff] (!%p4231_p8), %vm1007_vm1, %v1006_v3 }
 0x178   : > { %v1011_v6 = vpack.c.bf16 (!%p4231_p8), %v1010_v5, %v1009_v4 }
 0x17a   : > { %v4696_v0 = vld [vmem:[%s6420_s30] sm:$0xff] (!%p4231_p8)   ;;  %v4697_v2 = vld [vmem:[%s6420_s30 + $0x8] sm:$0xff] (!%p4231_p8)  }
 0x17b   : > { %4360 = vmatpush3.bf16.msra.mxu0 %v4696_v0 }
 0x17c   : > { %4361 = vmatprep.subr.bf16.mxu0 %v5172_v1 }
 0x17f   : > { %4362 = vmatpush3.bf16.msra.mxu0 %v4697_v2 }
 0x182   : > { %4364 = vmatmul.mubr.msk.bf16.vlgmr.msra.gmra.mrb[0].mxu0 %vm1007_vm1, %v1011_v6 }
 0x255   : > { %v1072_v8 = vpop.f32.mrb[0].mxu0 }
 0x256   : > { %v4365_v9 = vpop.f32.mrb[1].mxu0  ;;  %v1073_v11 = vadd.f32 %v4232_v7, %v1072_v8 }
 0x257   : > { %v1075_v10 = vpop.f32.mrb[2].mxu0 }
 0x258   : > { %v1076_v12 = vadd.f32 %v4232_v7, %v1075_v10  ;;  %v4366_v13 = vpop.f32.mrb[3].mxu0 }
 0x25a   : > { %v1079_v14 = vpack.c.bf16 %v1076_v12, %v1073_v11 }
 0x25c   : > { %1081 = vst.msk [vmem:[#allocation3] sm:$0xff] %vm1080_vm2, %v1079_v14 }
 0x25d PF: > { %v4698_v15 = vld [vmem:[#allocation9] sm:$0xff]   ;;  %v5174_v16 = vmov 0.0   ;;  %v4699_v17 = vld [vmem:[#allocation9 + $0x8] sm:$0xff]   ;;  %vm5175_vm3 = vmmov 0   ;;  %vm1107_vm4 = vcmask 261120   ;;  %s6421_s24 = sld [smem:[#allocation38_spill]]  ;;  %v1163_v32 = vlaneseq }
 0x25e   : > { %4367 = vmatprep.subr.bf16.mxu0 %v5174_v16  ;;  %4375 = vmatprep.subr.bf16.mxu1 %v5174_v16  ;;  %s5176_s19 = smov 104   ;;  %s5177_s2 = smov 120   ;;  %v5180_v30 = vmov 1983009808   ;;  %v5181_v35 = vmov 1934713408  }
 0x25f   : > { %4368 = vmatpush3.bf16.msra.mxu0 %v4698_v15  ;;  %4371 = vmatprep.mubr.msk.bf16.mxu0 %vm5175_vm3, %v5174_v16  ;;  %s5178_s15 = smov 96   ;;  %s5179_s29 = smov 112   ;;  %v1161_v31 = vunpack.c.l.s4 %v5180_v30  ;;  %v1164_v34 = vshrl.u32 %v1163_v32, 7  ;;  %v1178_v36 = vunpack.c.l.s4 %v5181_v35  ;;  %v5182_v54 = vmov 0  }
 0x260   : > { %v5728_v18 = vld [vmem:[#allocation2] sm:$0xff]  ;;  %4369 = vmatprep.subr.bf16.mxu0 %v5174_v16  ;;  %4377 = vmatprep.mubr.msk.bf16.mxu1 %vm5175_vm3, %v5174_v16  ;;  %vm1661_vm5 = vcmask 64512   ;;  %vm1897_vm6 = vcmask 1043456   ;;  %s5184_s12 = smov 16   ;;  %s5185_s25 = smov 8   ;;  %vm2228_vm7 = vcmask 130048  }
 0x261   : > { %v1083_v19 = vpack.c.bf16 %v5728_v18, %v5728_v18  ;;  %v1162_v33 = vunpack.c.0.s8 %v1161_v31  ;;  %v1179_v39 = vunpack.c.0.s8 %v1178_v36  ;;  %s5186_s5 = smov 24   ;;  %vm2230_vm8 = vcmask 195584   ;;  %s6422_s13 = sld [smem:[#allocation51_spill]] }
 0x262   : > { %s6423_s10 = sld [smem:[#allocation52_spill]]  ;;  %s6427_s23 = sld [smem:[#allocation53_spill]]  ;;  %vm3873_vm9 = vcmask 523264  }
 0x263   : > { %4370 = vmatpush3.bf16.msra.mxu0 %v4699_v17  ;;  %v4236_v20 = vld [vmem:[%s6421_s24] ss:$0 sm:$0xff]  ;;  %v5764_v37 = vsub.s32 %v1162_v33, %v1164_v34  ;;  %v5774_v43 = vsub.s32 %v1179_v39, %v1164_v34  ;;  %s6424_s24 = scalar_lea.vmem [#allocation7], %s5674_s21  ;;  %s6429_s9 = sld [smem:[#allocation48_spill]] }
 0x264   : > { %4381 = vmatprep.subr.bf16.mxu0 %v5174_v16  ;;  %p4296_p12 = scmp.ne.s32.totalorder %s5142_s28, 1 }
 0x265   : > { %s6433_s28 = sld [smem:[#allocation57_spill]] (!%p4296_p12) }
 0x266   : > { %4372 = vmatmul.mubr.msk.bf16.vlgmr.msra.gmra.mrb[0].mxu0 %vm1107_vm4, %v1083_v19 }
 0x267   : > { %4383 = vmatprep.mubr.msk.bf16.mxu0 %vm5175_vm3, %v5174_v16 }
 0x339   : > { %v1145_v21 = vpop.f32.mrb[0].mxu0 }
 0x33a   : > { %v1146_v22 = vadd.f32 %v4236_v20, %v1145_v21  ;;  %v4373_v23 = vpop.f32.mrb[1].mxu0 }
 0x33b   : > { %v1148_v24 = vpop.f32.mrb[2].mxu0 }
 0x33c   : > { %v5742_v25 = vpack.c.bf16 %v1146_v22, %v1146_v22  ;;  %v4374_v26 = vpop.f32.mrb[3].mxu0 }
 0x33e   : > { %1158 = vrot.lane.b32.xlu1 %v5742_v25, %s5176_s19  ;;  %1154 = vrot.lane.b32.xlu0 %v5742_v25, %s5177_s2  ;;  %v1166_v42 = vrot.slane %v5742_v25, %v5764_v37 }
 0x342   : > { %1321 = vrot.lane.b32.xlu1 %v5742_v25, %s5178_s15  ;;  %1156 = vrot.lane.b32.xlu0 %v5742_v25, %s5179_s29 }
 0x3b0   : > { %v5752_v27 = vpop.permute.xlu0 %1154  ;;  %v5756_v28 = vpop.permute.xlu1 %1158 }
 0x3b1   : > { %1323 = vrot.lane.b32.xlu0 %v5752_v27, %s5178_s15  ;;  %v1208_v38 = vrot.slane %v5756_v28, %v5764_v37  ;;  %v1200_v40 = vrot.slane %v5752_v27, %v5764_v37 }
 0x3b3   : > { %v1209_v44 = vcombine.low %v1200_v40, %v1208_v38  ;;  %v1210_v47 = vcombine.high %v1200_v40, %v1208_v38 }
 0x3b4   : > { %v5758_v29 = vpop.permute.xlu0 %1156  ;;  %v1322_v53 = vpop.permute.xlu1 %1321 }
 0x3b5   : > { %1327 = vrot.lane.b32.xlu0 %v5756_v28, %s5178_s15  ;;  %1325 = vrot.lane.b32.xlu1 %v5758_v29, %s5178_s15  ;;  %v1174_v41 = vrot.slane %v5758_v29, %v5764_v37  ;;  %v5777_v48 = vrot.slane %v1209_v44, %v5774_v43  ;;  %v5786_v51 = vrot.slane %v1210_v47, %v5774_v43 }
 0x3b6   : > { %v1336_v60 = vrot.slane %v1322_v53, %v5764_v37 }
 0x3b7   : > { %v1175_v45 = vcombine.low %v1166_v42, %v1174_v41  ;;  %v1176_v46 = vcombine.high %v1166_v42, %v1174_v41  ;;  %v1225_v55 = vcombine.high %v5777_v48, %v5182_v54  ;;  %v1226_v58 = vcombine.high %v5786_v51, %v5182_v54 }
 0x3b8   : > { %v1232_v59 = vshrl.u32 %v5777_v48, 16  ;;  %v1248_v63 = vshrl.u32 %v5786_v51, 16 }
 0x3b9   : > { %v5780_v49 = vrot.slane %v1175_v45, %v5774_v43  ;;  %v5783_v50 = vrot.slane %v1176_v46, %v5774_v43  ;;  %v1240_v4 = vshrl.u32 %v1225_v55, 16  ;;  %v1256_v8 = vshrl.u32 %v1226_v58, 16 }
 0x3bb   : > { %v1191_v56 = vcombine.high %v5780_v49, %v5182_v54  ;;  %v1192_v57 = vcombine.high %v5783_v50, %v5182_v54  ;;  %v1231_v61 = vshrl.u32 %v5780_v49, 16  ;;  %v1247_v0 = vshrl.u32 %v5783_v50, 16 }
 0x3bc   : > { %v1229_v9 = vpack.i.b16 %v5777_v48, %v5780_v49  ;;  %v1245_v48 = vpack.i.b16 %v5786_v51, %v5783_v50 }
 0x3bd   : > { %v1239_v5 = vshrl.u32 %v1191_v56, 16  ;;  %v1255_v6 = vshrl.u32 %v1192_v57, 16  ;;  %v1233_v12 = vpack.i.b16 %v1232_v59, %v1231_v61  ;;  %v1237_v13 = vpack.i.b16 %v1225_v55, %v1191_v56 }
 0x3be   : > { %v1249_v17 = vpack.i.b16 %v1248_v63, %v1247_v0  ;;  %v1253_v19 = vpack.i.b16 %v1226_v58, %v1192_v57  ;;  %v1259_v63 = vcombine.low %v1229_v9, %v1245_v48 }
 0x3bf   : > { %v1241_v22 = vpack.i.b16 %v1240_v4, %v1239_v5  ;;  %v1257_v23 = vpack.i.b16 %v1256_v8, %v1255_v6 }
 0x3c0   : > { %v1267_v58 = vcombine.low %v1237_v13, %v1253_v19  ;;  %v1284_v61 = vcombine.low %v1233_v12, %v1249_v17  ;;  %v1266_v8 = vrot.slane %v1259_v63, %v5764_v37 }
 0x3c1   : > { %v1292_v57 = vcombine.low %v1241_v22, %v1257_v23 }
 0x3c2   : > { %v1274_v4 = vrot.slane %v1267_v58, %v5764_v37  ;;  %v1291_v6 = vrot.slane %v1284_v61, %v5764_v37 }
 0x3c3   : > { %v1299_v51 = vrot.slane %v1292_v57, %v5764_v37 }
 0x423   : > { %v1324_v52 = vpop.permute.xlu0 %1323 }
 0x424   : > { %v1370_v1 = vrot.slane %v1324_v52, %v5764_v37 }
 0x427   : > { %v1328_v62 = vpop.permute.xlu0 %1327  ;;  %v1326_v2 = vpop.permute.xlu1 %1325 }
 0x428   : > { %v1378_v3 = vrot.slane %v1328_v62, %v5764_v37  ;;  %v1344_v7 = vrot.slane %v1326_v2, %v5764_v37 }
 0x42a   : > { %v1379_v10 = vcombine.low %v1370_v1, %v1378_v3  ;;  %v1380_v11 = vcombine.high %v1370_v1, %v1378_v3  ;;  %v1345_v14 = vcombine.low %v1336_v60, %v1344_v7  ;;  %v1346_v15 = vcombine.high %v1336_v60, %v1344_v7 }
 0x42c   : > { %v1387_v20 = vrot.slane %v1379_v10, %v5774_v43  ;;  %v1394_v21 = vrot.slane %v1380_v11, %v5774_v43  ;;  %v1353_v24 = vrot.slane %v1345_v14, %v5774_v43  ;;  %v1360_v26 = vrot.slane %v1346_v15, %v5774_v43 }
 0x42d   : > { %v1300_v10 = vcombine.low %v1291_v6, %v1299_v51  ;;  %v1275_v11 = vcombine.low %v1266_v8, %v1274_v4 }
 0x42e   : > { %v1395_v30 = vcombine.high %v1387_v20, %v5182_v54  ;;  %v1396_v31 = vcombine.high %v1394_v21, %v5182_v54  ;;  %v1402_v32 = vshrl.u32 %v1387_v20, 16  ;;  %v1418_v33 = vshrl.u32 %v1394_v21, 16 }
 0x42f   : > { %v1361_v34 = vcombine.high %v1353_v24, %v5182_v54  ;;  %v1362_v35 = vcombine.high %v1360_v26, %v5182_v54  ;;  %v1401_v36 = vshrl.u32 %v1353_v24, 16  ;;  %v1417_v38 = vshrl.u32 %v1360_v26, 16 }
 0x430   : > { %v1399_v39 = vpack.i.b16 %v1387_v20, %v1353_v24  ;;  %v1410_v40 = vshrl.u32 %v1395_v30, 16  ;;  %v1415_v41 = vpack.i.b16 %v1394_v21, %v1360_v26  ;;  %v1426_v42 = vshrl.u32 %v1396_v31, 16 }
 0x431   : > { %v1409_v44 = vshrl.u32 %v1361_v34, 16  ;;  %v1425_v45 = vshrl.u32 %v1362_v35, 16  ;;  %v1403_v46 = vpack.i.b16 %v1402_v32, %v1401_v36  ;;  %v1407_v47 = vpack.i.b16 %v1395_v30, %v1361_v34 }
 0x432   : > { %v1419_v49 = vpack.i.b16 %v1418_v33, %v1417_v38  ;;  %v1423_v52 = vpack.i.b16 %v1396_v31, %v1362_v35  ;;  %v1429_v53 = vcombine.low %v1399_v39, %v1415_v41  ;;  %v1307_v20 = vrot.slane %v1300_v10, %v5774_v43 }
 0x433   : > { %v1411_v55 = vpack.i.b16 %v1410_v40, %v1409_v44  ;;  %v1427_v56 = vpack.i.b16 %v1426_v42, %v1425_v45  ;;  %v1282_v23 = vrot.slane %v1275_v11, %v5774_v43 }
 0x434   : > { %v1437_v59 = vcombine.low %v1407_v47, %v1423_v52  ;;  %v1454_v60 = vcombine.low %v1403_v46, %v1419_v49  ;;  %v1436_v0 = vrot.slane %v1429_v53, %v5764_v37  ;;  %v1313_v30 = vshrl.u32 %v1307_v20, 16  ;;  %v1151_v46 = vld [vmem:[%s868_s11] sm:$0xff]  ;;  %s5183_s11 = smov 64  }
 0x435   : > { %v1462_v62 = vcombine.low %v1411_v55, %v1427_v56  ;;  %v1311_v32 = vpack.i.b16 %v1307_v20, %v1282_v23  ;;  %v1312_v33 = vshrl.u32 %v1282_v23, 16  ;;  %v1308_v38 = vcombine.high %v1307_v20, %v5182_v54 }
 0x436   : > { %v1444_v1 = vrot.slane %v1437_v59, %v5764_v37  ;;  %v1461_v2 = vrot.slane %v1454_v60, %v5764_v37  ;;  %v1283_v40 = vcombine.high %v1282_v23, %v5182_v54 }
 0x437   : > { %v1469_v50 = vrot.slane %v1462_v62, %v5764_v37  ;;  %v1314_v36 = vpack.i.b16 %v1313_v30, %v1312_v33  ;;  %v1319_v41 = vshrl.u32 %v1308_v38, 16 }
 0x438   : > { %v1445_v3 = vcombine.low %v1436_v0, %v1444_v1  ;;  %v1317_v42 = vpack.i.b16 %v1308_v38, %v1283_v40  ;;  %v1318_v44 = vshrl.u32 %v1283_v40, 16 }
 0x439   : > { %v1470_v5 = vcombine.low %v1461_v2, %v1469_v50 }
 0x43a   : > { %v1452_v7 = vrot.slane %v1445_v3, %v5774_v43  ;;  %v1320_v45 = vpack.i.b16 %v1319_v41, %v1318_v44 }
 0x43b   : > { %v1477_v9 = vrot.slane %v1470_v5, %v5774_v43 }
 0x43c   : > { %v1482_v13 = vshrl.u32 %v1452_v7, 16  ;;  %v1453_v21 = vcombine.high %v1452_v7, %v5182_v54 }
 0x43d   : > { %v1481_v12 = vpack.i.b16 %v1477_v9, %v1452_v7  ;;  %v1483_v14 = vshrl.u32 %v1477_v9, 16  ;;  %v1478_v15 = vcombine.high %v1477_v9, %v5182_v54 }
 0x43e   : > { %v1488_v31 = vshrl.u32 %v1453_v21, 16 }
 0x43f   : > { %v1666_v17 = vsel %vm1661_vm5, %v1481_v12, 0  ;;  %v1484_v19 = vpack.i.b16 %v1483_v14, %v1482_v13  ;;  %v1489_v24 = vshrl.u32 %v1478_v15, 16  ;;  %v1487_v26 = vpack.i.b16 %v1478_v15, %v1453_v21 }
 0x440   : > { %4376 = vmatpush3.bf16.xpose.msra.mxu1 %v1666_v17 }
 0x441   : > { %v1712_v22 = vsel %vm1661_vm5, %v1484_v19, 0  ;;  %4387 = vmatprep.subr.bf16.mxu1 %v5174_v16  ;;  %v1490_v34 = vpack.i.b16 %v1489_v24, %v1488_v31  ;;  %v1758_v35 = vsel %vm1661_vm5, %v1487_v26, 0 }
 0x442   : > { %4382 = vmatpush3.bf16.xpose.msra.mxu0 %v1712_v22 }
 0x443   : > { %4393 = vmatprep.subr.bf16.mxu0 %v5174_v16  ;;  %v1804_v39 = vsel %vm1661_vm5, %v1490_v34, 0 }
 0x447   : > { %4378 = vmatmul.mubr.msk.bf16.vlgmr.msra.gmra.mrb[0].mxu1 %vm1661_vm5, %v1311_v32 }
 0x448   : > { %4388 = vmatpush3.bf16.xpose.msra.mxu1 %v1758_v35  ;;  %4389 = vmatprep.mubr.msk.bf16.mxu1 %vm5175_vm3, %v5174_v16 }
 0x449   : > { %4384 = vmatmul.mubr.msk.bf16.vlgmr.msra.gmra.mrb[4].mxu0 %vm1661_vm5, %v1314_v36  ;;  %4399 = vmatprep.subr.bf16.mxu1 %v5174_v16 }
 0x44a   : > { %4394 = vmatpush3.bf16.xpose.msra.mxu0 %v1804_v39  ;;  %4395 = vmatprep.mubr.msk.bf16.mxu0 %vm5175_vm3, %v5174_v16 }
 0x44b   : > { %4405 = vmatprep.subr.bf16.mxu0 %v5174_v16 }
 0x44f   : > { %4390 = vmatmul.mubr.msk.bf16.vlgmr.msra.gmra.mrb[4].mxu1 %vm1661_vm5, %v1317_v42 }
 0x450   : > { %4401 = vmatprep.mubr.msk.bf16.mxu1 %vm5175_vm3, %v5174_v16 }
 0x451   : > { %4396 = vmatmul.mubr.msk.bf16.vlgmr.msra.gmra.mrb[8].mxu0 %vm1661_vm5, %v1320_v45 }
 0x452   : > { %4407 = vmatprep.mubr.msk.bf16.mxu0 %vm5175_vm3, %v5174_v16 }
 0x51a   : > { %v1702_v47 = vpop.f32.mrb[0].mxu1 }
 0x51b   : > { %v1703_v48 = vadd.f32 %v1702_v47, %v1151_v46  ;;  %v4379_v49 = vpop.f32.mrb[1].mxu1 }
 0x51c   : > { %v1705_v52 = vpop.f32.mrb[2].mxu1  ;;  %v1748_v53 = vpop.f32.mrb[4].mxu0 }
 0x51d   : > { %v1749_v55 = vadd.f32 %v1748_v53, %v1151_v46  ;;  %v4380_v56 = vpop.f32.mrb[3].mxu1  ;;  %v4385_v57 = vpop.f32.mrb[5].mxu0  ;;  %v1846_v58 = vsel %vm1661_vm5, %v1703_v48, -inf }
 0x51e   : > { %1847 = vmax.xlane.f32.xlu1 %v1846_v58  ;;  %v1751_v59 = vpop.f32.mrb[6].mxu0 }
 0x51f   : > { %v4386_v60 = vpop.f32.mrb[7].mxu0  ;;  %v1849_v61 = vsel %vm1661_vm5, %v1749_v55, -inf }
 0x520   : > { %1850 = vmax.xlane.f32.xlu0 %v1849_v61 }
 0x522   : > { %v1794_v62 = vpop.f32.mrb[4].mxu1 }
 0x523   : > { %v1795_v63 = vadd.f32 %v1794_v62, %v1151_v46  ;;  %v4391_v0 = vpop.f32.mrb[5].mxu1 }
 0x524   : > { %v1797_v1 = vpop.f32.mrb[6].mxu1  ;;  %v1840_v2 = vpop.f32.mrb[8].mxu0 }
 0x525   : > { %v1841_v50 = vadd.f32 %v1840_v2, %v1151_v46  ;;  %v4392_v51 = vpop.f32.mrb[7].mxu1  ;;  %v4397_v3 = vpop.f32.mrb[9].mxu0  ;;  %v1852_v4 = vsel %vm1661_vm5, %v1795_v63, -inf }
 0x526   : > { %1853 = vmax.xlane.f32.xlu0 %v1852_v4  ;;  %v1843_v5 = vpop.f32.mrb[10].mxu0 }
 0x527   : > { %v4398_v6 = vpop.f32.mrb[11].mxu0  ;;  %v1855_v7 = vsel %vm1661_vm5, %v1841_v50, -inf }
 0x528   : > { %1856 = vmax.xlane.f32.xlu1 %v1855_v7 }
 0x539   : > { %1493 = vrot.lane.b32.xlu1 %v5752_v27, %s5183_s11 }
 0x53c   : > { %1491 = vrot.lane.b32.xlu0 %v5742_v25, %s5183_s11 }
 0x5ab   : > { %v1848_v8 = vpop.xlane.xlu1 %1847 }
 0x5ac   : > { %v1858_v9 = vsub.f32 %v1703_v48, %v1848_v8 }
 0x5ad   : > { %v1851_v10 = vpop.xlane.xlu0 %1850 }
 0x5ae   : > { %v1862_v11 = vmul.f32 1.442695, %v1858_v9  ;;  %v1859_v12 = vsub.f32 %v1749_v55, %v1851_v10 }
 0x5b0   : > { %4712 = vpow2.f32 %v1862_v11  ;;  %v1864_v13 = vmul.f32 1.442695, %v1859_v12 }
 0x5b2   : > { %4714 = vpow2.f32 %v1864_v13 }
 0x5b3   : > { %v1854_v19 = vpop.xlane.xlu0 %1853 }
 0x5b4   : > { %v1860_v21 = vsub.f32 %v1795_v63, %v1854_v19 }
 0x5b5   : > { %v1857_v25 = vpop.xlane.xlu1 %1856 }
 0x5b6   : > { %v1861_v20 = vsub.f32 %v1841_v50, %v1857_v25  ;;  %v1866_v23 = vmul.f32 1.442695, %v1860_v21 }
 0x5b8   : > { %v1868_v22 = vmul.f32 1.442695, %v1861_v20 }
 0x5b9   : > { %v1494_v31 = vpop.permute.xlu1 %1493 }
 0x5ba   : > { %v5860_v14 = vpop.eup %4712  ;;  %4716 = vpow2.f32 %v1868_v22  ;;  %v1540_v35 = vrot.slane %v1494_v31, %v5764_v37 }
 0x5bb   : > { %v1870_v15 = vsel %vm1661_vm5, %v5860_v14, 0.0  ;;  %4718 = vpow2.f32 %v1866_v23 }
 0x5bc   : > { %v5864_v17 = vpop.eup %4714  ;;  %1871 = vadd.xlane.f32.xlu0 %v1870_v15 }
 0x5bd   : > { %v1873_v27 = vsel %vm1661_vm5, %v5864_v17, 0.0 }
 0x5be   : > { %1874 = vadd.xlane.f32.xlu1 %v1873_v27 }
 0x5c4   : > { %v5870_v24 = vpop.eup %4716 }
 0x5c5   : > { %v5872_v26 = vpop.eup %4718  ;;  %v1879_v30 = vsel %vm1661_vm5, %v5870_v24, 0.0 }
 0x5cf   : > { %1495 = vrot.lane.b32.xlu1 %v5758_v29, %s5183_s11  ;;  %v1876_v29 = vsel %vm1661_vm5, %v5872_v26, 0.0 }
 0x5d2   : > { %1497 = vrot.lane.b32.xlu0 %v5756_v28, %s5183_s11  ;;  %v1492_v28 = vpop.permute.xlu0 %1491  ;;  %s6432_s11 = sld [smem:[#allocation56_spill]] }
 0x5d3   : > { %v1506_v39 = vrot.slane %v1492_v28, %v5764_v37 }
 0x5f1   : > { %1880 = vadd.xlane.f32.xlu0 %v1879_v30 }
 0x5f3   : > { %1877 = vadd.xlane.f32.xlu1 %v1876_v29 }
 0x649   : > { %v1872_v32 = vpop.xlane.xlu0 %1871 }
 0x64a   : > { %4720 = vrcp.f32 %v1872_v32 }
 0x64b   : > { %v1875_v33 = vpop.xlane.xlu1 %1874 }
 0x64c   : > { %4722 = vrcp.f32 %v1875_v33 }
 0x64d   : > { %v1498_v34 = vpop.permute.xlu0 %1497 }
 0x64e   : > { %v1548_v36 = vrot.slane %v1498_v34, %v5764_v37 }
 0x64f   : > { %v1496_v38 = vpop.permute.xlu1 %1495 }
 0x650   : > { %v1549_v40 = vcombine.low %v1540_v35, %v1548_v36  ;;  %v1550_v41 = vcombine.high %v1540_v35, %v1548_v36  ;;  %v1514_v42 = vrot.slane %v1496_v38, %v5764_v37 }
 0x652   : > { %v1557_v44 = vrot.slane %v1549_v40, %v5774_v43  ;;  %v1564_v45 = vrot.slane %v1550_v41, %v5774_v43  ;;  %v1515_v46 = vcombine.low %v1506_v39, %v1514_v42  ;;  %v1516_v47 = vcombine.high %v1506_v39, %v1514_v42 }
 0x654   : > { %v1565_v48 = vcombine.high %v1557_v44, %v5182_v54  ;;  %v1566_v49 = vcombine.high %v1564_v45, %v5182_v54  ;;  %v1523_v52 = vrot.slane %v1515_v46, %v5774_v43  ;;  %v1530_v53 = vrot.slane %v1516_v47, %v5774_v43  ;;  %v4721_v13 = vpop.eup %4720 }
 0x655   : > { %v1572_v55 = vshrl.u32 %v1557_v44, 16  ;;  %v1588_v56 = vshrl.u32 %v1564_v45, 16  ;;  %v1886_v30 = vmul.f32 %v4721_v13, %v5860_v14 }
 0x656   : > { %v1580_v57 = vshrl.u32 %v1565_v48, 16  ;;  %v1531_v58 = vcombine.high %v1523_v52, %v5182_v54  ;;  %v1532_v59 = vcombine.high %v1530_v53, %v5182_v54  ;;  %v1569_v60 = vpack.i.b16 %v1557_v44, %v1523_v52  ;;  %v4723_v19 = vpop.eup %4722 }
 0x657   : > { %v1596_v61 = vshrl.u32 %v1566_v49, 16  ;;  %v1571_v62 = vshrl.u32 %v1523_v52, 16  ;;  %v1585_v63 = vpack.i.b16 %v1564_v45, %v1530_v53  ;;  %v1587_v0 = vshrl.u32 %v1530_v53, 16 }
 0x658   : > { %v1577_v1 = vpack.i.b16 %v1565_v48, %v1531_v58  ;;  %v1579_v2 = vshrl.u32 %v1531_v58, 16  ;;  %v1593_v50 = vpack.i.b16 %v1566_v49, %v1532_v59  ;;  %v1595_v51 = vshrl.u32 %v1532_v59, 16 }
 0x659   : > { %v1573_v3 = vpack.i.b16 %v1572_v55, %v1571_v62  ;;  %v1589_v4 = vpack.i.b16 %v1588_v56, %v1587_v0  ;;  %v1599_v5 = vcombine.low %v1569_v60, %v1585_v63  ;;  %v1887_v33 = vmul.f32 %v4723_v19, %v5864_v17 }
 0x65a   : > { %v1581_v6 = vpack.i.b16 %v1580_v57, %v1579_v2  ;;  %v1597_v7 = vpack.i.b16 %v1596_v61, %v1595_v51  ;;  %v1607_v8 = vcombine.low %v1577_v1, %v1593_v50  ;;  %v1890_v41 = vpack.c.bf16 %v1886_v30, %v1886_v30 }
 0x65b   : > { %v1624_v9 = vcombine.low %v1573_v3, %v1589_v4  ;;  %v1606_v10 = vrot.slane %v1599_v5, %v5764_v37  ;;  %v1891_v44 = vpack.c.bf16 %v1887_v33, %v1887_v33 }
 0x65c   : > { %v1632_v11 = vcombine.low %v1581_v6, %v1597_v7  ;;  %v1614_v12 = vrot.slane %v1607_v8, %v5764_v37 }
 0x65d   : > { %v1631_v27 = vrot.slane %v1624_v9, %v5764_v37 }
 0x65e   : > { %v1615_v15 = vcombine.low %v1606_v10, %v1614_v12  ;;  %v1639_v25 = vrot.slane %v1632_v11, %v5764_v37 }
 0x660   : > { %v1622_v20 = vrot.slane %v1615_v15, %v5774_v43  ;;  %v1640_v21 = vcombine.low %v1631_v27, %v1639_v25  ;;  %v4700_v25 = vld [vmem:[#allocation10] sm:$0xff]  }
 0x662   : > { %v1647_v22 = vrot.slane %v1640_v21, %v5774_v43  ;;  %v1623_v23 = vcombine.high %v1622_v20, %v5182_v54  ;;  %v1652_v28 = vshrl.u32 %v1622_v20, 16 }
 0x664   : > { %v1651_v29 = vpack.i.b16 %v1647_v22, %v1622_v20  ;;  %v1653_v31 = vshrl.u32 %v1647_v22, 16  ;;  %v1648_v32 = vcombine.high %v1647_v22, %v5182_v54  ;;  %v1658_v34 = vshrl.u32 %v1623_v23, 16 }
 0x666   : > { %v1899_v35 = vsel %vm1897_vm6, %v1651_v29, 0  ;;  %v1654_v36 = vpack.i.b16 %v1653_v31, %v1652_v28  ;;  %v1657_v38 = vpack.i.b16 %v1648_v32, %v1623_v23  ;;  %v1659_v39 = vshrl.u32 %v1648_v32, 16  ;;  %v4701_v31 = vld [vmem:[#allocation10 + $0x8] sm:$0xff]  }
 0x667   : > { %4400 = vmatpush3.bf16.msra.mxu1 %v1899_v35 }
 0x668   : > { %v1945_v40 = vsel %vm1897_vm6, %v1654_v36, 0  ;;  %4411 = vmatprep.subr.bf16.mxu1 %v5174_v16  ;;  %v1660_v14 = vpack.i.b16 %v1659_v39, %v1658_v34  ;;  %v1991_v42 = vsel %vm1897_vm6, %v1657_v38, 0 }
 0x669   : > { %4406 = vmatpush3.bf16.msra.mxu0 %v1945_v40 }
 0x66a   : > { %4402 = vmatmul.mubr.msk.bf16.vlgmr.msra.gmra.mrb[8].mxu1 %vm1661_vm5, %v1890_v41  ;;  %4417 = vmatprep.subr.bf16.mxu0 %v5174_v16  ;;  %v2037_v17 = vsel %vm1897_vm6, %v1660_v14, 0 }
 0x66b   : > { %4412 = vmatpush3.bf16.msra.mxu1 %v1991_v42  ;;  %4413 = vmatprep.mubr.msk.bf16.mxu1 %vm5175_vm3, %v5174_v16 }
 0x66c   : > { %4408 = vmatmul.mubr.msk.bf16.vlgmr.msra.gmra.mrb[12].mxu0 %vm1661_vm5, %v1891_v44  ;;  %4423 = vmatprep.subr.bf16.mxu1 %v5174_v16 }
 0x66d   : > { %4418 = vmatpush3.bf16.msra.mxu0 %v2037_v17  ;;  %4419 = vmatprep.mubr.msk.bf16.mxu0 %vm5175_vm3, %v5174_v16 }
 0x66e   : > { %4431 = vmatprep.subr.bf16.mxu0 %v5174_v16 }
 0x67e   : > { %v1881_v45 = vpop.xlane.xlu0 %1880 }
 0x67f   : > { %4724 = vrcp.f32 %v1881_v45 }
 0x680   : > { %v1878_v46 = vpop.xlane.xlu1 %1877 }
 0x681   : > { %4726 = vrcp.f32 %v1878_v46 }
 0x689   : > { %v4725_v47 = vpop.eup %4724 }
 0x68a   : > { %v1889_v48 = vmul.f32 %v4725_v47, %v5870_v24 }
 0x68b   : > { %v4727_v49 = vpop.eup %4726 }
 0x68c   : > { %v1888_v52 = vmul.f32 %v4727_v49, %v5872_v26  ;;  %v1893_v53 = vpack.c.bf16 %v1889_v48, %v1889_v48 }
 0x68e   : > { %4420 = vmatmul.mubr.msk.bf16.vlgmr.msra.gmra.mrb[16].mxu0 %vm1661_vm5, %v1893_v53  ;;  %v1892_v55 = vpack.c.bf16 %v1888_v52, %v1888_v52 }
 0x68f   : > { %4435 = vmatprep.mubr.msk.bf16.mxu0 %vm5175_vm3, %v5174_v16 }
 0x690   : > { %4414 = vmatmul.mubr.msk.bf16.vlgmr.msra.gmra.mrb[12].mxu1 %vm1661_vm5, %v1892_v55 }
 0x691   : > { %4427 = vmatprep.mubr.msk.bf16.mxu1 %vm5175_vm3, %v5174_v16  ;;  %4424 = vmatpush3.bf16.msra.mxu1 %v4700_v25 }
 0x692   : > { %4425 = vmatprep.subr.bf16.mxu1 %v5174_v16 }
 0x695   : > { %4426 = vmatpush3.bf16.msra.mxu1 %v4701_v31 }
 0x696   : > { %4439 = vmatprep.subr.bf16.mxu1 %v5174_v16 }
 0x73d   : > { %v1935_v56 = vpop.f32.mrb[8].mxu1 }
 0x73e   : > { %v4403_v57 = vpop.f32.mrb[9].mxu1 }
 0x73f   : > { %v1938_v58 = vpop.f32.mrb[10].mxu1  ;;  %v1981_v59 = vpop.f32.mrb[12].mxu0 }
 0x740   : > { %v4404_v24 = vpop.f32.mrb[11].mxu1  ;;  %v4409_v60 = vpop.f32.mrb[13].mxu0  ;;  %v4250_v58 = vld [vmem:[#allocation12] ss:$0 sm:$0xff] }
 0x741   : > { %v1984_v61 = vpop.f32.mrb[14].mxu0 }
 0x742   : > { %v4410_v26 = vpop.f32.mrb[15].mxu0 }
 0x761   : > { %v2073_v62 = vpop.f32.mrb[16].mxu0 }
 0x762   : > { %v2095_v63 = vcombine.low %v1981_v59, %v2073_v62  ;;  %v2096_v0 = vcombine.high %v1981_v59, %v2073_v62  ;;  %v4421_v1 = vpop.f32.mrb[17].mxu0 }
 0x763   : > { %v2027_v2 = vpop.f32.mrb[12].mxu1  ;;  %v2076_v50 = vpop.f32.mrb[18].mxu0 }
 0x764   : > { %v2079_v51 = vcombine.low %v1935_v56, %v2027_v2  ;;  %v2080_v3 = vcombine.high %v1935_v56, %v2027_v2  ;;  %v4415_v4 = vpop.f32.mrb[13].mxu1  ;;  %v4422_v5 = vpop.f32.mrb[19].mxu0  ;;  %v2103_v7 = vrot.slane %v2095_v63, %v5764_v37  ;;  %v2110_v8 = vrot.slane %v2096_v0, %v5764_v37 }
 0x765   : > { %v2030_v6 = vpop.f32.mrb[14].mxu1  ;;  %v4703_v4 = vld [vmem:[#allocation13 + $0x8] sm:$0xff]   ;;  %v5953_v5 = vld [vmem:[#allocation3] sm:$0xff] }
 0x766   : > { %v2087_v9 = vrot.slane %v2079_v51, %v5764_v37  ;;  %v2094_v10 = vrot.slane %v2080_v3, %v5764_v37  ;;  %v4416_v11 = vpop.f32.mrb[15].mxu1  ;;  %v4702_v3 = vld [vmem:[#allocation13] sm:$0xff]  }
 0x767   : > { %4432 = vmatpush3.bf16.msra.mxu0 %v4702_v3  ;;  %v4255_v11 = vld [vmem:[%s6423_s10] ss:$0 sm:$0xff] }
 0x768   : > { %v2111_v12 = vcombine.low %v2087_v9, %v2103_v7  ;;  %v2112_v13 = vcombine.high %v2087_v9, %v2103_v7  ;;  %v2127_v15 = vcombine.low %v2094_v10, %v2110_v8  ;;  %v2128_v27 = vcombine.high %v2094_v10, %v2110_v8  ;;  %4433 = vmatprep.subr.bf16.mxu0 %v5174_v16  ;;  %v4254_v9 = vld [vmem:[%s6422_s13] ss:$0 sm:$0xff]  ;;  %s6434_s13 = sld [smem:[#allocation58_spill]] (!%p4296_p12) }
 0x76a   : > { %v2119_v19 = vrot.slane %v2111_v12, %v5774_v43  ;;  %v2126_v20 = vrot.slane %v2112_v13, %v5774_v43  ;;  %v2135_v21 = vrot.slane %v2127_v15, %v5774_v43  ;;  %v2142_v22 = vrot.slane %v2128_v27, %v5774_v43 }
 0x76b   : > { %4434 = vmatpush3.bf16.msra.mxu0 %v4703_v4 }
 0x76c   : > { %v2147_v23 = vcombine.low %v2119_v19, %v2126_v20  ;;  %v4248_v30 = vcombine.high %v2119_v19, %v2126_v20  ;;  %v2163_v29 = vcombine.low %v2135_v21, %v2142_v22  ;;  %v4249_v28 = vcombine.high %v2135_v21, %v2142_v22  ;;  %4445 = vmatprep.subr.bf16.mxu0 %v5174_v16 }
 0x76d   : > { %v2579_v20 = vshrl.u32 %v5953_v5, 16 }
 0x76e   : > { %v2154_v32 = vrot.slane %v2147_v23, %v5764_v37  ;;  %v2162_v33 = vrot.slane %v4248_v30, %v5764_v37  ;;  %v2170_v34 = vrot.slane %v2163_v29, %v5764_v37  ;;  %v2178_v35 = vrot.slane %v4249_v28, %v5764_v37 }
 0x76f   : > { %v5987_v30 = vpack.i.b16 %v5182_v54, %v5182_v54 }
 0x770   : > { %v2180_v36 = vcombine.high %v2154_v32, %v2162_v33  ;;  %v2196_v38 = vcombine.high %v2170_v34, %v2178_v35  ;;  %v2179_v39 = vcombine.low %v2154_v32, %v2162_v33  ;;  %v2195_v40 = vcombine.low %v2170_v34, %v2178_v35 }
 0x772   : > { %v2194_v41 = vrot.slane %v2180_v36, %v5774_v43  ;;  %v2210_v14 = vrot.slane %v2196_v38, %v5774_v43  ;;  %v2187_v42 = vrot.slane %v2179_v39, %v5774_v43  ;;  %v2203_v44 = vrot.slane %v2195_v40, %v5774_v43 }
 0x774   : > { %v2213_v17 = vcombine.low %v2194_v41, %v2210_v14  ;;  %v2212_v45 = vcombine.high %v2187_v42, %v2203_v44  ;;  %v2214_v46 = vcombine.high %v2194_v41, %v2210_v14  ;;  %v2211_v47 = vcombine.low %v2187_v42, %v2203_v44 }
 0x776   : > { %2220 = vrot.lane.b32.xlu1 %v2213_v17, %s5184_s12  ;;  %2216 = vrot.lane.b32.xlu0 %v2212_v45, %s5185_s25 }
 0x77a   : > { %2224 = vrot.lane.b32.xlu1 %v2214_v46, %s5186_s5 }
 0x7e8   : > { %v2221_v48 = vpop.permute.xlu1 %2220  ;;  %v2217_v49 = vpop.permute.xlu0 %2216 }
 0x7e9   : > { %v2227_v52 = vsel %vm1661_vm5, %v2211_v47, %v2217_v49 }
 0x7ea   : > { %v2229_v55 = vsel %vm2228_vm7, %v2227_v52, %v2221_v48 }
 0x7ec   : > { %v2225_v53 = vpop.permute.xlu1 %2224 }
 0x7ed   : > { %v2231_v56 = vsel %vm2230_vm8, %v2229_v55, %v2225_v53 }
 0x7ee   : > { %v2232_v57 = vpack.c.bf16 %v2231_v56, %v2231_v56 }
 0x7f0   : > { %4428 = vmatmul.mubr.msk.bf16.vlgmr.msra.gmra.mrb[16].mxu1 %vm1107_vm4, %v2232_v57 }
 0x7f1   : > { %4441 = vmatprep.mubr.msk.bf16.mxu1 %vm5175_vm3, %v5174_v16 }
 0x8c3   : > { %v2293_v59 = vpop.f32.mrb[16].mxu1 }
 0x8c4   : > { %v2294_v24 = vadd.f32 %v4250_v58, %v2293_v59  ;;  %v4429_v60 = vpop.f32.mrb[17].mxu1 }
 0x8c5   : > { %v2296_v61 = vpop.f32.mrb[18].mxu1 }
 0x8c6   : > { %v4430_v26 = vpop.f32.mrb[19].mxu1  ;;  %v2299_v62 = vadd.f32 %v2294_v24, %v5728_v18 }
 0x8c8   : > { %v2300_v63 = vsel %vm1107_vm4, %v2299_v62, 0.0 }
 0x8c9   : > { %2301 = vadd.xlane.f32.xlu0 %v2300_v63 }
 0x8df   : > { %2569 = vrot.lane.b32.xlu0 %v5953_v5, %s5177_s2 }
 0x8e3   : > { %2573 = vrot.lane.b32.xlu0 %v5953_v5, %s5176_s19 }
 0x956   : > { %v2302_v0 = vpop.xlane.xlu0 %2301 }
 0x957   : > { %v2304_v1 = vmul.f32 0.03125, %v2302_v0 }
 0x959   : > { %v2305_v2 = vsub.f32 %v2299_v62, %v2304_v1 }
 0x95a   : > { %v5975_v27 = vpop.permute.xlu0 %2569 }
 0x95b   : > { %v2306_v50 = vmul.f32 %v2305_v2, %v2305_v2  ;;  %v2580_v21 = vshrl.u32 %v5975_v27, 16  ;;  %v2577_v29 = vpack.i.b16 %v5975_v27, %v5953_v5 }
 0x95d   : > { %v2307_v51 = vsel %vm1107_vm4, %v2306_v50, 0.0  ;;  %v2581_v31 = vpack.i.b16 %v2580_v21, %v2579_v20  ;;  %v2597_v33 = vcombine.high %v2577_v29, %v5987_v30  ;;  %v2604_v38 = vrot.slane %v2577_v29, %v5764_v37 }
 0x95e   : > { %2308 = vadd.xlane.f32.xlu1 %v2307_v51  ;;  %v5979_v19 = vpop.permute.xlu0 %2573 }
 0x95f   : > { %v2588_v23 = vshrl.u32 %v5979_v19, 16  ;;  %v2663_v35 = vcombine.high %v2581_v31, %v5987_v30  ;;  %v2611_v39 = vrot.slane %v2597_v33, %v5764_v37  ;;  %v2670_v14 = vrot.slane %v2581_v31, %v5764_v37 }
 0x961   : > { %v2677_v44 = vrot.slane %v2663_v35, %v5764_v37 }
 0x96f   : > { %2571 = vrot.lane.b32.xlu1 %v5953_v5, %s5179_s29 }
 0x9eb   : > { %v2309_v18 = vpop.xlane.xlu1 %2308 }
 0x9ec   : > { %v2310_v6 = vmul.f32 0.03125, %v2309_v18 }
 0x9ee   : > { %v2311_v7 = vadd.f32 1e-05, %v2310_v6 }
 0x9ef   : > { %v5977_v25 = vpop.permute.xlu1 %2571 }
 0x9f0   : > { %4728 = vrsqrt.f32 %v2311_v7  ;;  %v2587_v22 = vshrl.u32 %v5977_v25, 16  ;;  %v2585_v28 = vpack.i.b16 %v5979_v19, %v5977_v25 }
 0x9f2   : > { %v2589_v32 = vpack.i.b16 %v2588_v23, %v2587_v22  ;;  %v2612_v34 = vcombine.high %v2585_v28, %v5987_v30  ;;  %v2619_v40 = vrot.slane %v2585_v28, %v5764_v37  ;;  %v4256_v22 = vld [vmem:[#allocation15] ss:$0 sm:$0xff] }
 0x9f4   : > { %v2678_v36 = vcombine.high %v2589_v32, %v5987_v30  ;;  %v2626_v41 = vrot.slane %v2612_v34, %v5764_v37  ;;  %v2685_v42 = vrot.slane %v2589_v32, %v5764_v37  ;;  %v2627_v45 = vcombine.low %v2604_v38, %v2619_v40 }
 0x9f5   : > { %v2628_v46 = vcombine.high %v2604_v38, %v2619_v40 }
 0x9f6   : > { %v2692_v17 = vrot.slane %v2678_v36, %v5764_v37  ;;  %v2643_v47 = vcombine.low %v2611_v39, %v2626_v41  ;;  %v2644_v48 = vcombine.high %v2611_v39, %v2626_v41  ;;  %v2693_v49 = vcombine.low %v2670_v14, %v2685_v42 }
 0x9f7   : > { %v2694_v52 = vcombine.high %v2670_v14, %v2685_v42  ;;  %v2635_v56 = vrot.slane %v2627_v45, %v5774_v43  ;;  %v2642_v57 = vrot.slane %v2628_v46, %v5774_v43 }
 0x9f8   : > { %v2709_v53 = vcombine.low %v2677_v44, %v2692_v17  ;;  %v2710_v55 = vcombine.high %v2677_v44, %v2692_v17  ;;  %v2651_v58 = vrot.slane %v2643_v47, %v5774_v43  ;;  %v2658_v59 = vrot.slane %v2644_v48, %v5774_v43 }
 0x9f9   : > { %v2701_v24 = vrot.slane %v2693_v49, %v5774_v43  ;;  %v2708_v60 = vrot.slane %v2694_v52, %v5774_v43  ;;  %v2729_v62 = vcombine.low %v2635_v56, %v2642_v57  ;;  %v4260_v63 = vcombine.high %v2635_v56, %v2642_v57 }
 0x9fa   : > { %v4729_v8 = vpop.eup %4728  ;;  %v2717_v61 = vrot.slane %v2709_v53, %v5774_v43  ;;  %v2724_v26 = vrot.slane %v2710_v55, %v5774_v43  ;;  %v2745_v0 = vcombine.low %v2651_v58, %v2658_v59  ;;  %v4261_v1 = vcombine.high %v2651_v58, %v2658_v59 }
 0x9fb   : > { %v2313_v10 = vmul.f32 %v4729_v8, %v2305_v2  ;;  %v2779_v2 = vcombine.low %v2701_v24, %v2708_v60  ;;  %v4262_v50 = vcombine.high %v2701_v24, %v2708_v60  ;;  %v2736_v4 = vrot.slane %v2729_v62, %v5764_v37 }
 0x9fc   : > { %v2795_v51 = vcombine.low %v2717_v61, %v2724_v26  ;;  %v4263_v3 = vcombine.high %v2717_v61, %v2724_v26  ;;  %v2744_v18 = vrot.slane %v4260_v63, %v5764_v37  ;;  %v2752_v6 = vrot.slane %v2745_v0, %v5764_v37 }
 0x9fd   : > { %v2321_v12 = vmul.f32 %v4254_v9, %v2313_v10  ;;  %v2760_v7 = vrot.slane %v4261_v1, %v5764_v37  ;;  %v2786_v8 = vrot.slane %v2779_v2, %v5764_v37  ;;  %v2794_v9 = vrot.slane %v4262_v50, %v5764_v37 }
 0x9fe   : > { %v2802_v10 = vrot.slane %v2795_v51, %v5764_v37 }
 0x9ff   : > { %v5968_v13 = vadd.f32 %v4255_v11, %v2321_v12  ;;  %v2810_v11 = vrot.slane %v4263_v3, %v5764_v37  ;;  %v2761_v12 = vcombine.low %v2736_v4, %v2744_v18  ;;  %v2811_v20 = vcombine.low %v2786_v8, %v2794_v9 }
 0xa01   : > { %v2330_v15 = vpack.c.bf16 %v5968_v13, %v5968_v13  ;;  %v2819_v21 = vcombine.low %v2802_v10, %v2810_v11  ;;  %v2768_v23 = vrot.slane %v2761_v12, %v5774_v43  ;;  %v2818_v28 = vrot.slane %v2811_v20, %v5774_v43 }
 0xa03   : > { %4436 = vmatmul.mubr.msk.bf16.vlgmr.msra.gmra.mrb[20].mxu0 %vm1107_vm4, %v2330_v15  ;;  %v2769_v15 = vcombine.low %v2752_v6, %v2760_v7  ;;  %v2826_v31 = vrot.slane %v2819_v21, %v5774_v43 }
 0xa04   : > { %4447 = vmatprep.mubr.msk.bf16.mxu0 %vm5175_vm3, %v5174_v16 }
 0xa05   : > { %v2776_v29 = vrot.slane %v2769_v15, %v5774_v43  ;;  %v2827_v38 = vcombine.low %v2818_v28, %v2826_v31  ;;  %v6027_v39 = vcombine.high %v2818_v28, %v2826_v31 }
 0xa07   : > { %v2777_v33 = vcombine.low %v2768_v23, %v2776_v29  ;;  %v6025_v34 = vcombine.high %v2768_v23, %v2776_v29  ;;  %v2833_v17 = vshrl.u32 %v2827_v38, 16  ;;  %v2839_v47 = vshrl.u32 %v6027_v39, 16 }
 0xa09   : > { %v2832_v41 = vshrl.u32 %v2777_v33, 16  ;;  %v2831_v44 = vpack.i.b16 %v2827_v38, %v2777_v33  ;;  %v2837_v45 = vpack.i.b16 %v6027_v39, %v6025_v34  ;;  %v2838_v46 = vshrl.u32 %v6025_v34, 16 }
 0xa0b   : > { %v3117_v48 = vsel %vm1661_vm5, %v2831_v44, 0  ;;  %v2834_v49 = vpack.i.b16 %v2833_v17, %v2832_v41  ;;  %v6036_v52 = vpack.i.b16 %v2839_v47, %v2838_v46 }
 0xa0c   : > { %4440 = vmatpush3.bf16.xpose.msra.mxu1 %v3117_v48 }
 0xa0d   : > { %v3163_v53 = vsel %vm1661_vm5, %v2834_v49, 0  ;;  %4451 = vmatprep.subr.bf16.mxu1 %v5174_v16 }
 0xa0e   : > { %4446 = vmatpush3.bf16.xpose.msra.mxu0 %v3163_v53 }
 0xa0f   : > { %4457 = vmatprep.subr.bf16.mxu0 %v5174_v16 }
 0xad6   : > { %v2391_v32 = vpop.f32.mrb[20].mxu0 }
 0xad7   : > { %v2392_v35 = vadd.f32 %v4256_v22, %v2391_v32  ;;  %v4437_v36 = vpop.f32.mrb[21].mxu0 }
 0xad8   : > { %v2394_v40 = vpop.f32.mrb[22].mxu0 }
 0xad9   : > { %v2399_v14 = vpack.c.bf16 %v2392_v35, %v2392_v35  ;;  %v4438_v42 = vpop.f32.mrb[23].mxu0 }
 0xadb   : > { %2403 = vrot.lane.b32.xlu0 %v2399_v14, %s5179_s29  ;;  %2401 = vrot.lane.b32.xlu1 %v2399_v14, %s5177_s2  ;;  %v2413_v57 = vrot.slane %v2399_v14, %v5764_v37 }
 0xadf   : > { %2405 = vrot.lane.b32.xlu1 %v2399_v14, %s5176_s19  ;;  %s6428_s19 = sld [smem:[#allocation54_spill]] }
 0xb4d   : > { %v2404_v55 = vpop.permute.xlu0 %2403  ;;  %v2402_v56 = vpop.permute.xlu1 %2401 }
 0xb4e   : > { %v2421_v58 = vrot.slane %v2404_v55, %v5764_v37  ;;  %v2447_v62 = vrot.slane %v2402_v56, %v5764_v37  ;;  %v3209_v55 = vsel %vm1661_vm5, %v2837_v45, 0 }
 0xb50   : > { %v2422_v59 = vcombine.low %v2413_v57, %v2421_v58  ;;  %v2423_v24 = vcombine.high %v2413_v57, %v2421_v58  ;;  %v3255_v58 = vsel %vm1661_vm5, %v6036_v52, 0 }
 0xb51   : > { %v2406_v60 = vpop.permute.xlu1 %2405 }
 0xb52   : > { %v2430_v61 = vrot.slane %v2422_v59, %v5774_v43  ;;  %v2455_v26 = vrot.slane %v2406_v60, %v5764_v37  ;;  %v2437_v63 = vrot.slane %v2423_v24, %v5774_v43 }
 0xb54   : > { %v2456_v0 = vcombine.low %v2447_v62, %v2455_v26  ;;  %v2457_v1 = vcombine.high %v2447_v62, %v2455_v26  ;;  %v2438_v2 = vcombine.high %v2430_v61, %v5182_v54  ;;  %v2439_v3 = vcombine.high %v2437_v63, %v5182_v54 }
 0xb55   : > { %v2478_v4 = vshrl.u32 %v2430_v61, 16  ;;  %v2494_v10 = vshrl.u32 %v2437_v63, 16 }
 0xb56   : > { %v2464_v50 = vrot.slane %v2456_v0, %v5774_v43  ;;  %v2471_v51 = vrot.slane %v2457_v1, %v5774_v43  ;;  %v2486_v9 = vshrl.u32 %v2438_v2, 16  ;;  %v2502_v23 = vshrl.u32 %v2439_v3, 16 }
 0xb58   : > { %v2472_v18 = vcombine.high %v2464_v50, %v5182_v54  ;;  %v2473_v6 = vcombine.high %v2471_v51, %v5182_v54  ;;  %v2476_v7 = vpack.i.b16 %v2464_v50, %v2430_v61  ;;  %v2479_v8 = vshrl.u32 %v2464_v50, 16 }
 0xb59   : > { %v2492_v11 = vpack.i.b16 %v2471_v51, %v2437_v63  ;;  %v2495_v12 = vshrl.u32 %v2471_v51, 16 }
 0xb5a   : > { %v2480_v15 = vpack.i.b16 %v2479_v8, %v2478_v4  ;;  %v2484_v20 = vpack.i.b16 %v2472_v18, %v2438_v2  ;;  %v2487_v21 = vshrl.u32 %v2472_v18, 16  ;;  %v2500_v22 = vpack.i.b16 %v2473_v6, %v2439_v3 }
 0xb5b   : > { %v2496_v29 = vpack.i.b16 %v2495_v12, %v2494_v10  ;;  %v2503_v28 = vshrl.u32 %v2473_v6, 16  ;;  %v2506_v31 = vcombine.low %v2476_v7, %v2492_v11 }
 0xb5c   : > { %v2488_v32 = vpack.i.b16 %v2487_v21, %v2486_v9  ;;  %v2514_v33 = vcombine.low %v2484_v20, %v2500_v22 }
 0xb5d   : > { %v2504_v35 = vpack.i.b16 %v2503_v28, %v2502_v23  ;;  %v2531_v36 = vcombine.low %v2480_v15, %v2496_v29  ;;  %v2513_v38 = vrot.slane %v2506_v31, %v5764_v37 }
 0xb5e   : > { %v2521_v40 = vrot.slane %v2514_v33, %v5764_v37 }
 0xb5f   : > { %v2539_v41 = vcombine.low %v2488_v32, %v2504_v35  ;;  %v2538_v42 = vrot.slane %v2531_v36, %v5764_v37 }
 0xb60   : > { %v2522_v14 = vcombine.low %v2513_v38, %v2521_v40 }
 0xb61   : > { %v2546_v44 = vrot.slane %v2539_v41, %v5764_v37 }
 0xb62   : > { %v2529_v46 = vrot.slane %v2522_v14, %v5774_v43 }
 0xb63   : > { %v2547_v17 = vcombine.low %v2538_v42, %v2546_v44 }
 0xb64   : > { %v2559_v49 = vshrl.u32 %v2529_v46, 16  ;;  %v2530_v59 = vcombine.high %v2529_v46, %v5182_v54 }
 0xb65   : > { %v2554_v47 = vrot.slane %v2547_v17, %v5774_v43 }
 0xb66   : > { %v2565_v45 = vshrl.u32 %v2530_v59, 16 }
 0xb67   : > { %v2558_v48 = vpack.i.b16 %v2554_v47, %v2529_v46  ;;  %v2560_v53 = vshrl.u32 %v2554_v47, 16  ;;  %v2555_v57 = vcombine.high %v2554_v47, %v5182_v54  ;;  %v2398_v54 = vld [vmem:[%s6424_s24] sm:$0xff] }
 0xb69   : > { %4442 = vmatmul.mubr.msk.bf16.vlgmr.msra.gmra.mrb[20].mxu1 %vm1661_vm5, %v2558_v48  ;;  %v2561_v56 = vpack.i.b16 %v2560_v53, %v2559_v49  ;;  %v2566_v34 = vshrl.u32 %v2555_v57, 16  ;;  %v2564_v39 = vpack.i.b16 %v2555_v57, %v2530_v59 }
 0xb6a   : > { %4452 = vmatpush3.bf16.xpose.msra.mxu1 %v3209_v55  ;;  %4453 = vmatprep.mubr.msk.bf16.mxu1 %vm5175_vm3, %v5174_v16 }
 0xb6b   : > { %4448 = vmatmul.mubr.msk.bf16.vlgmr.msra.gmra.mrb[24].mxu0 %vm1661_vm5, %v2561_v56  ;;  %4463 = vmatprep.subr.bf16.mxu1 %v5174_v16  ;;  %v2567_v24 = vpack.i.b16 %v2566_v34, %v2565_v45 }
 0xb6c   : > { %4458 = vmatpush3.bf16.xpose.msra.mxu0 %v3255_v58  ;;  %4459 = vmatprep.mubr.msk.bf16.mxu0 %vm5175_vm3, %v5174_v16 }
 0xb6d   : > { %4469 = vmatprep.subr.bf16.mxu0 %v5174_v16 }
 0xb71   : > { %4454 = vmatmul.mubr.msk.bf16.vlgmr.msra.gmra.mrb[24].mxu1 %vm1661_vm5, %v2564_v39 }
 0xb72   : > { %4465 = vmatprep.mubr.msk.bf16.mxu1 %vm5175_vm3, %v5174_v16 }
 0xb73   : > { %4460 = vmatmul.mubr.msk.bf16.vlgmr.msra.gmra.mrb[28].mxu0 %vm1661_vm5, %v2567_v24 }
 0xb74   : > { %4471 = vmatprep.mubr.msk.bf16.mxu0 %vm5175_vm3, %v5174_v16 }
 0xc3c   : > { %v3153_v52 = vpop.f32.mrb[20].mxu1 }
 0xc3d   : > { %v3154_v60 = vadd.f32 %v3153_v52, %v2398_v54  ;;  %v4443_v61 = vpop.f32.mrb[21].mxu1 }
 0xc3e   : > { %v3156_v26 = vpop.f32.mrb[22].mxu1  ;;  %v3199_v62 = vpop.f32.mrb[24].mxu0 }
 0xc3f   : > { %v3200_v63 = vadd.f32 %v3199_v62, %v2398_v54  ;;  %v4444_v0 = vpop.f32.mrb[23].mxu1  ;;  %v4449_v1 = vpop.f32.mrb[25].mxu0  ;;  %v3297_v2 = vsel %vm2228_vm7, %v3154_v60, -inf }
 0xc40   : > { %3298 = vmax.xlane.f32.xlu0 %v3297_v2  ;;  %v3202_v50 = vpop.f32.mrb[26].mxu0 }
 0xc41   : > { %v4450_v51 = vpop.f32.mrb[27].mxu0  ;;  %v3300_v3 = vsel %vm2228_vm7, %v3200_v63, -inf }
 0xc42   : > { %3301 = vmax.xlane.f32.xlu1 %v3300_v3 }
 0xc44   : > { %v3245_v4 = vpop.f32.mrb[24].mxu1 }
 0xc45   : > { %v3246_v18 = vadd.f32 %v3245_v4, %v2398_v54  ;;  %v4455_v6 = vpop.f32.mrb[25].mxu1 }
 0xc46   : > { %v3248_v7 = vpop.f32.mrb[26].mxu1  ;;  %v3291_v8 = vpop.f32.mrb[28].mxu0 }
 0xc47   : > { %v3292_v9 = vadd.f32 %v3291_v8, %v2398_v54  ;;  %v4456_v10 = vpop.f32.mrb[27].mxu1  ;;  %v4461_v11 = vpop.f32.mrb[29].mxu0  ;;  %v3303_v12 = vsel %vm2228_vm7, %v3246_v18, -inf }
 0xc48   : > { %3304 = vmax.xlane.f32.xlu0 %v3303_v12  ;;  %v3294_v15 = vpop.f32.mrb[30].mxu0 }
 0xc49   : > { %v4462_v20 = vpop.f32.mrb[31].mxu0  ;;  %v3306_v21 = vsel %vm2228_vm7, %v3292_v9, -inf }
 0xc4c   : > { %3307 = vmax.xlane.f32.xlu0 %v3306_v21 }
 0xc53   : > { %2841 = vrot.lane.b32.xlu1 %v5953_v5, %s5178_s15 }
 0xc57   : > { %2845 = vrot.lane.b32.xlu1 %v5977_v25, %s5178_s15 }
 0xc5b   : > { %2847 = vrot.lane.b32.xlu1 %v5979_v19, %s5178_s15 }
 0xc62   : > { %2843 = vrot.lane.b32.xlu0 %v5975_v27, %s5178_s15  ;;  %s6425_s15 = sld [smem:[#allocation47_spill]] }
 0xccd   : > { %v3299_v22 = vpop.xlane.xlu0 %3298 }
 0xcce   : > { %v3309_v23 = vsub.f32 %v3154_v60, %v3299_v22 }
 0xccf   : > { %v3302_v29 = vpop.xlane.xlu1 %3301 }
 0xcd0   : > { %v3313_v28 = vmul.f32 1.442695, %v3309_v23  ;;  %v3310_v31 = vsub.f32 %v3200_v63, %v3302_v29 }
 0xcd2   : > { %4730 = vpow2.f32 %v3313_v28  ;;  %v3315_v32 = vmul.f32 1.442695, %v3310_v31 }
 0xcd3   : > { %v2842_v33 = vpop.permute.xlu1 %2841 }
 0xcd4   : > { %4732 = vpow2.f32 %v3315_v32  ;;  %v2853_v17 = vshrl.u32 %v2842_v33, 16 }
 0xcd5   : > { %v3305_v35 = vpop.xlane.xlu0 %3304 }
 0xcd6   : > { %v3311_v5 = vsub.f32 %v3246_v18, %v3305_v35 }
 0xcd7   : > { %v2846_v36 = vpop.permute.xlu1 %2845 }
 0xcd8   : > { %v3317_v38 = vmul.f32 1.442695, %v3311_v5  ;;  %v2861_v27 = vshrl.u32 %v2846_v36, 16 }
 0xcd9   : > { %v3308_v25 = vpop.xlane.xlu0 %3307 }
 0xcda   : > { %4734 = vpow2.f32 %v3317_v38  ;;  %v3312_v40 = vsub.f32 %v3292_v9, %v3308_v25 }
 0xcdb   : > { %v2848_v19 = vpop.permute.xlu1 %2847 }
 0xcdc   : > { %v6096_v41 = vpop.eup %4730  ;;  %v3319_v14 = vmul.f32 1.442695, %v3312_v40  ;;  %v2859_v42 = vpack.i.b16 %v2848_v19, %v2846_v36  ;;  %v2862_v44 = vshrl.u32 %v2848_v19, 16 }
 0xcdd   : > { %v2844_v46 = vpop.permute.xlu0 %2843  ;;  %v3321_v47 = vsel %vm2228_vm7, %v6096_v41, 0.0 }
 0xcde   : > { %v6100_v48 = vpop.eup %4732  ;;  %4736 = vpow2.f32 %v3319_v14  ;;  %v2863_v49 = vpack.i.b16 %v2862_v44, %v2861_v27  ;;  %v2880_v53 = vcombine.high %v2859_v42, %v5987_v30  ;;  %3322 = vadd.xlane.f32.xlu0 %v3321_v47  ;;  %v2851_v55 = vpack.i.b16 %v2844_v46, %v2842_v33 }
 0xcdf   : > { %v2854_v56 = vshrl.u32 %v2844_v46, 16  ;;  %v3324_v57 = vsel %vm2228_vm7, %v6100_v48, 0.0  ;;  %v2887_v59 = vrot.slane %v2859_v42, %v5764_v37 }
 0xce0   : > { %v2946_v58 = vcombine.high %v2863_v49, %v5987_v30  ;;  %3325 = vadd.xlane.f32.xlu1 %v3324_v57  ;;  %v2865_v39 = vcombine.high %v2851_v55, %v5987_v30  ;;  %v2872_v45 = vrot.slane %v2851_v55, %v5764_v37  ;;  %v2894_v24 = vrot.slane %v2880_v53, %v5764_v37 }
 0xce1   : > { %v2855_v34 = vpack.i.b16 %v2854_v56, %v2853_v17  ;;  %v2953_v62 = vrot.slane %v2863_v49, %v5764_v37 }
 0xce2   : > { %v2879_v54 = vrot.slane %v2865_v39, %v5764_v37  ;;  %v2895_v52 = vcombine.low %v2872_v45, %v2887_v59  ;;  %v2896_v60 = vcombine.high %v2872_v45, %v2887_v59  ;;  %v2960_v63 = vrot.slane %v2946_v58, %v5764_v37 }
 0xce3   : > { %v2931_v61 = vcombine.high %v2855_v34, %v5987_v30  ;;  %v2938_v0 = vrot.slane %v2855_v34, %v5764_v37 }
 0xce4   : > { %v6112_v26 = vpop.eup %4734  ;;  %v2903_v1 = vrot.slane %v2895_v52, %v5774_v43  ;;  %v2910_v2 = vrot.slane %v2896_v60, %v5774_v43  ;;  %v2911_v50 = vcombine.low %v2879_v54, %v2894_v24  ;;  %v2912_v51 = vcombine.high %v2879_v54, %v2894_v24 }
 0xce5   : > { %v2945_v3 = vrot.slane %v2931_v61, %v5764_v37  ;;  %v2961_v4 = vcombine.low %v2938_v0, %v2953_v62  ;;  %v2962_v18 = vcombine.high %v2938_v0, %v2953_v62  ;;  %v3327_v30 = vsel %vm2228_vm7, %v6112_v26, 0.0 }
 0xce6   : > { %v2919_v6 = vrot.slane %v2911_v50, %v5774_v43  ;;  %v2926_v7 = vrot.slane %v2912_v51, %v5774_v43  ;;  %v2997_v8 = vcombine.low %v2903_v1, %v2910_v2  ;;  %v4264_v9 = vcombine.high %v2903_v1, %v2910_v2  ;;  %3328 = vadd.xlane.f32.xlu0 %v3327_v30 }
 0xce7   : > { %v2969_v11 = vrot.slane %v2961_v4, %v5774_v43  ;;  %v2976_v12 = vrot.slane %v2962_v18, %v5774_v43  ;;  %v2977_v15 = vcombine.low %v2945_v3, %v2960_v63  ;;  %v2978_v20 = vcombine.high %v2945_v3, %v2960_v63 }
 0xce8   : > { %v6124_v10 = vpop.eup %4736  ;;  %v3004_v21 = vrot.slane %v2997_v8, %v5764_v37  ;;  %v3012_v22 = vrot.slane %v4264_v9, %v5764_v37  ;;  %v3013_v23 = vcombine.low %v2919_v6, %v2926_v7  ;;  %v4265_v29 = vcombine.high %v2919_v6, %v2926_v7 }
 0xce9   : > { %v2985_v28 = vrot.slane %v2977_v15, %v5774_v43  ;;  %v2992_v31 = vrot.slane %v2978_v20, %v5774_v43  ;;  %v3047_v32 = vcombine.low %v2969_v11, %v2976_v12  ;;  %v4266_v33 = vcombine.high %v2969_v11, %v2976_v12 }
 0xcea   : > { %v3020_v35 = vrot.slane %v3013_v23, %v5764_v37  ;;  %v3028_v5 = vrot.slane %v4265_v29, %v5764_v37  ;;  %v3330_v36 = vsel %vm2228_vm7, %v6124_v10, 0.0  ;;  %v3029_v38 = vcombine.low %v3004_v21, %v3012_v22 }
 0xceb   : > { %v3054_v25 = vrot.slane %v3047_v32, %v5764_v37  ;;  %v3062_v40 = vrot.slane %v4266_v33, %v5764_v37  ;;  %v3063_v19 = vcombine.low %v2985_v28, %v2992_v31  ;;  %v4267_v27 = vcombine.high %v2985_v28, %v2992_v31  ;;  %3331 = vadd.xlane.f32.xlu0 %v3330_v36 }
 0xcec   : > { %v3037_v14 = vcombine.low %v3020_v35, %v3028_v5  ;;  %v3036_v46 = vrot.slane %v3029_v38, %v5774_v43 }
 0xced   : > { %v3070_v42 = vrot.slane %v3063_v19, %v5764_v37  ;;  %v3078_v44 = vrot.slane %v4267_v27, %v5764_v37  ;;  %v3079_v17 = vcombine.low %v3054_v25, %v3062_v40 }
 0xcee   : > { %v3044_v47 = vrot.slane %v3037_v14, %v5774_v43 }
 0xcef   : > { %v3087_v49 = vcombine.low %v3070_v42, %v3078_v44  ;;  %v3086_v56 = vrot.slane %v3079_v17, %v5774_v43  ;;  %v4704_v42 = vld [vmem:[#allocation18] sm:$0xff]  }
 0xcf0   : > { %v3045_v53 = vcombine.low %v3036_v46, %v3044_v47  ;;  %v3046_v55 = vcombine.high %v3036_v46, %v3044_v47 }
 0xcf1   : > { %v3094_v57 = vrot.slane %v3087_v49, %v5774_v43 }
 0xcf2   : > { %v3101_v34 = vshrl.u32 %v3045_v53, 16  ;;  %v3109_v39 = vshrl.u32 %v3046_v55, 16 }
 0xcf3   : > { %v3095_v58 = vcombine.low %v3086_v56, %v3094_v57  ;;  %v3096_v59 = vcombine.high %v3086_v56, %v3094_v57  ;;  %v4705_v57 = vld [vmem:[#allocation18 + $0x8] sm:$0xff]  }
 0xcf5   : > { %v3099_v45 = vpack.i.b16 %v3095_v58, %v3045_v53  ;;  %v3102_v24 = vshrl.u32 %v3095_v58, 16  ;;  %v3107_v54 = vpack.i.b16 %v3096_v59, %v3046_v55  ;;  %v3110_v52 = vshrl.u32 %v3096_v59, 16 }
 0xcf7   : > { %4464 = vmatpush3.bf16.msra.mxu1 %v3099_v45  ;;  %v3103_v60 = vpack.i.b16 %v3102_v24, %v3101_v34  ;;  %v3111_v61 = vpack.i.b16 %v3110_v52, %v3109_v39 }
 0xcf8   : > { %4475 = vmatprep.subr.bf16.mxu1 %v5174_v16 }
 0xcf9   : > { %4470 = vmatpush3.bf16.msra.mxu0 %v3103_v60 }
 0xcfa   : > { %4481 = vmatprep.subr.bf16.mxu0 %v5174_v16 }
 0xd6b   : > { %v3323_v62 = vpop.xlane.xlu0 %3322 }
 0xd6c   : > { %4738 = vrcp.f32 %v3323_v62 }
 0xd6d   : > { %v3326_v63 = vpop.xlane.xlu1 %3325 }
 0xd6e   : > { %4740 = vrcp.f32 %v3326_v63 }
 0xd73   : > { %v3329_v0 = vpop.xlane.xlu0 %3328 }
 0xd74   : > { %4742 = vrcp.f32 %v3329_v0 }
 0xd76   : > { %v4739_v1 = vpop.eup %4738 }
 0xd77   : > { %v3337_v2 = vmul.f32 %v4739_v1, %v6096_v41 }
 0xd78   : > { %v4741_v50 = vpop.eup %4740  ;;  %v3332_v3 = vpop.xlane.xlu0 %3331 }
 0xd79   : > { %v3338_v51 = vmul.f32 %v4741_v50, %v6100_v48  ;;  %v3341_v4 = vpack.c.bf16 %v3337_v2, %v3337_v2  ;;  %4744 = vrcp.f32 %v3332_v3 }
 0xd7b   : > { %4466 = vmatmul.mubr.msk.bf16.vlgmr.msra.gmra.mrb[28].mxu1 %vm2228_vm7, %v3341_v4  ;;  %v3342_v18 = vpack.c.bf16 %v3338_v51, %v3338_v51 }
 0xd7c   : > { %4476 = vmatpush3.bf16.msra.mxu1 %v3107_v54  ;;  %4477 = vmatprep.mubr.msk.bf16.mxu1 %vm5175_vm3, %v5174_v16 }
 0xd7d   : > { %4472 = vmatmul.mubr.msk.bf16.vlgmr.msra.gmra.mrb[32].mxu0 %vm2228_vm7, %v3342_v18  ;;  %4487 = vmatprep.subr.bf16.mxu1 %v5174_v16 }
 0xd7e   : > { %4482 = vmatpush3.bf16.msra.mxu0 %v3111_v61  ;;  %4483 = vmatprep.mubr.msk.bf16.mxu0 %vm5175_vm3, %v5174_v16  ;;  %v4743_v41 = vpop.eup %4742 }
 0xd7f   : > { %4495 = vmatprep.subr.bf16.mxu0 %v5174_v16  ;;  %v3339_v48 = vmul.f32 %v4743_v41, %v6112_v26 }
 0xd81   : > { %v3343_v30 = vpack.c.bf16 %v3339_v48, %v3339_v48 }
 0xd83   : > { %v4745_v6 = vpop.eup %4744  ;;  %4478 = vmatmul.mubr.msk.bf16.vlgmr.msra.gmra.mrb[32].mxu1 %vm2228_vm7, %v3343_v30 }
 0xd84   : > { %v3340_v7 = vmul.f32 %v4745_v6, %v6124_v10  ;;  %4491 = vmatprep.mubr.msk.bf16.mxu1 %vm5175_vm3, %v5174_v16  ;;  %4488 = vmatpush3.bf16.msra.mxu1 %v4704_v42 }
 0xd85   : > { %4489 = vmatprep.subr.bf16.mxu1 %v5174_v16 }
 0xd86   : > { %v3344_v8 = vpack.c.bf16 %v3340_v7, %v3340_v7 }
 0xd88   : > { %4484 = vmatmul.mubr.msk.bf16.vlgmr.msra.gmra.mrb[36].mxu0 %vm2228_vm7, %v3344_v8  ;;  %4490 = vmatpush3.bf16.msra.mxu1 %v4705_v57  ;;  %v4278_v8 = vld [vmem:[#allocation19] ss:$0 sm:$0xff] }
 0xd89   : > { %4499 = vmatprep.mubr.msk.bf16.mxu0 %vm5175_vm3, %v5174_v16  ;;  %4503 = vmatprep.subr.bf16.mxu1 %v5174_v16 }
 0xe4e   : > { %v3382_v9 = vpop.f32.mrb[28].mxu1 }
 0xe4f   : > { %v4467_v11 = vpop.f32.mrb[29].mxu1 }
 0xe50   : > { %v3385_v12 = vpop.f32.mrb[30].mxu1  ;;  %v3425_v15 = vpop.f32.mrb[32].mxu0 }
 0xe51   : > { %v4468_v26 = vpop.f32.mrb[31].mxu1  ;;  %v4473_v20 = vpop.f32.mrb[33].mxu0 }
 0xe52   : > { %v3428_v21 = vpop.f32.mrb[34].mxu0 }
 0xe53   : > { %v4474_v22 = vpop.f32.mrb[35].mxu0 }
 0xe56   : > { %v3468_v23 = vpop.f32.mrb[32].mxu1 }
 0xe57   : > { %v3517_v29 = vcombine.low %v3382_v9, %v3468_v23  ;;  %v3518_v10 = vcombine.high %v3382_v9, %v3468_v23  ;;  %v4479_v28 = vpop.f32.mrb[33].mxu1 }
 0xe58   : > { %v3471_v31 = vpop.f32.mrb[34].mxu1 }
 0xe59   : > { %v4480_v32 = vpop.f32.mrb[35].mxu1  ;;  %v3525_v25 = vrot.slane %v3517_v29, %v5764_v37  ;;  %v3532_v40 = vrot.slane %v3518_v10, %v5764_v37  ;;  %v4706_v31 = vld [vmem:[%s6425_s15] sm:$0xff]  }
 0xe5a   : > { %4496 = vmatpush3.bf16.msra.mxu0 %v4706_v31 }
 0xe5b   : > { %v3511_v33 = vpop.f32.mrb[36].mxu0  ;;  %4497 = vmatprep.subr.bf16.mxu0 %v5174_v16 }
 0xe5c   : > { %v3533_v35 = vcombine.low %v3425_v15, %v3511_v33  ;;  %v3534_v5 = vcombine.high %v3425_v15, %v3511_v33  ;;  %v4485_v36 = vpop.f32.mrb[37].mxu0 }
 0xe5d   : > { %v3514_v38 = vpop.f32.mrb[38].mxu0 }
 0xe5e   : > { %v3541_v19 = vrot.slane %v3533_v35, %v5764_v37  ;;  %v3548_v27 = vrot.slane %v3534_v5, %v5764_v37  ;;  %v4486_v14 = vpop.f32.mrb[39].mxu0 }
 0xe60   : > { %v3549_v44 = vcombine.low %v3525_v25, %v3541_v19  ;;  %v3550_v17 = vcombine.high %v3525_v25, %v3541_v19  ;;  %v3565_v46 = vcombine.low %v3532_v40, %v3548_v27  ;;  %v3566_v47 = vcombine.high %v3532_v40, %v3548_v27  ;;  %v4282_v25 = vld [vmem:[%s6427_s23] ss:$0 sm:$0xff]  ;;  %s6430_s23 = sld [smem:[#allocation50_spill]] }
 0xe61   : > { %v4283_v19 = vld [vmem:[%s6428_s19] ss:$0 sm:$0xff]  ;;  %s6431_s19 = sld [smem:[#allocation55_spill]] }
 0xe62   : > { %v3557_v49 = vrot.slane %v3549_v44, %v5774_v43  ;;  %v3564_v53 = vrot.slane %v3550_v17, %v5774_v43  ;;  %v3573_v55 = vrot.slane %v3565_v46, %v5774_v43  ;;  %v3580_v56 = vrot.slane %v3566_v47, %v5774_v43  ;;  %v4284_v46 = vld [vmem:[%s6429_s9] ss:$0 sm:$0xff] }
 0xe64   : > { %v3585_v58 = vcombine.low %v3557_v49, %v3564_v53  ;;  %v4276_v59 = vcombine.high %v3557_v49, %v3564_v53  ;;  %v3601_v34 = vcombine.low %v3573_v55, %v3580_v56  ;;  %v4277_v39 = vcombine.high %v3573_v55, %v3580_v56 }
 0xe66   : > { %v3592_v45 = vrot.slane %v3585_v58, %v5764_v37  ;;  %v3600_v24 = vrot.slane %v4276_v59, %v5764_v37  ;;  %v3608_v54 = vrot.slane %v3601_v34, %v5764_v37  ;;  %v3616_v52 = vrot.slane %v4277_v39, %v5764_v37 }
 0xe68   : > { %v3618_v60 = vcombine.high %v3592_v45, %v3600_v24  ;;  %v3634_v61 = vcombine.high %v3608_v54, %v3616_v52  ;;  %v3617_v62 = vcombine.low %v3592_v45, %v3600_v24  ;;  %v3633_v63 = vcombine.low %v3608_v54, %v3616_v52 }
 0xe6a   : > { %v3632_v0 = vrot.slane %v3618_v60, %v5774_v43  ;;  %v3648_v1 = vrot.slane %v3634_v61, %v5774_v43  ;;  %v3625_v2 = vrot.slane %v3617_v62, %v5774_v43  ;;  %v3641_v50 = vrot.slane %v3633_v63, %v5774_v43 }
 0xe6c   : > { %v3651_v51 = vcombine.low %v3632_v0, %v3648_v1  ;;  %v3650_v3 = vcombine.high %v3625_v2, %v3641_v50  ;;  %v3652_v4 = vcombine.high %v3632_v0, %v3648_v1  ;;  %v3649_v18 = vcombine.low %v3625_v2, %v3641_v50 }
 0xe6e   : > { %3658 = vrot.lane.b32.xlu0 %v3651_v51, %s5184_s12  ;;  %3654 = vrot.lane.b32.xlu1 %v3650_v3, %s5185_s25  ;;  %v4294_v3 = vld [vmem:[%s6431_s19] ss:$0 sm:$0xff] }
 0xe72   : > { %3662 = vrot.lane.b32.xlu1 %v3652_v4, %s5186_s5  ;;  %s6426_s5 = sld [smem:[#allocation49_spill]] }
 0xe78   : > { %v4708_v32 = vld [vmem:[%s6426_s5] sm:$0xff]   ;;  %v4709_v33 = vld [vmem:[%s6426_s5 + $0x8] sm:$0xff]   ;;  %v4710_v44 = vld [vmem:[%s6426_s5 + $0x10] sm:$0xff]  }
 0xe79   : > { %v4711_v17 = vld [vmem:[%s6426_s5 + $0x18] sm:$0xff]  }
 0xee0   : > { %v3655_v37 = vpop.permute.xlu1 %3654  ;;  %v3659_v41 = vpop.permute.xlu0 %3658 }
 0xee1   : > { %v3665_v48 = vsel %vm1661_vm5, %v3649_v18, %v3655_v37  ;;  %v4295_v18 = vld [vmem:[%s6432_s11] ss:$0 sm:$0xff] }
 0xee2   : > { %v3666_v6 = vsel %vm2228_vm7, %v3665_v48, %v3659_v41 }
 0xee4   : > { %v3663_v30 = vpop.permute.xlu1 %3662 }
 0xee5   : > { %v3667_v7 = vsel %vm2230_vm8, %v3666_v6, %v3663_v30 }
 0xee6   : > { %v3668_v43 = vpack.c.bf16 %v3667_v7, %v3667_v7 }
 0xee8   : > { %4492 = vmatmul.mubr.msk.bf16.vlgmr.msra.gmra.mrb[36].mxu1 %vm1107_vm4, %v3668_v43 }
 0xee9   : > { %4511 = vmatprep.mubr.msk.bf16.mxu1 %vm5175_vm3, %v5174_v16  ;;  %4504 = vmatpush3.bf16.msra.mxu1 %v4708_v32 }
 0xeea   : > { %4505 = vmatprep.subr.bf16.mxu1 %v5174_v16 }
 0xeed   : > { %4506 = vmatpush3.bf16.msra.mxu1 %v4709_v33 }
 0xeee   : > { %4507 = vmatprep.subr.bf16.mxu1 %v5174_v16 }
 0xef1   : > { %4508 = vmatpush3.bf16.msra.mxu1 %v4710_v44 }
 0xef2   : > { %4509 = vmatprep.subr.bf16.mxu1 %v5174_v16  ;;  %v4288_v16 = vld [vmem:[%s6430_s23] ss:$0 sm:$0xff] }
 0xef5   : > { %4510 = vmatpush3.bf16.msra.mxu1 %v4711_v17 }
 0xfbb   : > { %v3729_v9 = vpop.f32.mrb[36].mxu1 }
 0xfbc   : > { %v3730_v11 = vadd.f32 %v4278_v8, %v3729_v9  ;;  %v4493_v12 = vpop.f32.mrb[37].mxu1 }
 0xfbd   : > { %v3732_v15 = vpop.f32.mrb[38].mxu1 }
 0xfbe   : > { %v4494_v26 = vpop.f32.mrb[39].mxu1  ;;  %v3735_v20 = vadd.f32 %v3730_v11, %v5968_v13  ;;  %v4707_v13 = vld [vmem:[%s6425_s15 + $0x8] sm:$0xff]  }
 0xfbf   : > { %4498 = vmatpush3.bf16.msra.mxu0 %v4707_v13  ;;  %v4297_v26 = vld [vmem:[%s6433_s28] ss:$0 sm:$0xff] (!%p4296_p12) }
 0xfc0   : > { %v3736_v21 = vsel %vm1107_vm4, %v3735_v20, 0.0 }
 0xfc1   : > { %3737 = vadd.xlane.f32.xlu1 %v3736_v21  ;;  %v4298_v21 = vld [vmem:[%s6434_s13] ss:$0 sm:$0xff] (!%p4296_p12) }
0x104e   : > { %v3738_v22 = vpop.xlane.xlu1 %3737 }
0x104f   : > { %v3739_v23 = vmul.f32 0.03125, %v3738_v22 }
0x1051   : > { %v3740_v29 = vsub.f32 %v3735_v20, %v3739_v23 }
0x1053   : > { %v3741_v10 = vmul.f32 %v3740_v29, %v3740_v29 }
0x1055   : > { %v3742_v28 = vsel %vm1107_vm4, %v3741_v10, 0.0 }
0x1056   : > { %3743 = vadd.xlane.f32.xlu0 %v3742_v28 }
0x10e3   : > { %v3744_v35 = vpop.xlane.xlu0 %3743 }
0x10e4   : > { %v3745_v5 = vmul.f32 0.03125, %v3744_v35 }
0x10e6   : > { %v3746_v36 = vadd.f32 1e-05, %v3745_v5 }
0x10e8   : > { %4746 = vrsqrt.f32 %v3746_v36 }
0x10f2   : > { %v4747_v38 = vpop.eup %4746 }
0x10f3   : > { %v3748_v40 = vmul.f32 %v4747_v38, %v3740_v29 }
0x10f5   : > { %v3756_v27 = vmul.f32 %v4282_v25, %v3748_v40 }
0x10f7   : > { %v3764_v14 = vadd.f32 %v4283_v19, %v3756_v27 }
0x10f9   : > { %v3765_v42 = vpack.c.bf16 %v3764_v14, %v3764_v14 }
0x10fb   : > { %4500 = vmatmul.mubr.msk.bf16.vlgmr.msra.gmra.mrb[40].mxu0 %vm1107_vm4, %v3765_v42 }
0x11ce   : > { %v3826_v47 = vpop.f32.mrb[40].mxu0 }
0x11cf   : > { %v3827_v49 = vadd.f32 %v4284_v46, %v3826_v47  ;;  %v4501_v53 = vpop.f32.mrb[41].mxu0 }
0x11d0   : > { %v3829_v55 = vpop.f32.mrb[42].mxu0 }
0x11d1   : > { %v3832_v56 = vmax.f32 %v3827_v49, 0.0  ;;  %v4502_v57 = vpop.f32.mrb[43].mxu0 }
0x11d3   : > { %v3833_v58 = vpack.c.bf16 %v3832_v56, %v3832_v56 }
0x11d5   : > { %4512 = vmatmul.mubr.msk.bf16.vlgmr.msra.gmra.mrb[40].mxu1 %vm3873_vm9, %v3833_v58 }
0x12a8   : > { %v3911_v59 = vpop.f32.mrb[40].mxu1 }
0x12a9   : > { %v3912_v34 = vadd.f32 %v4288_v16, %v3911_v59  ;;  %v4513_v39 = vpop.f32.mrb[41].mxu1 }
0x12aa   : > { %v3914_v45 = vpop.f32.mrb[42].mxu1 }
0x12ab   : > { %v4514_v24 = vpop.f32.mrb[43].mxu1  ;;  %v3917_v54 = vadd.f32 %v3912_v34, %v3764_v14 }
0x12ad   : > { %v3918_v52 = vsel %vm1107_vm4, %v3917_v54, 0.0 }
0x12ae   : > { %3919 = vadd.xlane.f32.xlu0 %v3918_v52 }
0x133b   : > { %v3920_v60 = vpop.xlane.xlu0 %3919 }
0x133c   : > { %v3921_v61 = vmul.f32 0.03125, %v3920_v60 }
0x133e   : > { %v3922_v62 = vsub.f32 %v3917_v54, %v3921_v61 }
0x1340   : > { %v3923_v63 = vmul.f32 %v3922_v62, %v3922_v62 }
0x1342   : > { %v3924_v0 = vsel %vm1107_vm4, %v3923_v63, 0.0 }
0x1343   : > { %3925 = vadd.xlane.f32.xlu1 %v3924_v0 }
0x13d0   : > { %v3926_v1 = vpop.xlane.xlu1 %3925 }
0x13d1   : > { %v3927_v2 = vmul.f32 0.03125, %v3926_v1 }
0x13d3   : > { %v3928_v50 = vadd.f32 1e-05, %v3927_v2 }
0x13d5   : > { %4748 = vrsqrt.f32 %v3928_v50 }
0x13df   : > { %v4749_v51 = vpop.eup %4748 }
0x13e0   : > { %v3930_v4 = vmul.f32 %v4749_v51, %v3922_v62  ;;  %3951 = sbr.rel (%p4296_p12) target bundleno = 5408 (0x1520), region = 172 }
0x13e2   : > { %v3938_v37 = vmul.f32 %v4294_v3, %v3930_v4 }
0x13e4   : > { %v3946_v41 = vadd.f32 %v4295_v18, %v3938_v37 }
0x13e6   : > { %3947 = vst.msk [vmem:[#allocation2] sm:$0xff] %vm1107_vm4, %v3946_v41  ;;  %v3952_v48 = vsel (!%p4296_p12), %vm1107_vm4, %v3946_v41, 0.0 }
0x13e7   : > { %3953 = vadd.xlane.f32.xlu0 %v3952_v48 }
0x1474   : > { %v3954_v30 = vpop.xlane.xlu0 %3953 }
0x1475   : > { %v3955_v6 = vmul.f32 0.03125, %v3954_v30 }
0x1477   : > { %v3956_v7 = vsub.f32 %v3946_v41, %v3955_v6 }
0x1479   : > { %v3957_v43 = vmul.f32 %v3956_v7, %v3956_v7 }
0x147b   : > { %v3958_v8 = vsel %vm1107_vm4, %v3957_v43, 0.0 }
0x147c   : > { %3959 = vadd.xlane.f32.xlu0 %v3958_v8 }
0x1509   : > { %v3960_v9 = vpop.xlane.xlu0 %3959 }
0x150a   : > { %v3961_v11 = vmul.f32 0.03125, %v3960_v9 }
0x150c   : > { %v3962_v12 = vadd.f32 1e-05, %v3961_v11 }
0x150e   : > { %4750 = vrsqrt.f32 %v3962_v12 }
0x1518   : > { %v4751_v15 = vpop.eup %4750 }
0x1519   : > { %v3964_v20 = vmul.f32 %v4751_v15, %v3956_v7 }
0x151b   : > { %v3972_v22 = vmul.f32 %v4297_v26, %v3964_v20 }
0x151d   : > { %v3980_v23 = vadd.f32 %v4298_v21, %v3972_v22 }
0x151f   : > { %3981 = vst.msk [vmem:[%s991_s17] sm:$0xff] %vm1107_vm4, %v3980_v23 }
0x1520 PF: > { %s4300_s22 = sshll.u32 %s5146_s8, 7  ;;  %s6435_s24 = sld [smem:[#allocation59_spill]] }
0x1521   : > { %s3996_s2 = sshll.u32 %s991_s17, 4  ;;  %s3983_s29 = scalar_lea.sflag [#allocation6], %s5671_s26  ;;  %s3997_s2 = int_to_ptr.vmem [resolvable:$true] %s3996_s2 }
0x1522   : > { %s5036_s11 = scalar_lea.vmem %s3997_s2, 128  ;;  %p6436_p7 = scmp.ne.s32.totalorder %s6401_s14, 0 }
0x1523   : > { %p5037_p2 = scmp.ne.s32.totalorder %s3997_s2, %s5036_s11  ;;  %s5187_s12 = smov [#allocation21]  }
0x1524   : > { %s5040_s25 = sshll.u32 %s5187_s12, 4  ;;  %s5041_s25 = int_to_ptr.vmem [resolvable:$false] %s5040_s25 }
0x1525   : > { %p5038_p3 = pnand %p5037_p2, %p6436_p7  ;;  %s5042_s28 = scalar_lea.vmem %s5041_s25, 256 }
0x1526   : > { %s6254_s19 = scalar_lea.hbm %s6435_s24, %s4300_s22  ;;  %p5043_p1 = scmp.lt.s32.totalorder %s3997_s2, %s5041_s25 }
0x1527   : > { %p5039_p9 = pneg %p5038_p3  ;;  %p5044_p11 = scmp.lt.s32.totalorder %s5042_s28, %s5036_s11 }
0x1529   : > { %p5045_p13 = por %p5044_p11, %p5043_p1 }
0x152b   : > { %p5046_p0 = pnand %p5045_p13, %p5039_p9 }
0x152d   : > { %5049 = shalt.err (!%p5046_p0)
}
0x152e   : > { %s5050_s8 = scalar_lea.hbm %s6254_s19, 128  ;;  %s5054_s17 = scalar_lea.hbm %s6435_s24, 256 }
0x152f   : > { %p5051_p5 = scmp.ne.s32.totalorder %s6254_s19, %s5050_s8  ;;  %p5055_p6 = scmp.lt.u32.totalorder %s6254_s19, %s6435_s24 }
0x1530   : > { %p5056_p8 = scmp.lt.u32.totalorder %s5054_s17, %s5050_s8  ;;  %p5058_p2 = scmp.lt.u32.totalorder %s5050_s8, %s6254_s19 }
0x1531   : > { %p5052_p4 = pnand %p5051_p5, %p6436_p7 }
0x1532   : > { %p5057_p12 = por %p5056_p8, %p5055_p6 }
0x1533   : > { %p5053_p10 = pneg %p5052_p4 }
0x1534   : > { %p5059_p3 = por %p5058_p2, %p5057_p12 }
0x1536   : > { %p5060_p9 = pnand %p5059_p3, %p5053_p10 }
0x1538   : > { %5063 = shalt.err (!%p5060_p9)
}
0x1539   : > { %4551 = dma.vmem_to_hbm [thread:$0]  (%p6436_p7), %s3997_s2, 128, %s6254_s19, %s3983_s29  }
0x153a PF: > { %p4606_p1 = scmp.ge.s32.totalorder %s5158_s0, 2  ;;  %s4008_s13 = sand.u32 1, %s5130_s27  }
0x153b   : > { %p6437_p11 = scmp.ne.s32.totalorder %s6402_s16, 0  ;;  %s4009_s22 = scalar_lea.sflag [#allocation6], %s4008_s13 }
0x153d   : > { %p4586_p13 = pnand %p4606_p1, %p6437_p11 }
0x153f   : > { %5125 = dma.done.wait (!%p4586_p13), %s4009_s22, 128  }
0x1540   : > { %5127 = vsyncadd (!%p4586_p13), %s4009_s22, 4294967168  ;;  %s49_s0 = sadd.s32 1, %s5158_s0   ;;  %s6438_s8 = sld [smem:[#allocation30_spill]] }
0x1541   : > { %p46_p0 = scmp.ge.s32.totalorder %s49_s0, 6   ;;  %s6439_s14 = sld [smem:[#allocation31_spill]] }
0x1542   : > { %s6440_s29 = sld [smem:[#allocation32_spill]]  ;;  %s6441_s27 = smov %s5134_s3 }
0x1543   : > { %s6442_s3 = smov %s5138_s7  ;;  %s6443_s7 = smov %s5599_s6 }
0x1544   : > { %s6444_s28 = smov %s5150_s4  ;;  %48 = sbr.rel (!%p46_p0) target bundleno = 41 (0x29), region = 228 }
0x1547   : > { %s6445_s4 = smov %s6439_s14 }
0x154b   :  { %4014 = vsyncpa [#allocation5], 1 }
0x154c   :  { %4016 = vsyncpa [#allocation5 + $0x1], 1 }
0x154d   :  { %4017 = vsyncpa [#allocation8], 1 }
0x154e   :  { %4019 = vsyncpa [#allocation8 + $0x1], 1 }
0x154f   :  { %4020 = vsyncpa [#allocation11], 1 }
0x1550   :  { %4021 = vsyncpa [#allocation14], 1 }
0x1551   :  { %4022 = vsyncpa [#allocation17], 1 }
0x1552   :  { %4023 = vsyncpa [#allocation20], 1 }
0x1553   :  { %4024 = vsyncpa [#allocation6], 1 }
0x1554   :  { %4026 = vsyncpa [#allocation6 + $0x1], 1 }

</bundles_post_ra>
